<compile_context>
chip_gen: v7x
topology: tpu7x:2x2x1
jax: 0.10.0
libtpu: 0.0.40
codegen_flags: <defaults>
</compile_context>

<pallas_src>
import jax
import jax.numpy as jnp
from jax.experimental import pallas as pl
from jax.experimental.pallas import tpu as pltpu

# ----------------------------- configuration -------------------------------
N, S, H, W = 2, 4, 16, 16          # batch, sequence length, spatial
HW = H * W                         # flattened spatial (lane axis)
C_BB = 8                           # backbone output channels
BIN_NUM = (4, 2, 1)                # HorizontalPoolingPyramid bins
P = sum(BIN_NUM)                   # number of horizontal parts
C_FC = 16                          # SeparateFCs out_channels
NUM_CLASS = 10                     # SeparateBNNecks class_num
BN_EPS = 1e-5
LRELU_SLOPE = 0.01
NORM_EPS = 1e-12
PAD = 32                           # flat zero-padding for the shifted-add conv (>= W+1)


# ----------------------------- fused Pallas kernel ------------------------------
def fused_baseline_kernel(
    x_ref,        # (N, S, HW)        silhouettes, H*W flattened on lanes
    wconv_ref,    # (1, C_BB, 3, 3)   conv taps
    mask_l_ref,   # (1, HW)           column validity for dj = -1
    mask_r_ref,   # (1, HW)           column validity for dj = +1
    w1_ref,       # (P*C_BB, C_FC*P)  block-permuted SeparateFCs weights
    bnsc_ref,     # (1, C_FC*P)       eval-mode BN scale   (channel j = c*P + p)
    bnsh_ref,     # (1, C_FC*P)       eval-mode BN shift
    msum_ref,     # (C_FC*P, P)       per-part sum-of-squares reducer
    msumT_ref,    # (P, C_FC*P)       per-part broadcast-back matrix
    w2_ref,       # (C_FC*P, K*P)     block-permuted, L2-normalized classifier
    conv_ref,     # out (N, C_BB, S, HW)
    tp_ref,       # out (N, C_BB, HW)
    featp_ref,    # out (N, P*C_BB)      HPP features, p-major (reused as matmul input)
    e1_ref,       # out (N, C_FC*P)      order (c, p)  == embed_1.view(n, -1)
    e2_ref,       # out (N, C_FC*P)      order (c, p)  == embed_2.view(n, -1)
    logit_ref,    # out (N, K*P)         order (k, p)
    xpad,         # scratch (N, S, HW + 2*PAD)
):
    n, s, hw = x_ref.shape

    # ---- Backbone (SetBlockWrapper): 3x3 conv (C_in=1, pad=1) + LeakyReLU, all frames at once
    x = x_ref[...]                                               # (N, S, HW)
    xpad[...] = jnp.zeros(xpad.shape, jnp.float32)
    xpad[:, :, PAD:PAD + hw] = x
    w4 = wconv_ref[...]                                          # (1, C_BB, 3, 3)
    mask_l = mask_l_ref[...]                                     # (1, HW)
    mask_r = mask_r_ref[...]

    acc = jnp.zeros((n, C_BB, s, hw), jnp.float32)
    for ki in range(3):
        for kj in range(3):
            di, dj = ki - 1, kj - 1
            off = di * W + dj
            shifted = xpad[:, :, PAD + off:PAD + off + hw]       # (N, S, HW), zero-filled rows
            if dj == -1:
                shifted = shifted * mask_l                       # kill column wrap (j == 0)
            elif dj == 1:
                shifted = shifted * mask_r                       # kill column wrap (j == W-1)
            tap = w4[:, :, ki:ki + 1, kj:kj + 1]                 # (1, C_BB, 1, 1)
            acc = acc + tap * shifted[:, None, :, :]             # (N, C_BB, S, HW)
    outs = jnp.where(acc > 0, acc, LRELU_SLOPE * acc)            # LeakyReLU
    conv_ref[...] = outs

    # ---- Temporal pooling: PackSequenceWrapper(torch.max) over the sequence dim
    tp = jnp.max(outs, axis=2)                                   # (N, C_BB, HW)
    tp_ref[...] = tp

    # ---- HorizontalPoolingPyramid: per-bin mean + max over contiguous lane strips.
    #      Parts are written p-major straight into the featp output ref, which doubles
    #      as the SeparateFCs matmul input (no extra scratch copy).
    pidx = 0
    for b in BIN_NUM:
        seg = (H // b) * W                                       # 64 / 128 / 256 lanes
        for i in range(b):
            strip = tp[:, :, i * seg:(i + 1) * seg]              # (N, C_BB, seg)
            part = jnp.mean(strip, axis=-1) + jnp.max(strip, axis=-1)   # (N, C_BB)
            featp_ref[:, pidx * C_BB:(pidx + 1) * C_BB] = part
            pidx += 1

    # ---- SeparateFCs: one block-permuted matmul, output order j = c_out*P + p
    ff = featp_ref[...]                                          # (N, P*C_BB)
    e1 = jnp.dot(ff, w1_ref[...], preferred_element_type=jnp.float32)   # (N, C_FC*P)
    e1_ref[...] = e1

    # ---- SeparateBNNecks: eval-mode BN (folded affine) + per-part L2 norm + classifier
    xb = e1 * bnsc_ref[...] + bnsh_ref[...]                      # (N, C_FC*P)
    ss = jnp.dot(xb * xb, msum_ref[...], preferred_element_type=jnp.float32)   # (N, P)
    inv = 1.0 / jnp.maximum(jnp.sqrt(ss), NORM_EPS)              # F.normalize denom clamp
    invb = jnp.dot(inv, msumT_ref[...], preferred_element_type=jnp.float32)    # (N, C_FC*P)
    e2 = xb * invb
    e2_ref[...] = e2
    logit_ref[...] = jnp.dot(e2, w2_ref[...], preferred_element_type=jnp.float32)  # (N, K*P)


# ----------------------------- parameters ------------------------------
def init_params(key):
    """Canonical (PyTorch-shaped) parameters."""
    k1, k2, k3, k4, k5, k6, k7 = jax.random.split(key, 7)
    conv_w = jax.random.normal(k1, (C_BB, 1, 3, 3), jnp.float32) * (1.0 / 3.0)
    fc_bin_fcs = jax.random.normal(k2, (P, C_BB, C_FC), jnp.float32) * (
        (2.0 / (C_BB + C_FC)) ** 0.5)
    fc_bin_bn = jax.random.normal(k3, (P, C_FC, NUM_CLASS), jnp.float32) * (
        (2.0 / (C_FC + NUM_CLASS)) ** 0.5)
    nbn = C_FC * P                                   # BatchNorm1d(in_channels * parts_num)
    bn_gamma = 1.0 + 0.1 * jax.random.normal(k4, (nbn,), jnp.float32)
    bn_beta = 0.1 * jax.random.normal(k5, (nbn,), jnp.float32)
    bn_rmean = 0.1 * jax.random.normal(k6, (nbn,), jnp.float32)
    bn_rvar = 1.0 + 0.1 * jnp.abs(jax.random.normal(k7, (nbn,), jnp.float32))
    return dict(conv_w=conv_w, fc_bin_fcs=fc_bin_fcs, fc_bin_bn=fc_bin_bn,
                bn_gamma=bn_gamma, bn_beta=bn_beta, bn_rmean=bn_rmean, bn_rvar=bn_rvar)


def prepare_params(params):
    """One-time (outside jit) precompute of kernel-ready constants."""
    conv_w4 = params["conv_w"].reshape(1, C_BB, 3, 3)

    # column-edge validity masks for the 3x3 conv on the flattened H*W lane axis
    col = jnp.arange(HW, dtype=jnp.int32) % W
    mask_l = (col >= 1).astype(jnp.float32).reshape(1, HW)
    mask_r = (col <= W - 2).astype(jnp.float32).reshape(1, HW)

    # SeparateFCs as one dense block-permuted matmul:
    #   input  index i = p*C_BB + c_in   (featp layout, p-major)
    #   output index j = c_out*P + p     (canonical (c, p) flatten)
    w_fcs = params["fc_bin_fcs"]                       # (P, C_BB, C_FC)
    p_i = jnp.arange(P)[:, None, None]
    ci = jnp.arange(C_BB)[None, :, None]
    co = jnp.arange(C_FC)[None, None, :]
    w1bd = jnp.zeros((P * C_BB, C_FC * P), jnp.float32).at[
        p_i * C_BB + ci, co * P + p_i].set(w_fcs)

    # eval-mode BatchNorm1d(C_FC*P) folded into scale/shift (channel j = c*P + p)
    scale = params["bn_gamma"] / jnp.sqrt(params["bn_rvar"] + BN_EPS)
    shift = params["bn_beta"] - params["bn_rmean"] * scale

    # classifier: F.normalize(fc_bin, dim=1), block-permuted (in j = c*P+p, out j = k*P+p)
    w_bn = params["fc_bin_bn"]                         # (P, C_FC, K)
    wn = w_bn / jnp.maximum(
        jnp.sqrt(jnp.sum(w_bn * w_bn, axis=1, keepdims=True)), NORM_EPS)
    c_i = jnp.arange(C_FC)[None, :, None]
    k_i = jnp.arange(NUM_CLASS)[None, None, :]
    w2bd = jnp.zeros((C_FC * P, NUM_CLASS * P), jnp.float32).at[
        c_i * P + p_i, k_i * P + p_i].set(wn)

    # per-part L2-norm helpers: column j = c*P + p belongs to part j % P
    jj = jnp.arange(C_FC * P)
    msum = (jj[:, None] % P == jnp.arange(P)[None, :]).astype(jnp.float32)   # (C_FC*P, P)
    msumT = jnp.asarray(msum.T)                                              # (P, C_FC*P)

    return dict(conv_w4=conv_w4, mask_l=mask_l, mask_r=mask_r, w1bd=w1bd,
                bn_scale=scale.reshape(1, -1), bn_shift=shift.reshape(1, -1),
                msum=msum, msumT=msumT, w2bd=w2bd)


# ----------------------------- Baseline.forward -----------------------------
def baseline_forward(sils, labs, prep):
    """sils: (N, S, H, W) float32 silhouettes, labs: (N,) int labels, prep: kernel constants."""
    n, s, h, w = sils.shape
    hw = h * w
    x = sils.reshape(n, s, hw)                         # frames flattened on the lane axis

    conv, tp, featp, e1f, e2f, logitf = pl.pallas_call(
        fused_baseline_kernel,
        out_shape=(
            jax.ShapeDtypeStruct((n, C_BB, s, hw), jnp.float32),      # backbone output
            jax.ShapeDtypeStruct((n, C_BB, hw), jnp.float32),         # temporal max
            jax.ShapeDtypeStruct((n, P * C_BB), jnp.float32),         # HPP features (p, c) flat
            jax.ShapeDtypeStruct((n, C_FC * P), jnp.float32),         # embed_1 flat (c, p)
            jax.ShapeDtypeStruct((n, C_FC * P), jnp.float32),         # embed_2 flat (c, p)
            jax.ShapeDtypeStruct((n, NUM_CLASS * P), jnp.float32),    # logits flat (k, p)
        ),
        scratch_shapes=[
            pltpu.VMEM((n, s, hw + 2 * PAD), jnp.float32),            # padded flat frames
        ],
    )(x, prep["conv_w4"], prep["mask_l"], prep["mask_r"], prep["w1bd"],
      prep["bn_scale"], prep["bn_shift"], prep["msum"], prep["msumT"], prep["w2bd"])

    embed_1 = e1f.reshape(n, C_FC, P)
    embed_2 = e2f.reshape(n, C_FC, P)
    logits = logitf.reshape(n, NUM_CLASS, P)

    # HPP feature flatten in canonical (c, p) order (free layout fixup outside the kernel)
    feat_flat = jnp.transpose(featp.reshape(n, P, C_BB), (0, 2, 1)).reshape(n, -1)

    feature_maps = [
        conv.reshape(n, -1),                                   # _add_feature(outs)
        tp.reshape(n, -1),                                     # _add_feature(after TP)
        feat_flat,                                             # _add_feature(HPP feat)
        e1f,                                                   # embed_1.view(n, -1)
        e2f,                                                   # embed_2.view(n, -1)
    ]

    retval = {
        "training_feat": {
            "triplet": {"embeddings": embed_1, "labels": labs},
            "softmax": {"logits": logits, "labels": labs},
        },
        "between_feat": feature_maps,
        "visual_summary": {"image/sils": sils.reshape(n * s, 1, h, w)},
        "inference_feat": {"embeddings": embed_1},
    }
    return retval


# ----------------------------- pure-JAX reference ---------------------------
def reference_forward(sils, params):
    n, s, h, w = sils.shape
    frames = sils.reshape(n * s, 1, h, w)
    y = jax.lax.conv_general_dilated(
        frames, params["conv_w"], (1, 1), ((1, 1), (1, 1)),
        dimension_numbers=("NCHW", "OIHW", "NCHW"))
    y = jnp.where(y > 0, y, LRELU_SLOPE * y)
    outs = jnp.transpose(y.reshape(n, s, C_BB, h, w), (0, 2, 1, 3, 4))    # (n, C, S, h, w)
    tp = jnp.max(outs, axis=2)                                            # (n, C, h, w)
    feats = []
    for b in BIN_NUM:
        z = tp.reshape(n, C_BB, b, -1)
        feats.append(jnp.mean(z, -1) + jnp.max(z, -1))
    feat = jnp.concatenate(feats, -1)                                     # (n, C, P)
    embed_1 = jnp.einsum("pnc,pco->nop",
                         jnp.transpose(feat, (2, 0, 1)), params["fc_bin_fcs"])
    gamma = params["bn_gamma"].reshape(C_FC, P)
    beta = params["bn_beta"].reshape(C_FC, P)
    rmean = params["bn_rmean"].reshape(C_FC, P)
    rvar = params["bn_rvar"].reshape(C_FC, P)
    xb = (embed_1 - rmean) / jnp.sqrt(rvar + BN_EPS) * gamma + beta
    fp = jnp.transpose(xb, (2, 0, 1))                                     # (P, n, C_FC)
    fp = fp / jnp.maximum(jnp.linalg.norm(fp, axis=-1, keepdims=True), NORM_EPS)
    wn = params["fc_bin_bn"] / jnp.maximum(
        jnp.linalg.norm(params["fc_bin_bn"], axis=1, keepdims=True), NORM_EPS)
    logits = jnp.einsum("pnc,pck->nkp", fp, wn)
    embed_2 = jnp.transpose(fp, (1, 2, 0))
    return dict(outs=outs, tp=tp, feat=feat,
                embed_1=embed_1, embed_2=embed_2, logits=logits)


# ----------------------------------- main -----------------------------------
if __name__ == "__main__":
    key = jax.random.PRNGKey(0)
    kp, kx = jax.random.split(key)
    params = init_params(kp)
    prep = prepare_params(params)

    sils = jax.random.uniform(kx, (N, S, H, W), jnp.float32)
    labs = jnp.arange(N, dtype=jnp.int32)

    fwd = jax.jit(baseline_forward)
    out = fwd(sils, labs, prep)
    out = jax.block_until_ready(out)

    ref = reference_forward(sils, params)
    e1 = out["training_feat"]["triplet"]["embeddings"]
    lg = out["training_feat"]["softmax"]["logits"]
    e2 = out["between_feat"][4].reshape(N, C_FC, P)

    assert e1.shape == (N, C_FC, P) and lg.shape == (N, NUM_CLASS, P)
    assert out["visual_summary"]["image/sils"].shape == (N * S, 1, H, W)
    assert jnp.allclose(out["between_feat"][0], ref["outs"].reshape(N, -1), atol=1e-4, rtol=1e-3)
    assert jnp.allclose(out["between_feat"][1], ref["tp"].reshape(N, -1), atol=1e-4, rtol=1e-3)
    assert jnp.allclose(out["between_feat"][2], ref["feat"].reshape(N, -1), atol=1e-4, rtol=1e-3)
    assert jnp.allclose(e1, ref["embed_1"], atol=1e-4, rtol=1e-3)
    assert jnp.allclose(e2, ref["embed_2"], atol=1e-4, rtol=1e-3)
    assert jnp.allclose(lg, ref["logits"], atol=1e-4, rtol=1e-3)

    print("KERNEL_OK")
</pallas_src>

<mosaic_0001>
module attributes {stable_mosaic.version = 11 : i64} {
  func.func @fused_baseline_kernel(%arg0: memref<2x4x256xf32, #tpu.memory_space<vmem>>, %arg1: memref<1x8x3x3xf32, #tpu.memory_space<vmem>>, %arg2: memref<1x256xf32, #tpu.memory_space<vmem>>, %arg3: memref<1x256xf32, #tpu.memory_space<vmem>>, %arg4: memref<56x112xf32, #tpu.memory_space<vmem>>, %arg5: memref<1x112xf32, #tpu.memory_space<vmem>>, %arg6: memref<1x112xf32, #tpu.memory_space<vmem>>, %arg7: memref<112x7xf32, #tpu.memory_space<vmem>>, %arg8: memref<7x112xf32, #tpu.memory_space<vmem>>, %arg9: memref<112x70xf32, #tpu.memory_space<vmem>>, %arg10: memref<2x8x4x256xf32, #tpu.memory_space<vmem>>, %arg11: memref<2x8x256xf32, #tpu.memory_space<vmem>>, %arg12: memref<2x56xf32, #tpu.memory_space<vmem>>, %arg13: memref<2x112xf32, #tpu.memory_space<vmem>>, %arg14: memref<2x112xf32, #tpu.memory_space<vmem>>, %arg15: memref<2x70xf32, #tpu.memory_space<vmem>>, %arg16: memref<2x4x320xf32, #tpu.memory_space<vmem>>) attributes {dimension_semantics = [], scalar_prefetch = 0 : i64, scratch_operands = 1 : i64, tpu.core_type = #tpu.core_type<tc>} {
    %c0 = arith.constant 0 : index
    %c0_0 = arith.constant 0 : index
    %c0_1 = arith.constant 0 : index
    %0 = vector.load %arg0[%c0, %c0_0, %c0_1] : memref<2x4x256xf32, #tpu.memory_space<vmem>>, vector<2x4x256xf32>
    %cst = arith.constant 0.000000e+00 : f32
    %1 = vector.broadcast %cst : f32 to vector<2x4x320xf32>
    %c0_2 = arith.constant 0 : index
    %c0_3 = arith.constant 0 : index
    %c0_4 = arith.constant 0 : index
    %2 = vector.load %arg16[%c0_2, %c0_3, %c0_4] : memref<2x4x320xf32, #tpu.memory_space<vmem>>, vector<2x4x320xf32>
    tpu.vector_store %arg16[%c0_2, %c0_3, %c0_4], %1 {strides = array<i32>} : memref<2x4x320xf32, #tpu.memory_space<vmem>>, vector<2x4x320xf32>,
    %c0_5 = arith.constant 0 : index
    %c0_6 = arith.constant 0 : index
    %c32 = arith.constant 32 : index
    %3 = vector.load %arg16[%c0_5, %c0_6, %c32] : memref<2x4x320xf32, #tpu.memory_space<vmem>>, vector<2x4x256xf32>
    tpu.vector_store %arg16[%c0_5, %c0_6, %c32], %0 {strides = array<i32>} : memref<2x4x320xf32, #tpu.memory_space<vmem>>, vector<2x4x256xf32>,
    %c0_7 = arith.constant 0 : index
    %c0_8 = arith.constant 0 : index
    %c0_9 = arith.constant 0 : index
    %c0_10 = arith.constant 0 : index
    %4 = vector.load %arg1[%c0_7, %c0_8, %c0_9, %c0_10] : memref<1x8x3x3xf32, #tpu.memory_space<vmem>>, vector<1x8x3x3xf32>
    %c0_11 = arith.constant 0 : index
    %c0_12 = arith.constant 0 : index
    %5 = vector.load %arg2[%c0_11, %c0_12] : memref<1x256xf32, #tpu.memory_space<vmem>>, vector<1x256xf32>
    %c0_13 = arith.constant 0 : index
    %c0_14 = arith.constant 0 : index
    %6 = vector.load %arg3[%c0_13, %c0_14] : memref<1x256xf32, #tpu.memory_space<vmem>>, vector<1x256xf32>
    %cst_15 = arith.constant 0.000000e+00 : f32
    %7 = vector.broadcast %cst_15 : f32 to vector<2x8x4x256xf32>
    %c0_16 = arith.constant 0 : index
    %c0_17 = arith.constant 0 : index
    %c15 = arith.constant 15 : index
    %8 = vector.load %arg16[%c0_16, %c0_17, %c15] : memref<2x4x320xf32, #tpu.memory_space<vmem>>, vector<2x4x256xf32>
    %9 = vector.shape_cast %5 : vector<1x256xf32> to vector<1x1x256xf32>
    %10 = vector.broadcast %9 : vector<1x1x256xf32> to vector<2x4x256xf32>
    %11 = arith.mulf %8, %10 : vector<2x4x256xf32>
    %12 = vector.extract_strided_slice %4 {offsets = [0, 0, 0, 0], sizes = [1, 8, 1, 1], strides = [1, 1, 1, 1]} : vector<1x8x3x3xf32> to vector<1x8x1x1xf32>
    %13 = vector.shape_cast %11 : vector<2x4x256xf32> to vector<2x1x4x256xf32>
    %14 = vector.broadcast %12 : vector<1x8x1x1xf32> to vector<2x8x4x256xf32>
    %15 = vector.broadcast %13 : vector<2x1x4x256xf32> to vector<2x8x4x256xf32>
    %16 = arith.mulf %14, %15 : vector<2x8x4x256xf32>
    %17 = arith.addf %7, %16 : vector<2x8x4x256xf32>
    %c0_18 = arith.constant 0 : index
    %c0_19 = arith.constant 0 : index
    %c16 = arith.constant 16 : index
    %18 = vector.load %arg16[%c0_18, %c0_19, %c16] : memref<2x4x320xf32, #tpu.memory_space<vmem>>, vector<2x4x256xf32>
    %19 = vector.extract_strided_slice %4 {offsets = [0, 0, 0, 1], sizes = [1, 8, 1, 1], strides = [1, 1, 1, 1]} : vector<1x8x3x3xf32> to vector<1x8x1x1xf32>
    %20 = vector.shape_cast %18 : vector<2x4x256xf32> to vector<2x1x4x256xf32>
    %21 = vector.broadcast %19 : vector<1x8x1x1xf32> to vector<2x8x4x256xf32>
    %22 = vector.broadcast %20 : vector<2x1x4x256xf32> to vector<2x8x4x256xf32>
    %23 = arith.mulf %21, %22 : vector<2x8x4x256xf32>
    %24 = arith.addf %17, %23 : vector<2x8x4x256xf32>
    %c0_20 = arith.constant 0 : index
    %c0_21 = arith.constant 0 : index
    %c17 = arith.constant 17 : index
    %25 = vector.load %arg16[%c0_20, %c0_21, %c17] : memref<2x4x320xf32, #tpu.memory_space<vmem>>, vector<2x4x256xf32>
    %26 = vector.shape_cast %6 : vector<1x256xf32> to vector<1x1x256xf32>
    %27 = vector.broadcast %26 : vector<1x1x256xf32> to vector<2x4x256xf32>
    %28 = arith.mulf %25, %27 : vector<2x4x256xf32>
    %29 = vector.extract_strided_slice %4 {offsets = [0, 0, 0, 2], sizes = [1, 8, 1, 1], strides = [1, 1, 1, 1]} : vector<1x8x3x3xf32> to vector<1x8x1x1xf32>
    %30 = vector.shape_cast %28 : vector<2x4x256xf32> to vector<2x1x4x256xf32>
    %31 = vector.broadcast %29 : vector<1x8x1x1xf32> to vector<2x8x4x256xf32>
    %32 = vector.broadcast %30 : vector<2x1x4x256xf32> to vector<2x8x4x256xf32>
    %33 = arith.mulf %31, %32 : vector<2x8x4x256xf32>
    %34 = arith.addf %24, %33 : vector<2x8x4x256xf32>
    %c0_22 = arith.constant 0 : index
    %c0_23 = arith.constant 0 : index
    %c31 = arith.constant 31 : index
    %35 = vector.load %arg16[%c0_22, %c0_23, %c31] : memref<2x4x320xf32, #tpu.memory_space<vmem>>, vector<2x4x256xf32>
    %36 = vector.shape_cast %5 : vector<1x256xf32> to vector<1x1x256xf32>
    %37 = vector.broadcast %36 : vector<1x1x256xf32> to vector<2x4x256xf32>
    %38 = arith.mulf %35, %37 : vector<2x4x256xf32>
    %39 = vector.extract_strided_slice %4 {offsets = [0, 0, 1, 0], sizes = [1, 8, 1, 1], strides = [1, 1, 1, 1]} : vector<1x8x3x3xf32> to vector<1x8x1x1xf32>
    %40 = vector.shape_cast %38 : vector<2x4x256xf32> to vector<2x1x4x256xf32>
    %41 = vector.broadcast %39 : vector<1x8x1x1xf32> to vector<2x8x4x256xf32>
    %42 = vector.broadcast %40 : vector<2x1x4x256xf32> to vector<2x8x4x256xf32>
    %43 = arith.mulf %41, %42 : vector<2x8x4x256xf32>
    %44 = arith.addf %34, %43 : vector<2x8x4x256xf32>
    %c0_24 = arith.constant 0 : index
    %c0_25 = arith.constant 0 : index
    %c32_26 = arith.constant 32 : index
    %45 = vector.load %arg16[%c0_24, %c0_25, %c32_26] : memref<2x4x320xf32, #tpu.memory_space<vmem>>, vector<2x4x256xf32>
    %46 = vector.extract_strided_slice %4 {offsets = [0, 0, 1, 1], sizes = [1, 8, 1, 1], strides = [1, 1, 1, 1]} : vector<1x8x3x3xf32> to vector<1x8x1x1xf32>
    %47 = vector.shape_cast %45 : vector<2x4x256xf32> to vector<2x1x4x256xf32>
    %48 = vector.broadcast %46 : vector<1x8x1x1xf32> to vector<2x8x4x256xf32>
    %49 = vector.broadcast %47 : vector<2x1x4x256xf32> to vector<2x8x4x256xf32>
    %50 = arith.mulf %48, %49 : vector<2x8x4x256xf32>
    %51 = arith.addf %44, %50 : vector<2x8x4x256xf32>
    %c0_27 = arith.constant 0 : index
    %c0_28 = arith.constant 0 : index
    %c33 = arith.constant 33 : index
    %52 = vector.load %arg16[%c0_27, %c0_28, %c33] : memref<2x4x320xf32, #tpu.memory_space<vmem>>, vector<2x4x256xf32>
    %53 = vector.shape_cast %6 : vector<1x256xf32> to vector<1x1x256xf32>
    %54 = vector.broadcast %53 : vector<1x1x256xf32> to vector<2x4x256xf32>
    %55 = arith.mulf %52, %54 : vector<2x4x256xf32>
    %56 = vector.extract_strided_slice %4 {offsets = [0, 0, 1, 2], sizes = [1, 8, 1, 1], strides = [1, 1, 1, 1]} : vector<1x8x3x3xf32> to vector<1x8x1x1xf32>
    %57 = vector.shape_cast %55 : vector<2x4x256xf32> to vector<2x1x4x256xf32>
    %58 = vector.broadcast %56 : vector<1x8x1x1xf32> to vector<2x8x4x256xf32>
    %59 = vector.broadcast %57 : vector<2x1x4x256xf32> to vector<2x8x4x256xf32>
    %60 = arith.mulf %58, %59 : vector<2x8x4x256xf32>
    %61 = arith.addf %51, %60 : vector<2x8x4x256xf32>
    %c0_29 = arith.constant 0 : index
    %c0_30 = arith.constant 0 : index
    %c47 = arith.constant 47 : index
    %62 = vector.load %arg16[%c0_29, %c0_30, %c47] : memref<2x4x320xf32, #tpu.memory_space<vmem>>, vector<2x4x256xf32>
    %63 = vector.shape_cast %5 : vector<1x256xf32> to vector<1x1x256xf32>
    %64 = vector.broadcast %63 : vector<1x1x256xf32> to vector<2x4x256xf32>
    %65 = arith.mulf %62, %64 : vector<2x4x256xf32>
    %66 = vector.extract_strided_slice %4 {offsets = [0, 0, 2, 0], sizes = [1, 8, 1, 1], strides = [1, 1, 1, 1]} : vector<1x8x3x3xf32> to vector<1x8x1x1xf32>
    %67 = vector.shape_cast %65 : vector<2x4x256xf32> to vector<2x1x4x256xf32>
    %68 = vector.broadcast %66 : vector<1x8x1x1xf32> to vector<2x8x4x256xf32>
    %69 = vector.broadcast %67 : vector<2x1x4x256xf32> to vector<2x8x4x256xf32>
    %70 = arith.mulf %68, %69 : vector<2x8x4x256xf32>
    %71 = arith.addf %61, %70 : vector<2x8x4x256xf32>
    %c0_31 = arith.constant 0 : index
    %c0_32 = arith.constant 0 : index
    %c48 = arith.constant 48 : index
    %72 = vector.load %arg16[%c0_31, %c0_32, %c48] : memref<2x4x320xf32, #tpu.memory_space<vmem>>, vector<2x4x256xf32>
    %73 = vector.extract_strided_slice %4 {offsets = [0, 0, 2, 1], sizes = [1, 8, 1, 1], strides = [1, 1, 1, 1]} : vector<1x8x3x3xf32> to vector<1x8x1x1xf32>
    %74 = vector.shape_cast %72 : vector<2x4x256xf32> to vector<2x1x4x256xf32>
    %75 = vector.broadcast %73 : vector<1x8x1x1xf32> to vector<2x8x4x256xf32>
    %76 = vector.broadcast %74 : vector<2x1x4x256xf32> to vector<2x8x4x256xf32>
    %77 = arith.mulf %75, %76 : vector<2x8x4x256xf32>
    %78 = arith.addf %71, %77 : vector<2x8x4x256xf32>
    %c0_33 = arith.constant 0 : index
    %c0_34 = arith.constant 0 : index
    %c49 = arith.constant 49 : index
    %79 = vector.load %arg16[%c0_33, %c0_34, %c49] : memref<2x4x320xf32, #tpu.memory_space<vmem>>, vector<2x4x256xf32>
    %80 = vector.shape_cast %6 : vector<1x256xf32> to vector<1x1x256xf32>
    %81 = vector.broadcast %80 : vector<1x1x256xf32> to vector<2x4x256xf32>
    %82 = arith.mulf %79, %81 : vector<2x4x256xf32>
    %83 = vector.extract_strided_slice %4 {offsets = [0, 0, 2, 2], sizes = [1, 8, 1, 1], strides = [1, 1, 1, 1]} : vector<1x8x3x3xf32> to vector<1x8x1x1xf32>
    %84 = vector.shape_cast %82 : vector<2x4x256xf32> to vector<2x1x4x256xf32>
    %85 = vector.broadcast %83 : vector<1x8x1x1xf32> to vector<2x8x4x256xf32>
    %86 = vector.broadcast %84 : vector<2x1x4x256xf32> to vector<2x8x4x256xf32>
    %87 = arith.mulf %85, %86 : vector<2x8x4x256xf32>
    %88 = arith.addf %78, %87 : vector<2x8x4x256xf32>
    %cst_35 = arith.constant 0.000000e+00 : f32
    %89 = vector.broadcast %cst_35 : f32 to vector<2x8x4x256xf32>
    %90 = arith.cmpf ogt, %88, %89 : vector<2x8x4x256xf32>
    %cst_36 = arith.constant 0.00999999977 : f32
    %91 = vector.broadcast %cst_36 : f32 to vector<2x8x4x256xf32>
    %92 = arith.mulf %91, %88 : vector<2x8x4x256xf32>
    %93 = arith.select %90, %88, %92 : vector<2x8x4x256xi1>, vector<2x8x4x256xf32>
    %c0_37 = arith.constant 0 : index
    %c0_38 = arith.constant 0 : index
    %c0_39 = arith.constant 0 : index
    %c0_40 = arith.constant 0 : index
    %94 = vector.load %arg10[%c0_37, %c0_38, %c0_39, %c0_40] : memref<2x8x4x256xf32, #tpu.memory_space<vmem>>, vector<2x8x4x256xf32>
    tpu.vector_store %arg10[%c0_37, %c0_38, %c0_39, %c0_40], %93 {strides = array<i32>} : memref<2x8x4x256xf32, #tpu.memory_space<vmem>>, vector<2x8x4x256xf32>,
    %cst_41 = arith.constant dense<0xFF800000> : vector<2x8x256xf32>
    %95 = vector.multi_reduction <maximumf>, %93, %cst_41 [2] : vector<2x8x4x256xf32> to vector<2x8x256xf32>
    %c0_42 = arith.constant 0 : index
    %c0_43 = arith.constant 0 : index
    %c0_44 = arith.constant 0 : index
    %96 = vector.load %arg11[%c0_42, %c0_43, %c0_44] : memref<2x8x256xf32, #tpu.memory_space<vmem>>, vector<2x8x256xf32>
    tpu.vector_store %arg11[%c0_42, %c0_43, %c0_44], %95 {strides = array<i32>} : memref<2x8x256xf32, #tpu.memory_space<vmem>>, vector<2x8x256xf32>,
    %97 = vector.extract_strided_slice %95 {offsets = [0, 0, 0], sizes = [2, 8, 64], strides = [1, 1, 1]} : vector<2x8x256xf32> to vector<2x8x64xf32>
    %cst_45 = arith.constant dense<0.000000e+00> : vector<2x8xf32>
    %98 = vector.multi_reduction <add>, %97, %cst_45 [2] : vector<2x8x64xf32> to vector<2x8xf32>
    %cst_46 = arith.constant 6.400000e+01 : f32
    %99 = vector.broadcast %cst_46 : f32 to vector<2x8xf32>
    %100 = arith.divf %98, %99 : vector<2x8xf32>
    %cst_47 = arith.constant dense<0xFF800000> : vector<2x8xf32>
    %101 = vector.multi_reduction <maximumf>, %97, %cst_47 [2] : vector<2x8x64xf32> to vector<2x8xf32>
    %102 = arith.addf %100, %101 : vector<2x8xf32>
    %c0_48 = arith.constant 0 : index
    %c0_49 = arith.constant 0 : index
    %103 = vector.load %arg12[%c0_48, %c0_49] : memref<2x56xf32, #tpu.memory_space<vmem>>, vector<2x8xf32>
    tpu.vector_store %arg12[%c0_48, %c0_49], %102 {strides = array<i32>} : memref<2x56xf32, #tpu.memory_space<vmem>>, vector<2x8xf32>,
    %104 = vector.extract_strided_slice %95 {offsets = [0, 0, 64], sizes = [2, 8, 64], strides = [1, 1, 1]} : vector<2x8x256xf32> to vector<2x8x64xf32>
    %cst_50 = arith.constant dense<0.000000e+00> : vector<2x8xf32>
    %105 = vector.multi_reduction <add>, %104, %cst_50 [2] : vector<2x8x64xf32> to vector<2x8xf32>
    %cst_51 = arith.constant 6.400000e+01 : f32
    %106 = vector.broadcast %cst_51 : f32 to vector<2x8xf32>
    %107 = arith.divf %105, %106 : vector<2x8xf32>
    %cst_52 = arith.constant dense<0xFF800000> : vector<2x8xf32>
    %108 = vector.multi_reduction <maximumf>, %104, %cst_52 [2] : vector<2x8x64xf32> to vector<2x8xf32>
    %109 = arith.addf %107, %108 : vector<2x8xf32>
    %c0_53 = arith.constant 0 : index
    %c8 = arith.constant 8 : index
    %110 = vector.load %arg12[%c0_53, %c8] : memref<2x56xf32, #tpu.memory_space<vmem>>, vector<2x8xf32>
    tpu.vector_store %arg12[%c0_53, %c8], %109 {strides = array<i32>} : memref<2x56xf32, #tpu.memory_space<vmem>>, vector<2x8xf32>,
    %111 = vector.extract_strided_slice %95 {offsets = [0, 0, 128], sizes = [2, 8, 64], strides = [1, 1, 1]} : vector<2x8x256xf32> to vector<2x8x64xf32>
    %cst_54 = arith.constant dense<0.000000e+00> : vector<2x8xf32>
    %112 = vector.multi_reduction <add>, %111, %cst_54 [2] : vector<2x8x64xf32> to vector<2x8xf32>
    %cst_55 = arith.constant 6.400000e+01 : f32
    %113 = vector.broadcast %cst_55 : f32 to vector<2x8xf32>
    %114 = arith.divf %112, %113 : vector<2x8xf32>
    %cst_56 = arith.constant dense<0xFF800000> : vector<2x8xf32>
    %115 = vector.multi_reduction <maximumf>, %111, %cst_56 [2] : vector<2x8x64xf32> to vector<2x8xf32>
    %116 = arith.addf %114, %115 : vector<2x8xf32>
    %c0_57 = arith.constant 0 : index
    %c16_58 = arith.constant 16 : index
    %117 = vector.load %arg12[%c0_57, %c16_58] : memref<2x56xf32, #tpu.memory_space<vmem>>, vector<2x8xf32>
    tpu.vector_store %arg12[%c0_57, %c16_58], %116 {strides = array<i32>} : memref<2x56xf32, #tpu.memory_space<vmem>>, vector<2x8xf32>,
    %118 = vector.extract_strided_slice %95 {offsets = [0, 0, 192], sizes = [2, 8, 64], strides = [1, 1, 1]} : vector<2x8x256xf32> to vector<2x8x64xf32>
    %cst_59 = arith.constant dense<0.000000e+00> : vector<2x8xf32>
    %119 = vector.multi_reduction <add>, %118, %cst_59 [2] : vector<2x8x64xf32> to vector<2x8xf32>
    %cst_60 = arith.constant 6.400000e+01 : f32
    %120 = vector.broadcast %cst_60 : f32 to vector<2x8xf32>
    %121 = arith.divf %119, %120 : vector<2x8xf32>
    %cst_61 = arith.constant dense<0xFF800000> : vector<2x8xf32>
    %122 = vector.multi_reduction <maximumf>, %118, %cst_61 [2] : vector<2x8x64xf32> to vector<2x8xf32>
    %123 = arith.addf %121, %122 : vector<2x8xf32>
    %c0_62 = arith.constant 0 : index
    %c24 = arith.constant 24 : index
    %124 = vector.load %arg12[%c0_62, %c24] : memref<2x56xf32, #tpu.memory_space<vmem>>, vector<2x8xf32>
    tpu.vector_store %arg12[%c0_62, %c24], %123 {strides = array<i32>} : memref<2x56xf32, #tpu.memory_space<vmem>>, vector<2x8xf32>,
    %125 = vector.extract_strided_slice %95 {offsets = [0, 0, 0], sizes = [2, 8, 128], strides = [1, 1, 1]} : vector<2x8x256xf32> to vector<2x8x128xf32>
    %cst_63 = arith.constant dense<0.000000e+00> : vector<2x8xf32>
    %126 = vector.multi_reduction <add>, %125, %cst_63 [2] : vector<2x8x128xf32> to vector<2x8xf32>
    %cst_64 = arith.constant 1.280000e+02 : f32
    %127 = vector.broadcast %cst_64 : f32 to vector<2x8xf32>
    %128 = arith.divf %126, %127 : vector<2x8xf32>
    %cst_65 = arith.constant dense<0xFF800000> : vector<2x8xf32>
    %129 = vector.multi_reduction <maximumf>, %125, %cst_65 [2] : vector<2x8x128xf32> to vector<2x8xf32>
    %130 = arith.addf %128, %129 : vector<2x8xf32>
    %c0_66 = arith.constant 0 : index
    %c32_67 = arith.constant 32 : index
    %131 = vector.load %arg12[%c0_66, %c32_67] : memref<2x56xf32, #tpu.memory_space<vmem>>, vector<2x8xf32>
    tpu.vector_store %arg12[%c0_66, %c32_67], %130 {strides = array<i32>} : memref<2x56xf32, #tpu.memory_space<vmem>>, vector<2x8xf32>,
    %132 = vector.extract_strided_slice %95 {offsets = [0, 0, 128], sizes = [2, 8, 128], strides = [1, 1, 1]} : vector<2x8x256xf32> to vector<2x8x128xf32>
    %cst_68 = arith.constant dense<0.000000e+00> : vector<2x8xf32>
    %133 = vector.multi_reduction <add>, %132, %cst_68 [2] : vector<2x8x128xf32> to vector<2x8xf32>
    %cst_69 = arith.constant 1.280000e+02 : f32
    %134 = vector.broadcast %cst_69 : f32 to vector<2x8xf32>
    %135 = arith.divf %133, %134 : vector<2x8xf32>
    %cst_70 = arith.constant dense<0xFF800000> : vector<2x8xf32>
    %136 = vector.multi_reduction <maximumf>, %132, %cst_70 [2] : vector<2x8x128xf32> to vector<2x8xf32>
    %137 = arith.addf %135, %136 : vector<2x8xf32>
    %c0_71 = arith.constant 0 : index
    %c40 = arith.constant 40 : index
    %138 = vector.load %arg12[%c0_71, %c40] : memref<2x56xf32, #tpu.memory_space<vmem>>, vector<2x8xf32>
    tpu.vector_store %arg12[%c0_71, %c40], %137 {strides = array<i32>} : memref<2x56xf32, #tpu.memory_space<vmem>>, vector<2x8xf32>,
    %cst_72 = arith.constant dense<0.000000e+00> : vector<2x8xf32>
    %139 = vector.multi_reduction <add>, %95, %cst_72 [2] : vector<2x8x256xf32> to vector<2x8xf32>
    %cst_73 = arith.constant 2.560000e+02 : f32
    %140 = vector.broadcast %cst_73 : f32 to vector<2x8xf32>
    %141 = arith.divf %139, %140 : vector<2x8xf32>
    %cst_74 = arith.constant dense<0xFF800000> : vector<2x8xf32>
    %142 = vector.multi_reduction <maximumf>, %95, %cst_74 [2] : vector<2x8x256xf32> to vector<2x8xf32>
    %143 = arith.addf %141, %142 : vector<2x8xf32>
    %c0_75 = arith.constant 0 : index
    %c48_76 = arith.constant 48 : index
    %144 = vector.load %arg12[%c0_75, %c48_76] : memref<2x56xf32, #tpu.memory_space<vmem>>, vector<2x8xf32>
    tpu.vector_store %arg12[%c0_75, %c48_76], %143 {strides = array<i32>} : memref<2x56xf32, #tpu.memory_space<vmem>>, vector<2x8xf32>,
    %c0_77 = arith.constant 0 : index
    %c0_78 = arith.constant 0 : index
    %145 = vector.load %arg12[%c0_77, %c0_78] : memref<2x56xf32, #tpu.memory_space<vmem>>, vector<2x56xf32>
    %c0_79 = arith.constant 0 : index
    %c0_80 = arith.constant 0 : index
    %146 = vector.load %arg4[%c0_79, %c0_80] : memref<56x112xf32, #tpu.memory_space<vmem>>, vector<56x112xf32>
    %cst_81 = arith.constant dense<0.000000e+00> : vector<2x112xf32>
    %147 = tpu.matmul %145, %146, %cst_81 {dimension_numbers = #tpu.dot_dimension_numbers<[1], [0], [0], [1], [0, 0, 1, 1], [], []>} : vector<2x56xf32>, vector<56x112xf32>, vector<2x112xf32> -> vector<2x112xf32>
    %c0_82 = arith.constant 0 : index
    %c0_83 = arith.constant 0 : index
    %148 = vector.load %arg13[%c0_82, %c0_83] : memref<2x112xf32, #tpu.memory_space<vmem>>, vector<2x112xf32>
    tpu.vector_store %arg13[%c0_82, %c0_83], %147 {strides = array<i32>} : memref<2x112xf32, #tpu.memory_space<vmem>>, vector<2x112xf32>,
    %c0_84 = arith.constant 0 : index
    %c0_85 = arith.constant 0 : index
    %149 = vector.load %arg5[%c0_84, %c0_85] : memref<1x112xf32, #tpu.memory_space<vmem>>, vector<1x112xf32>
    %150 = vector.broadcast %149 : vector<1x112xf32> to vector<2x112xf32>
    %151 = arith.mulf %147, %150 : vector<2x112xf32>
    %c0_86 = arith.constant 0 : index
    %c0_87 = arith.constant 0 : index
    %152 = vector.load %arg6[%c0_86, %c0_87] : memref<1x112xf32, #tpu.memory_space<vmem>>, vector<1x112xf32>
    %153 = vector.broadcast %152 : vector<1x112xf32> to vector<2x112xf32>
    %154 = arith.addf %151, %153 : vector<2x112xf32>
    %155 = arith.mulf %154, %154 : vector<2x112xf32>
    %c0_88 = arith.constant 0 : index
    %c0_89 = arith.constant 0 : index
    %156 = vector.load %arg7[%c0_88, %c0_89] : memref<112x7xf32, #tpu.memory_space<vmem>>, vector<112x7xf32>
    %cst_90 = arith.constant dense<0.000000e+00> : vector<2x7xf32>
    %157 = tpu.matmul %155, %156, %cst_90 {dimension_numbers = #tpu.dot_dimension_numbers<[1], [0], [0], [1], [0, 0, 1, 1], [], []>} : vector<2x112xf32>, vector<112x7xf32>, vector<2x7xf32> -> vector<2x7xf32>
    %158 = math.sqrt %157 : vector<2x7xf32>
    %cst_91 = arith.constant 9.99999996E-13 : f32
    %159 = vector.broadcast %cst_91 : f32 to vector<2x7xf32>
    %160 = arith.maximumf %158, %159 : vector<2x7xf32>
    %cst_92 = arith.constant 1.000000e+00 : f32
    %161 = vector.broadcast %cst_92 : f32 to vector<2x7xf32>
    %162 = arith.divf %161, %160 : vector<2x7xf32>
    %c0_93 = arith.constant 0 : index
    %c0_94 = arith.constant 0 : index
    %163 = vector.load %arg8[%c0_93, %c0_94] : memref<7x112xf32, #tpu.memory_space<vmem>>, vector<7x112xf32>
    %cst_95 = arith.constant dense<0.000000e+00> : vector<2x112xf32>
    %164 = tpu.matmul %162, %163, %cst_95 {dimension_numbers = #tpu.dot_dimension_numbers<[1], [0], [0], [1], [0, 0, 1, 1], [], []>} : vector<2x7xf32>, vector<7x112xf32>, vector<2x112xf32> -> vector<2x112xf32>
    %165 = arith.mulf %154, %164 : vector<2x112xf32>
    %c0_96 = arith.constant 0 : index
    %c0_97 = arith.constant 0 : index
    %166 = vector.load %arg14[%c0_96, %c0_97] : memref<2x112xf32, #tpu.memory_space<vmem>>, vector<2x112xf32>
    tpu.vector_store %arg14[%c0_96, %c0_97], %165 {strides = array<i32>} : memref<2x112xf32, #tpu.memory_space<vmem>>, vector<2x112xf32>,
    %c0_98 = arith.constant 0 : index
    %c0_99 = arith.constant 0 : index
    %167 = vector.load %arg9[%c0_98, %c0_99] : memref<112x70xf32, #tpu.memory_space<vmem>>, vector<112x70xf32>
    %cst_100 = arith.constant dense<0.000000e+00> : vector<2x70xf32>
    %168 = tpu.matmul %165, %167, %cst_100 {dimension_numbers = #tpu.dot_dimension_numbers<[1], [0], [0], [1], [0, 0, 1, 1], [], []>} : vector<2x112xf32>, vector<112x70xf32>, vector<2x70xf32> -> vector<2x70xf32>
    %c0_101 = arith.constant 0 : index
    %c0_102 = arith.constant 0 : index
    %169 = vector.load %arg15[%c0_101, %c0_102] : memref<2x70xf32, #tpu.memory_space<vmem>>, vector<2x70xf32>
    tpu.vector_store %arg15[%c0_101, %c0_102], %168 {strides = array<i32>} : memref<2x70xf32, #tpu.memory_space<vmem>>, vector<2x70xf32>,
    return
  }
}

</mosaic_0001>

<bundles_post_ra>
// kernel: baseline_forward.1
= control target key start
LH: loop header
LB: loop body
LE: loop exit
PB: predicated region body
PF: predicated region fallthrough
CT: control target
= control target key end

     0   :  { %s8617_s0 = inlined_call_operand.vmem [shape: f32[2,4,256], index: 0, kind: input, shape index: {}]   ;;  %s8618_s1 = inlined_call_operand.vmem [shape: f32[1,8,3,3], index: 1, kind: input, shape index: {}]   ;;  %s8619_s2 = inlined_call_operand.vmem [shape: f32[1,256], index: 2, kind: input, shape index: {}]   ;;  %s8620_s3 = inlined_call_operand.vmem [shape: f32[1,256], index: 3, kind: input, shape index: {}]   ;;  %s8621_s4 = inlined_call_operand.vmem [shape: f32[56,112], index: 4, kind: input, shape index: {}]   ;;  %s8622_s5 = inlined_call_operand.vmem [shape: f32[1,112], index: 5, kind: input, shape index: {}]   ;;  %s8623_s6 = inlined_call_operand.vmem [shape: f32[1,112], index: 6, kind: input, shape index: {}]   ;;  %s8624_s7 = inlined_call_operand.vmem [shape: f32[112,7], index: 7, kind: input, shape index: {}]   ;;  %s8625_s8 = inlined_call_operand.vmem [shape: f32[7,112], index: 8, kind: input, shape index: {}]   ;;  %s8626_s9 = inlined_call_operand.vmem [shape: f32[112,70], index: 9, kind: input, shape index: {}]   ;;  %s8627_s10 = inlined_call_operand.vmem [shape: f32[2,8,4,256], index: 10, kind: output, shape index: {0}]   ;;  %s8628_s11 = inlined_call_operand.vmem [shape: f32[2,8,256], index: 11, kind: output, shape index: {1}]   ;;  %s8629_s12 = inlined_call_operand.vmem [shape: f32[2,56], index: 12, kind: output, shape index: {2}]   ;;  %s8630_s13 = inlined_call_operand.vmem [shape: f32[2,112], index: 13, kind: output, shape index: {3}]   ;;  %s8631_s14 = inlined_call_operand.hbm [shape: f32[2,112], index: 14, kind: output, shape index: {4}]   ;;  %s8632_s15 = inlined_call_operand.vmem [shape: f32[2,70], index: 15, kind: output, shape index: {5}]  }
   0x1   :  { %8843 = sst [smem:[#allocation223_spill]] %s8621_s4 }
   0x2   :  { %8844 = sst [smem:[#allocation224_spill]] %s8622_s5 }
   0x3   :  { %8845 = sst [smem:[#allocation225_spill]] %s8623_s6 }
   0x4   :  { %8846 = sst [smem:[#allocation226_spill]] %s8624_s7 }
   0x5   :  { %8847 = sst [smem:[#allocation227_spill]] %s8625_s8 }
   0x6   :  { %8848 = sst [smem:[#allocation228_spill]] %s8626_s9 }
   0x7   :  { %8849 = sst [smem:[#allocation229_spill]] %s8627_s10 }
   0x8   :  { %8850 = sst [smem:[#allocation230_spill]] %s8628_s11 }
   0x9   :  { %8851 = sst [smem:[#allocation231_spill]] %s8629_s12 }
   0xa   :  { %8852 = sst [smem:[#allocation232_spill]] %s8630_s13 }
   0xb   :  { %8853 = sst [smem:[#allocation233_spill]] %s8631_s14 }
   0xc   :  { %8854 = sst [smem:[#allocation234_spill]] %s8632_s15 }
   0xd   :  { %v4557_v0 = vld [vmem:[%s8618_s1 + $0x8] sm:$0x7]  ;;  %v72_v1 = vld [vmem:[%s8618_s1] sm:$0x7]  ;;  %s8637_s22 = smov 127  }
   0xe   :  { %207 = vrot.lane.b32.xlu1 %v4557_v0, %s8637_s22  ;;  %203 = vrot.lane.b32.xlu0 %v72_v1, %s8637_s22  ;;  %v73_v2 = vld [vmem:[%s8618_s1 + $0x4] sm:$0x7]  ;;  %4258 = vpush %v72_v1  ;;  %v75_v3 = vld [vmem:[%s8618_s1 + $0xc] sm:$0x7] }
   0xf   :  { %4260 = vpush %v73_v2  ;;  %v76_v4 = vld [vmem:[%s8618_s1 + $0x10] sm:$0x7]  ;;  %v77_v5 = vld [vmem:[%s8618_s1 + $0x14] sm:$0x7]  ;;  %v78_v6 = vld [vmem:[%s8618_s1 + $0x18] sm:$0x7] }
  0x10   :  { %4262 = vpush %v4557_v0  ;;  %v79_v7 = vld [vmem:[%s8618_s1 + $0x1c] sm:$0x7] }
  0x11   :  { %4264 = vpush %v75_v3 }
  0x12   :  { %209 = vrot.lane.b32.xlu1 %v75_v3, %s8637_s22  ;;  %205 = vrot.lane.b32.xlu0 %v73_v2, %s8637_s22  ;;  %4266 = vpush %v76_v4 }
  0x13   :  { %4268 = vpush %v77_v5 }
  0x14   :  { %4270 = vpush %v78_v6 }
  0x15   :  { %21 = vsyncpa [#allocation4], 0  ;;  %4272 = vpush %v79_v7  ;;  %s8635_s20 = smov 126   ;;  %v4599_v8 = vrot.slane %v73_v2, 1  ;;  %v4601_v9 = vrot.slane %v72_v1, 1  ;;  %v4607_v10 = vrot.slane %v75_v3, 1  ;;  %v8646_v24 = vlaneseq }
  0x16   :  { %213 = vrot.lane.b32.xlu1 %v77_v5, %s8637_s22  ;;  %211 = vrot.lane.b32.xlu0 %v76_v4, %s8637_s22  ;;  %v4610_v11 = vrot.slane %v4557_v0, 1  ;;  %v4616_v12 = vrot.slane %v77_v5, 1  ;;  %v4618_v13 = vrot.slane %v76_v4, 1  ;;  %v4624_v14 = vrot.slane %v79_v7, 1  ;;  %v80_v28 = vld [vmem:[%s8619_s2] sm:$0x3] }
  0x17   :  { %v4626_v15 = vrot.slane %v78_v6, 1  ;;  %v4648_v16 = vrot.slane %v73_v2, 2  ;;  %v4650_v17 = vrot.slane %v72_v1, 2  ;;  %v4656_v18 = vrot.slane %v75_v3, 2  ;;  %v81_v30 = vld [vmem:[%s8620_s3] sm:$0x3] }
  0x18   :  { %v4659_v19 = vrot.slane %v4557_v0, 2  ;;  %v4665_v20 = vrot.slane %v77_v5, 2  ;;  %v4667_v21 = vrot.slane %v76_v4, 2  ;;  %v4673_v22 = vrot.slane %v79_v7, 2  ;;  %v43_v35 = vld [vmem:[%s8617_s0 + $0x8] sm:$0xff]  ;;  %v42_v36 = vld [vmem:[%s8617_s0] sm:$0xff] }
  0x19   :  { %v4675_v23 = vrot.slane %v78_v6, 2  ;;  %vm45_vm0 = vcmask 519168   ;;  %v8647_v25 = vmov 0.0   ;;  %v4691_v26 = vshrl.u32 %v8646_v24, 7  ;;  %s4457_s28 = smov 32   ;;  %s4458_s3 = smov 31  }
  0x1a   :  { %217 = vrot.lane.b32.xlu1 %v79_v7, %s8637_s22  ;;  %215 = vrot.lane.b32.xlu0 %v78_v6, %s8637_s22  ;;  %47 = vst [vmem:[#allocation2 + $0xc] sm:$0xff] %v8647_v25  ;;  %48 = vst.msk [vmem:[#allocation2 + $0x14] sm:$0xf] %vm45_vm0, %v8647_v25  ;;  %s4459_s29 = smov 17   ;;  %s4460_s30 = smov 47   ;;  %vm64_vm1 = vcmask 1043712  }
  0x1b   :  { %44 = vst [vmem:[#allocation2] sm:$0xff] %v8647_v25  ;;  %46 = vst.msk [vmem:[#allocation2 + $0x8] sm:$0xf] %vm45_vm0, %v8647_v25  ;;  %4171 = vmatprep.subr.mxu0 %v8647_v25  ;;  %v89_v27 = vsub.s32 0, %v4691_v26  ;;  %v93_v29 = vsub.s32 1, %v4691_v26  ;;  %s4461_s16 = smov 33  }
  0x1c   :  { %8855 = vst [vmem:[#allocation6_spill] sm:$0xff] %v4691_v26  ;;  %s4462_s17 = smov 15   ;;  %s8633_s18 = smov 49   ;;  %vm65_vm2 = vcmask 1047556   ;;  %vm57_vm3 = vcmask 261120   ;;  %vm68_vm4 = vcmask 257024  }
  0x1d   :  { %v90_v31 = vrot.slane %v80_v28, %v89_v27  ;;  %v94_v32 = vrot.slane %v80_v28, %v93_v29  ;;  %v505_v33 = vrot.slane %v81_v30, %v89_v27  ;;  %v509_v34 = vrot.slane %v81_v30, %v93_v29  ;;  %vm66_vm5 = vmor %vm65_vm2, %vm64_vm1 }
  0x1e   :  { %524 = vrot.lane.b32.xlu1 %v73_v2, %s8635_s20  ;;  %522 = vrot.lane.b32.xlu0 %v72_v1, %s8635_s20  ;;  %vm1727_vm6 = vcmask 384000   ;;  %vm514_vm7 = vcmask 138240   ;;  %vm822_vm8 = vcmask 252928   ;;  %vm1419_vm9 = vcmask 269312  }
  0x1f   :  { %v95_v37 = vcombine.low %v90_v31, %v94_v32  ;;  %v510_v38 = vcombine.low %v505_v33, %v509_v34  ;;  %vm99_vm10 = vcmask 121856   ;;  %vm2324_vm11 = vcmask 400384  }
  0x20   :  { %vm403_vm12 = vcmask 1043456   ;;  %vm405_vm13 = vcmask 1039360   ;;  %vm723_vm14 = vcmask 1031168   ;;  %vm1023_vm15 = vcmask 916480  }
  0x21   :  { %vm1320_vm0 = vcmask 908288   ;;  %vm1628_vm1 = vcmask 900096   ;;  %vm1928_vm2 = vcmask 785408  }
  0x22   :  { %528 = vrot.lane.b32.xlu1 %v75_v3, %s8635_s20  ;;  %526 = vrot.lane.b32.xlu0 %v4557_v0, %s8635_s20 }
  0x26   :  { %532 = vrot.lane.b32.xlu1 %v77_v5, %s8635_s20  ;;  %530 = vrot.lane.b32.xlu0 %v76_v4, %s8635_s20 }
  0x2a   :  { %536 = vrot.lane.b32.xlu1 %v79_v7, %s8635_s20  ;;  %534 = vrot.lane.b32.xlu0 %v78_v6, %s8635_s20 }
  0x2e   :  { %1121 = vrot.lane.b32.xlu1 %v4599_v8, %s8637_s22  ;;  %1119 = vrot.lane.b32.xlu0 %v4601_v9, %s8637_s22 }
  0x32   :  { %1125 = vrot.lane.b32.xlu1 %v4607_v10, %s8637_s22  ;;  %1123 = vrot.lane.b32.xlu0 %v4610_v11, %s8637_s22 }
  0x36   :  { %1129 = vrot.lane.b32.xlu1 %v4616_v12, %s8637_s22  ;;  %1127 = vrot.lane.b32.xlu0 %v4618_v13, %s8637_s22 }
  0x3a   :  { %1133 = vrot.lane.b32.xlu1 %v4624_v14, %s8637_s22  ;;  %1131 = vrot.lane.b32.xlu0 %v4626_v15, %s8637_s22 }
  0x3e   :  { %1429 = vrot.lane.b32.xlu1 %v4599_v8, %s8635_s20  ;;  %1427 = vrot.lane.b32.xlu0 %v4601_v9, %s8635_s20 }
  0x3f   :  { %s4728_s0 = spop %4258 }
  0x40   :  { %8856 = sst [smem:[#allocation7_spill]] %s4728_s0  ;;  %s4730_s19 = spop %4260 }
  0x41   :  { %8857 = sst [smem:[#allocation8_spill]] %s4730_s19  ;;  %s4732_s1 = spop %4262 }
  0x42   :  { %1433 = vrot.lane.b32.xlu1 %v4607_v10, %s8635_s20  ;;  %1431 = vrot.lane.b32.xlu0 %v4610_v11, %s8635_s20  ;;  %8858 = sst [smem:[#allocation9_spill]] %s4732_s1  ;;  %s4734_s21 = spop %4264 }
  0x43   :  { %8859 = sst [smem:[#allocation10_spill]] %s4734_s21  ;;  %s4736_s23 = spop %4266 }
  0x44   :  { %8860 = sst [smem:[#allocation11_spill]] %s4736_s23  ;;  %s4738_s24 = spop %4268 }
  0x45   :  { %8861 = sst [smem:[#allocation12_spill]] %s4738_s24  ;;  %s4740_s25 = spop %4270 }
  0x46   :  { %1437 = vrot.lane.b32.xlu1 %v4616_v12, %s8635_s20  ;;  %1435 = vrot.lane.b32.xlu0 %v4618_v13, %s8635_s20  ;;  %8862 = sst [smem:[#allocation13_spill]] %s4740_s25  ;;  %s4742_s26 = spop %4272 }
  0x47   :  { %8863 = sst [smem:[#allocation14_spill]] %s4742_s26 }
  0x4a   :  { %1441 = vrot.lane.b32.xlu1 %v4624_v14, %s8635_s20  ;;  %1439 = vrot.lane.b32.xlu0 %v4626_v15, %s8635_s20 }
  0x4e   :  { %2026 = vrot.lane.b32.xlu1 %v4648_v16, %s8637_s22  ;;  %2024 = vrot.lane.b32.xlu0 %v4650_v17, %s8637_s22 }
  0x52   :  { %2030 = vrot.lane.b32.xlu1 %v4656_v18, %s8637_s22  ;;  %2028 = vrot.lane.b32.xlu0 %v4659_v19, %s8637_s22 }
  0x56   :  { %2034 = vrot.lane.b32.xlu1 %v4665_v20, %s8637_s22  ;;  %2032 = vrot.lane.b32.xlu0 %v4667_v21, %s8637_s22 }
  0x5a   :  { %2038 = vrot.lane.b32.xlu1 %v4673_v22, %s8637_s22  ;;  %2036 = vrot.lane.b32.xlu0 %v4675_v23, %s8637_s22 }
  0x5e   :  { %2334 = vrot.lane.b32.xlu1 %v4648_v16, %s8635_s20  ;;  %2332 = vrot.lane.b32.xlu0 %v4650_v17, %s8635_s20 }
  0x62   :  { %2338 = vrot.lane.b32.xlu1 %v4656_v18, %s8635_s20  ;;  %2336 = vrot.lane.b32.xlu0 %v4659_v19, %s8635_s20 }
  0x66   :  { %2342 = vrot.lane.b32.xlu1 %v4665_v20, %s8635_s20  ;;  %2340 = vrot.lane.b32.xlu0 %v4667_v21, %s8635_s20 }
  0x6a   :  { %2346 = vrot.lane.b32.xlu1 %v4673_v22, %s8635_s20  ;;  %2344 = vrot.lane.b32.xlu0 %v4675_v23, %s8635_s20 }
  0x6e   :  { %53 = vrot.lane.b32.xlu1 %v43_v35, %s4457_s28  ;;  %51 = vrot.lane.b32.xlu0 %v42_v36, %s4457_s28 }
  0x72   :  { %819 = vrot.lane.b32.xlu1 %v95_v37, %s4458_s3  ;;  %511 = vrot.lane.b32.xlu0 %v510_v38, %s4459_s29 }
  0x76   :  { %1724 = vrot.lane.b32.xlu1 %v95_v37, %s4460_s30  ;;  %1416 = vrot.lane.b32.xlu0 %v510_v38, %s4461_s16 }
  0x7a   :  { %96 = vrot.lane.b32.xlu1 %v95_v37, %s4462_s17  ;;  %2321 = vrot.lane.b32.xlu0 %v510_v38, %s8633_s18 }
  0x80   :  { %v208_v39 = vpop.permute.xlu1 %207  ;;  %v204_v40 = vpop.permute.xlu0 %203 }
  0x81   :  { %4274 = vpush %v204_v40 }
  0x84   :  { %v210_v41 = vpop.permute.xlu1 %209  ;;  %v206_v42 = vpop.permute.xlu0 %205 }
  0x85   :  { %4276 = vpush %v206_v42 }
  0x86   :  { %4278 = vpush %v208_v39 }
  0x87   :  { %4280 = vpush %v210_v41 }
  0x88   :  { %v214_v43 = vpop.permute.xlu1 %213  ;;  %v212_v44 = vpop.permute.xlu0 %211 }
  0x89   :  { %4282 = vpush %v212_v44 }
  0x8a   :  { %4284 = vpush %v214_v43 }
  0x8c   :  { %v218_v45 = vpop.permute.xlu1 %217  ;;  %v216_v46 = vpop.permute.xlu0 %215 }
  0x8d   :  { %4286 = vpush %v216_v46 }
  0x8e   :  { %4288 = vpush %v218_v45 }
  0x90   :  { %v525_v47 = vpop.permute.xlu1 %524  ;;  %v523_v48 = vpop.permute.xlu0 %522 }
  0x91   :  { %4290 = vpush %v523_v48 }
  0x92   :  { %4292 = vpush %v525_v47 }
  0x94   :  { %v529_v49 = vpop.permute.xlu1 %528  ;;  %v527_v50 = vpop.permute.xlu0 %526 }
  0x95   :  { %4294 = vpush %v527_v50 }
  0x96   :  { %4296 = vpush %v529_v49 }
  0x98   :  { %v533_v51 = vpop.permute.xlu1 %532  ;;  %v531_v52 = vpop.permute.xlu0 %530 }
  0x99   :  { %4298 = vpush %v531_v52 }
  0x9a   :  { %4300 = vpush %v533_v51 }
  0x9c   :  { %v537_v53 = vpop.permute.xlu1 %536  ;;  %v535_v54 = vpop.permute.xlu0 %534 }
  0x9d   :  { %4302 = vpush %v535_v54 }
  0x9e   :  { %4304 = vpush %v537_v53 }
  0x9f   :  { %4306 = vpush %v4601_v9 }
  0xa0   :  { %v1122_v55 = vpop.permute.xlu1 %1121  ;;  %v1120_v56 = vpop.permute.xlu0 %1119  ;;  %4308 = vpush %v4599_v8 }
  0xa1   :  { %4310 = vpush %v4610_v11 }
  0xa2   :  { %4312 = vpush %v4607_v10 }
  0xa3   :  { %4314 = vpush %v4618_v13 }
  0xa4   :  { %4316 = vpush %v4616_v12  ;;  %v1126_v57 = vpop.permute.xlu1 %1125  ;;  %v1124_v58 = vpop.permute.xlu0 %1123 }
  0xa5   :  { %4318 = vpush %v4626_v15 }
  0xa6   :  { %4320 = vpush %v4624_v14 }
  0xa7   :  { %4322 = vpush %v1120_v56 }
  0xa8   :  { %4324 = vpush %v1122_v55  ;;  %v1130_v59 = vpop.permute.xlu1 %1129  ;;  %v1128_v60 = vpop.permute.xlu0 %1127 }
  0xa9   :  { %4326 = vpush %v1124_v58 }
  0xaa   :  { %4328 = vpush %v1126_v57 }
  0xab   :  { %4330 = vpush %v1128_v60 }
  0xac   :  { %v1134_v61 = vpop.permute.xlu1 %1133  ;;  %v1132_v62 = vpop.permute.xlu0 %1131  ;;  %4332 = vpush %v1130_v59 }
  0xad   :  { %4334 = vpush %v1132_v62 }
  0xae   :  { %4336 = vpush %v1134_v61 }
  0xb0   :  { %v1430_v63 = vpop.permute.xlu1 %1429  ;;  %v1428_v0 = vpop.permute.xlu0 %1427 }
  0xb1   :  { %4338 = vpush %v1428_v0 }
  0xb2   :  { %4340 = vpush %v1430_v63  ;;  %s4744_s2 = spop %4274 }
  0xb3   :  { %v220_v34 = vstv %s4744_s2 }
  0xb4   :  { %v1434_v1 = vpop.permute.xlu1 %1433  ;;  %v1432_v2 = vpop.permute.xlu0 %1431 }
  0xb5   :  { %4342 = vpush %v1432_v2 }
  0xb6   :  { %4344 = vpush %v1434_v1  ;;  %s4746_s27 = spop %4276 }
  0xb7   :  { %s4748_s28 = spop %4278  ;;  %v223_v49 = vstv %s4746_s27  ;;  %s8992_s27 = sld [smem:[#allocation7_spill]] }
  0xb8   :  { %v1438_v3 = vpop.permute.xlu1 %1437  ;;  %v1436_v4 = vpop.permute.xlu0 %1435  ;;  %s4750_s3 = spop %4280  ;;  %v226_v0 = vstv %s4748_s28  ;;  %s8993_s28 = sld [smem:[#allocation8_spill]] }
  0xb9   :  { %4346 = vpush %v1436_v4 }
  0xba   :  { %4348 = vpush %v1438_v3  ;;  %s4752_s29 = spop %4282 }
  0xbb   :  { %s4756_s30 = spop %4284 }
  0xbc   :  { %v1442_v5 = vpop.permute.xlu1 %1441  ;;  %v1440_v6 = vpop.permute.xlu0 %1439 }
  0xbd   :  { %4350 = vpush %v1440_v6 }
  0xbe   :  { %4352 = vpush %v1442_v5  ;;  %s4760_s16 = spop %4286 }
  0xbf   :  { %4354 = vpush %v4650_v17  ;;  %s4763_s17 = spop %4288 }
  0xc0   :  { %4356 = vpush %v4648_v16  ;;  %v2027_v7 = vpop.permute.xlu1 %2026  ;;  %v2025_v8 = vpop.permute.xlu0 %2024 }
  0xc1   :  { %4358 = vpush %v4659_v19 }
  0xc2   :  { %4360 = vpush %v4656_v18  ;;  %s4767_s18 = spop %4290 }
  0xc3   :  { %4362 = vpush %v4667_v21  ;;  %s4770_s20 = spop %4292 }
  0xc4   :  { %4364 = vpush %v4665_v20  ;;  %v2031_v9 = vpop.permute.xlu1 %2030  ;;  %v2029_v10 = vpop.permute.xlu0 %2028 }
  0xc5   :  { %4366 = vpush %v4675_v23 }
  0xc6   :  { %4368 = vpush %v4673_v22  ;;  %s4772_s22 = spop %4294 }
  0xc7   :  { %4370 = vpush %v2025_v8  ;;  %s4774_s15 = spop %4296 }
  0xc8   :  { %4372 = vpush %v2027_v7  ;;  %v2035_v11 = vpop.permute.xlu1 %2034  ;;  %v2033_v12 = vpop.permute.xlu0 %2032  ;;  %v229_v7 = vstv %s4750_s3 }
  0xc9   :  { %4374 = vpush %v2029_v10 }
  0xca   :  { %4376 = vpush %v2031_v9  ;;  %s4776_s14 = spop %4298 }
  0xcb   :  { %4378 = vpush %v2033_v12  ;;  %s4778_s9 = spop %4300 }
  0xcc   :  { %4380 = vpush %v2035_v11  ;;  %v2039_v13 = vpop.permute.xlu1 %2038  ;;  %v2037_v14 = vpop.permute.xlu0 %2036 }
  0xcd   :  { %4382 = vpush %v2037_v14 }
  0xce   :  { %4384 = vpush %v2039_v13  ;;  %s4780_s8 = spop %4302 }
  0xcf   :  { %s4782_s13 = spop %4304 }
  0xd0   :  { %v2335_v15 = vpop.permute.xlu1 %2334  ;;  %v2333_v16 = vpop.permute.xlu0 %2332  ;;  %s4784_s6 = spop %4306 }
  0xd1   :  { %4386 = vpush %v2333_v16  ;;  %s4786_s5 = spop %4308 }
  0xd2   :  { %4388 = vpush %v2335_v15  ;;  %s4788_s7 = spop %4310  ;;  %v539_v15 = vstv %s4767_s18 }
  0xd3   :  { %s4790_s10 = spop %4312 }
  0xd4   :  { %s4792_s12 = spop %4314  ;;  %v2339_v17 = vpop.permute.xlu1 %2338  ;;  %v2337_v18 = vpop.permute.xlu0 %2336 }
  0xd5   :  { %8864 = sst [smem:[#allocation15_spill]] %s4792_s12  ;;  %s4794_s4 = spop %4316  ;;  %4390 = vpush %v2337_v18  ;;  %v542_v18 = vstv %s4770_s20 }
  0xd6   :  { %8865 = sst [smem:[#allocation16_spill]] %s4794_s4  ;;  %s4796_s11 = spop %4318  ;;  %4392 = vpush %v2339_v17 }
  0xd7   :  { %s4798_s26 = spop %4320 }
  0xd8   :  { %v2343_v19 = vpop.permute.xlu1 %2342  ;;  %v2341_v20 = vpop.permute.xlu0 %2340  ;;  %s4800_s25 = spop %4322 }
  0xd9   :  { %8866 = sst [smem:[#allocation17_spill]] %s4800_s25  ;;  %4394 = vpush %v2341_v20  ;;  %s4802_s24 = spop %4324 }
  0xda   :  { %8867 = sst [smem:[#allocation18_spill]] %s4802_s24  ;;  %4396 = vpush %v2343_v19  ;;  %s4804_s23 = spop %4326 }
  0xdb   :  { %8868 = sst [smem:[#allocation19_spill]] %s4804_s23  ;;  %s4806_s21 = spop %4328 }
  0xdc   :  { %v2347_v21 = vpop.permute.xlu1 %2346  ;;  %v2345_v22 = vpop.permute.xlu0 %2344  ;;  %8869 = sst [smem:[#allocation20_spill]] %s4806_s21  ;;  %s4808_s1 = spop %4330 }
  0xdd   :  { %4398 = vpush %v2345_v22  ;;  %8870 = sst [smem:[#allocation21_spill]] %s4808_s1  ;;  %s4810_s19 = spop %4332 }
  0xde   :  { %4400 = vpush %v2347_v21  ;;  %8871 = sst [smem:[#allocation22_spill]] %s4810_s19  ;;  %s4812_s0 = spop %4334 }
  0xdf   :  { %8872 = sst [smem:[#allocation23_spill]] %s4812_s0  ;;  %s4814_s21 = spop %4336 }
  0xe0   :  { %v54_v23 = vpop.permute.xlu1 %53  ;;  %v52_v27 = vpop.permute.xlu0 %51  ;;  %8873 = sst [smem:[#allocation24_spill]] %s4814_s21  ;;  %s8946_s18 = sld [smem:[#allocation22_spill]] }
  0xe1   :  { %v56_v28 = vrot.slane %v54_v23, 4  ;;  %v55_v29 = vrot.slane %v52_v27, 4 }
  0xe2   :  { %s4816_s1 = spop %4338 }
  0xe3   :  { %v59_v30 = vsel %vm57_vm3, %v56_v28, %v54_v23  ;;  %71 = vst.msk [vmem:[#allocation2 + $0x14] sm:$0xf] %vm68_vm4, %v56_v28  ;;  %v58_v31 = vsel %vm57_vm3, %v55_v29, %v52_v27  ;;  %69 = vst.msk [vmem:[#allocation2 + $0x8] sm:$0xf] %vm68_vm4, %v55_v29  ;;  %8874 = sst [smem:[#allocation25_spill]] %s4816_s1  ;;  %s4818_s19 = spop %4340  ;;  %vm2225_vm3 = vcmask 777216  }
  0xe4   :  { %70 = vst.msk [vmem:[#allocation2 + $0xc] sm:$0xff] %vm66_vm5, %v59_v30  ;;  %67 = vst.msk [vmem:[#allocation2] sm:$0xff] %vm66_vm5, %v58_v31  ;;  %v4832_v32 = vpop.permute.xlu1 %819  ;;  %v512_v4 = vpop.permute.xlu0 %511  ;;  %v232_v30 = vstv %s4752_s29  ;;  %v557_v31 = vstv %s4780_s8  ;;  %s4464_s8 = smov 112   ;;  %s8997_s29 = sld [smem:[#allocation9_spill]]  ;;  %vm2533_vm4 = vcmask 769024   ;;  %vm2965_vm5 = vcmask 117760  }
  0xe5   :  { %v513_v6 = vrot.slane %v512_v4, 4 }
  0xe6   :  { %s4820_s4 = spop %4342 }
  0xe7   :  { %8875 = sst [smem:[#allocation26_spill]] %s4820_s4  ;;  %s4822_s23 = spop %4344  ;;  %v515_v10 = vsel %vm514_vm7, %v513_v6, %v512_v4 }
  0xe8   :  { %v1725_v36 = vpop.permute.xlu1 %1724  ;;  %s8938_s20 = sld [smem:[#allocation26_spill]] }
  0xe9   :  { %v1726_v37 = vrot.slane %v1725_v36, 4 }
  0xea   :  { %s4824_s12 = spop %4346  ;;  %v4836_v33 = vld [vmem:[#allocation2 + $0x8] sm:$0xf]  ;;  %v4853_v39 = vld [vmem:[#allocation2 + $0x14] sm:$0xf] }
  0xeb   :  { %8876 = sst [smem:[#allocation27_spill]] %s4824_s12  ;;  %s4826_s0 = spop %4348  ;;  %v244_v35 = vmul.f32 %v220_v34, %v4836_v33  ;;  %v4851_v38 = vld [vmem:[#allocation2 + $0xc] sm:$0xff]  ;;  %v4855_v40 = vld [vmem:[#allocation2] sm:$0xff]  ;;  %v1728_v41 = vsel %vm1727_vm6, %v1726_v37, %v1725_v36  ;;  %v4861_v43 = vmul.f32 %v1726_v37, %v4853_v39  ;;  %v4864_v44 = vmul.f32 %v1726_v37, %v4836_v33 }
  0xec   :  { %8877 = sst [smem:[#allocation28_spill]] %s4826_s0  ;;  %s8881_s0 = smov 127   ;;  %v4858_v42 = vmul.f32 %v1728_v41, %v4851_v38  ;;  %v4867_v45 = vmul.f32 %v1728_v41, %v4855_v40  ;;  %v243_v48 = vmul.f32 %v220_v34, %v4855_v40  ;;  %v246_v58 = vmul.f32 %v223_v49, %v4836_v33 }
  0xed   :  { %309 = vrot.lane.b32.xlu1 %v244_v35, %s8881_s0  ;;  %v245_v59 = vmul.f32 %v223_v49, %v4855_v40  ;;  %v260_v60 = vmul.f32 %v220_v34, %v4853_v39  ;;  %v259_v61 = vmul.f32 %v220_v34, %v4851_v38  ;;  %v262_v62 = vmul.f32 %v223_v49, %v4853_v39 }
  0xee   :  { %s4828_s24 = spop %4350  ;;  %307 = vrot.lane.b32.xlu0 %v243_v48, %s8881_s0  ;;  %v261_v63 = vmul.f32 %v223_v49, %v4851_v38  ;;  %v248_v1 = vmul.f32 %v226_v0, %v4836_v33  ;;  %v247_v2 = vmul.f32 %v226_v0, %v4855_v40  ;;  %v264_v3 = vmul.f32 %v226_v0, %v4853_v39 }
  0xef   :  { %8878 = sst [smem:[#allocation29_spill]] %s4828_s24  ;;  %s4830_s25 = spop %4352  ;;  %v263_v5 = vmul.f32 %v226_v0, %v4851_v38  ;;  %v250_v8 = vmul.f32 %v229_v7, %v4836_v33  ;;  %v249_v9 = vmul.f32 %v229_v7, %v4855_v40  ;;  %v4923_v11 = vmul.f32 %v513_v6, %v4836_v33 }
  0xf0   :  { %8879 = sst [smem:[#allocation30_spill]] %s4830_s25  ;;  %s4834_s21 = spop %4354  ;;  %v266_v12 = vmul.f32 %v229_v7, %v4853_v39  ;;  %v4927_v13 = vmul.f32 %v515_v10, %v4855_v40  ;;  %v265_v14 = vmul.f32 %v229_v7, %v4851_v38  ;;  %v4939_v19 = vmul.f32 %v513_v6, %v4853_v39 }
  0xf1   :  { %8880 = sst [smem:[#allocation31_spill]] %s4834_s21  ;;  %s4838_s1 = spop %4356  ;;  %313 = vrot.lane.b32.xlu1 %v246_v58, %s8881_s0  ;;  %v563_v16 = vmul.f32 %v539_v15, %v4923_v11  ;;  %v565_v20 = vmul.f32 %v542_v18, %v4923_v11  ;;  %v4943_v21 = vmul.f32 %v515_v10, %v4851_v38  ;;  %v821_v34 = vrot.slane %v4832_v32, 4 }
  0xf2   :  { %s4841_s4 = spop %4358  ;;  %311 = vrot.lane.b32.xlu0 %v245_v59, %s8881_s0  ;;  %v562_v17 = vmul.f32 %v539_v15, %v4927_v13  ;;  %v564_v22 = vmul.f32 %v542_v18, %v4927_v13  ;;  %v579_v23 = vmul.f32 %v539_v15, %v4939_v19  ;;  %v581_v28 = vmul.f32 %v542_v18, %v4939_v19  ;;  %s8995_s3 = sld [smem:[#allocation29_spill]] }
  0xf3   :  { %s4844_s12 = spop %4360  ;;  %v578_v27 = vmul.f32 %v539_v15, %v4943_v21  ;;  %v580_v29 = vmul.f32 %v542_v18, %v4943_v21  ;;  %v252_v35 = vmul.f32 %v232_v30, %v4836_v33  ;;  %v4961_v36 = vmul.f32 %v557_v31, %v4923_v11 }
  0xf4   :  { %s4847_s24 = spop %4362  ;;  %v4964_v37 = vmul.f32 %v557_v31, %v4927_v13  ;;  %v251_v41 = vmul.f32 %v232_v30, %v4855_v40  ;;  %v560_v48 = vstv %s4782_s13  ;;  %v823_v49 = vsel %vm822_vm8, %v821_v34, %v4832_v32  ;;  %s8915_s13 = sld [smem:[#allocation20_spill]] }
  0xf5   :  { %s4849_s25 = spop %4364  ;;  %341 = vrot.lane.b32.xlu1 %v260_v60, %s8881_s0  ;;  %v268_v58 = vmul.f32 %v232_v30, %v4853_v39  ;;  %v267_v59 = vmul.f32 %v232_v30, %v4851_v38  ;;  %v4980_v60 = vmul.f32 %v560_v48, %v4923_v11  ;;  %v545_v32 = vstv %s4772_s22  ;;  %s8932_s22 = sld [smem:[#allocation21_spill]] }
  0xf6   :  { %s4367_s21 = spop %4366  ;;  %339 = vrot.lane.b32.xlu0 %v259_v61, %s8881_s0  ;;  %v4983_v61 = vmul.f32 %v560_v48, %v4927_v13  ;;  %v4994_v0 = vmul.f32 %v823_v49, %v4855_v40  ;;  %v5005_v4 = vmul.f32 %v823_v49, %v4851_v38  ;;  %v566_v6 = vmul.f32 %v545_v32, %v4927_v13 }
  0xf7   :  { %s4369_s2 = spop %4368  ;;  %v1762_v46 = vstv %s4367_s21  ;;  %s8890_s21 = smov 126   ;;  %v860_v10 = vstv %s4798_s26  ;;  %v582_v15 = vmul.f32 %v545_v32, %v4943_v21  ;;  %v548_v30 = vstv %s4774_s15 }
  0xf8   :  { %v1765_v47 = vstv %s4369_s2  ;;  %v4872_v50 = vmul.f32 %v1762_v46, %v4867_v45  ;;  %v4875_v51 = vmul.f32 %v1762_v46, %v4864_v44  ;;  %v4878_v52 = vmul.f32 %v1762_v46, %v4858_v42  ;;  %s4466_s15 = smov 110   ;;  %s8979_s26 = sld [smem:[#allocation24_spill]] }
  0xf9   :  { %v4881_v53 = vmul.f32 %v1762_v46, %v4861_v43  ;;  %v4885_v54 = vmul.f32 %v1765_v47, %v4867_v45  ;;  %v4888_v55 = vmul.f32 %v1765_v47, %v4864_v44  ;;  %v4891_v56 = vmul.f32 %v1765_v47, %v4858_v42  ;;  %345 = vrot.lane.b32.xlu1 %v262_v62, %s8881_s0  ;;  %s9003_s2 = sld [smem:[#allocation13_spill]] }
  0xfa   :  { %8882 = vst [vmem:[#allocation32_spill] sm:$0xff] %v4872_v50  ;;  %8883 = vst [vmem:[#allocation33_spill] sm:$0xff] %v4875_v51  ;;  %v4894_v57 = vmul.f32 %v1765_v47, %v4861_v43  ;;  %343 = vrot.lane.b32.xlu0 %v261_v63, %s8881_s0  ;;  %v4968_v46 = vmul.f32 %v557_v31, %v4939_v19  ;;  %v4971_v47 = vmul.f32 %v557_v31, %v4943_v21  ;;  %vm2950_vm6 = vcmask 1043576  }
  0xfb   :  { %8884 = vst [vmem:[#allocation34_spill] sm:$0xff] %v4878_v52  ;;  %8885 = vst [vmem:[#allocation35_spill] sm:$0xff] %v4881_v53  ;;  %v4986_v62 = vmul.f32 %v560_v48, %v4939_v19  ;;  %v4990_v63 = vmul.f32 %v560_v48, %v4943_v21  ;;  %v5033_v18 = vmul.f32 %v860_v10, %v4994_v0 }
  0xfc   :  { %8886 = vst [vmem:[#allocation36_spill] sm:$0xff] %v4885_v54  ;;  %8887 = vst [vmem:[#allocation37_spill] sm:$0xff] %v4888_v55  ;;  %v569_v31 = vmul.f32 %v548_v30, %v4923_v11  ;;  %v584_v48 = vmul.f32 %v548_v30, %v4943_v21 }
  0xfd   :  { %8888 = vst [vmem:[#allocation38_spill] sm:$0xff] %v4891_v56  ;;  %8889 = vst [vmem:[#allocation39_spill] sm:$0xff] %v4894_v57  ;;  %317 = vrot.lane.b32.xlu1 %v248_v1, %s8881_s0  ;;  %v4997_v1 = vmul.f32 %v821_v34, %v4836_v33 }
  0xfe   :  { %315 = vrot.lane.b32.xlu0 %v247_v2, %s8881_s0  ;;  %v5000_v2 = vmul.f32 %v821_v34, %v4853_v39  ;;  %v568_v34 = vmul.f32 %v548_v30, %v4927_v13 }
 0x101   :  { %349 = vrot.lane.b32.xlu1 %v264_v3, %s8881_s0  ;;  %v857_v3 = vstv %s4796_s11  ;;  %s8908_s11 = sld [smem:[#allocation16_spill]] }
 0x102   :  { %347 = vrot.lane.b32.xlu0 %v263_v5, %s8881_s0  ;;  %v567_v5 = vmul.f32 %v545_v32, %v4923_v11  ;;  %v5012_v7 = vmul.f32 %v857_v3, %v4997_v1 }
 0x105   :  { %321 = vrot.lane.b32.xlu1 %v250_v8, %s8881_s0  ;;  %v5015_v8 = vmul.f32 %v857_v3, %v4994_v0 }
 0x106   :  { %319 = vrot.lane.b32.xlu0 %v249_v9, %s8881_s0  ;;  %v5018_v9 = vmul.f32 %v857_v3, %v5000_v2 }
 0x109   :  { %353 = vrot.lane.b32.xlu1 %v266_v12, %s8881_s0  ;;  %v583_v12 = vmul.f32 %v545_v32, %v4939_v19 }
 0x10a   :  { %351 = vrot.lane.b32.xlu0 %v265_v14, %s8881_s0  ;;  %v5023_v14 = vmul.f32 %v857_v3, %v5005_v4 }
 0x10d   :  { %628 = vrot.lane.b32.xlu1 %v563_v16, %s8890_s21  ;;  %v235_v16 = vstv %s4756_s30  ;;  %s4371_s30 = spop %4370 }
 0x10e   :  { %626 = vrot.lane.b32.xlu0 %v562_v17, %s8890_s21  ;;  %v5030_v17 = vmul.f32 %v860_v10, %v4997_v1 }
 0x111   :  { %632 = vrot.lane.b32.xlu1 %v565_v20, %s8890_s21  ;;  %v5036_v20 = vmul.f32 %v860_v10, %v5000_v2 }
 0x112   :  { %630 = vrot.lane.b32.xlu0 %v564_v22, %s8890_s21  ;;  %v254_v22 = vmul.f32 %v235_v16, %v4836_v33 }
 0x115   :  { %660 = vrot.lane.b32.xlu1 %v579_v23, %s8890_s21  ;;  %v5040_v23 = vmul.f32 %v860_v10, %v5005_v4 }
 0x116   :  { %658 = vrot.lane.b32.xlu0 %v578_v27, %s8890_s21  ;;  %v253_v27 = vmul.f32 %v235_v16, %v4855_v40 }
 0x119   :  { %664 = vrot.lane.b32.xlu1 %v581_v28, %s8890_s21  ;;  %v270_v28 = vmul.f32 %v235_v16, %v4853_v39 }
 0x11a   :  { %662 = vrot.lane.b32.xlu0 %v580_v29, %s8890_s21  ;;  %v269_v29 = vmul.f32 %v235_v16, %v4851_v38 }
 0x11d   :  { %325 = vrot.lane.b32.xlu1 %v252_v35, %s8881_s0  ;;  %v585_v35 = vmul.f32 %v548_v30, %v4939_v19 }
 0x11e   :  { %323 = vrot.lane.b32.xlu0 %v251_v41, %s8881_s0  ;;  %v839_v41 = vstv %s4784_s6  ;;  %s8892_s6 = sld [smem:[#allocation18_spill]] }
 0x11f   :  { %v863_v49 = vmul.f32 %v839_v41, %v4997_v1 }
 0x121   :  { %357 = vrot.lane.b32.xlu1 %v268_v58, %s8881_s0  ;;  %v842_v58 = vstv %s4786_s5  ;;  %s8891_s5 = sld [smem:[#allocation17_spill]] }
 0x122   :  { %355 = vrot.lane.b32.xlu0 %v267_v59, %s8881_s0  ;;  %v862_v59 = vmul.f32 %v839_v41, %v4994_v0  ;;  %v865_v32 = vmul.f32 %v842_v58, %v4997_v1  ;;  %v864_v3 = vmul.f32 %v842_v58, %v4994_v0  ;;  %v881_v10 = vmul.f32 %v842_v58, %v5000_v2 }
 0x124   :  { %v1139_v24 = vstv %s8892_s6 }
 0x125   :  { %636 = vrot.lane.b32.xlu1 %v567_v5, %s8890_s21  ;;  %v879_v5 = vmul.f32 %v839_v41, %v5000_v2  ;;  %v1178_v54 = vmul.f32 %v1139_v24, %v4853_v39 }
 0x126   :  { %634 = vrot.lane.b32.xlu0 %v566_v6, %s8890_s21  ;;  %v878_v6 = vmul.f32 %v839_v41, %v5005_v4  ;;  %v845_v41 = vstv %s4788_s7  ;;  %s4465_s7 = smov 111  }
 0x129   :  { %668 = vrot.lane.b32.xlu1 %v583_v12, %s8890_s21  ;;  %v880_v12 = vmul.f32 %v842_v58, %v5005_v4 }
 0x12a   :  { %666 = vrot.lane.b32.xlu0 %v582_v15, %s8890_s21  ;;  %v238_v15 = vstv %s4760_s16  ;;  %s9000_s16 = sld [smem:[#allocation10_spill]] }
 0x12b   :  { %v256_v16 = vmul.f32 %v238_v15, %v4836_v33 }
 0x12d   :  { %329 = vrot.lane.b32.xlu1 %v254_v22, %s8881_s0  ;;  %v255_v22 = vmul.f32 %v238_v15, %v4855_v40 }
 0x12e   :  { %327 = vrot.lane.b32.xlu0 %v253_v27, %s8881_s0  ;;  %v272_v27 = vmul.f32 %v238_v15, %v4853_v39 }
 0x131   :  { %361 = vrot.lane.b32.xlu1 %v270_v28, %s8881_s0  ;;  %v271_v28 = vmul.f32 %v238_v15, %v4851_v38 }
 0x132   :  { %359 = vrot.lane.b32.xlu0 %v269_v29, %s8881_s0  ;;  %v551_v29 = vstv %s4776_s14  ;;  %s8921_s14 = sld [smem:[#allocation25_spill]] }
 0x133   :  { %v571_v30 = vmul.f32 %v551_v29, %v4923_v11 }
 0x135   :  { %640 = vrot.lane.b32.xlu1 %v569_v31, %s8890_s21  ;;  %v570_v31 = vmul.f32 %v551_v29, %v4927_v13 }
 0x136   :  { %638 = vrot.lane.b32.xlu0 %v568_v34, %s8890_s21  ;;  %v5088_v34 = vpop.permute.xlu0 %1416 }
 0x139   :  { %672 = vrot.lane.b32.xlu1 %v585_v35, %s8890_s21  ;;  %v587_v35 = vmul.f32 %v551_v29, %v4939_v19 }
 0x13a   :  { %670 = vrot.lane.b32.xlu0 %v584_v48, %s8890_s21  ;;  %v586_v48 = vmul.f32 %v551_v29, %v4943_v21  ;;  %v5099_v58 = vpop.permute.xlu0 %2321 }
 0x13d   :  { %928 = vrot.lane.b32.xlu1 %v863_v49, %s4464_s8  ;;  %v5095_v49 = vpop.permute.xlu1 %96 }
 0x13e   :  { %926 = vrot.lane.b32.xlu0 %v862_v59, %s4464_s8  ;;  %v867_v59 = vmul.f32 %v845_v41, %v4997_v1 }
 0x141   :  { %932 = vrot.lane.b32.xlu1 %v865_v32, %s4464_s8  ;;  %v866_v32 = vmul.f32 %v845_v41, %v4994_v0 }
 0x142   :  { %930 = vrot.lane.b32.xlu0 %v864_v3, %s4464_s8 }
 0x145   :  { %960 = vrot.lane.b32.xlu1 %v879_v5, %s4464_s8 }
 0x146   :  { %958 = vrot.lane.b32.xlu0 %v878_v6, %s4464_s8  ;;  %v883_v6 = vmul.f32 %v845_v41, %v5000_v2 }
 0x149   :  { %964 = vrot.lane.b32.xlu1 %v881_v10, %s4464_s8  ;;  %v882_v10 = vmul.f32 %v845_v41, %v5005_v4 }
 0x14a   :  { %962 = vrot.lane.b32.xlu0 %v880_v12, %s4464_s8  ;;  %v241_v12 = vstv %s4763_s17  ;;  %s9002_s17 = sld [smem:[#allocation12_spill]] }
 0x14b   :  { %v274_v29 = vmul.f32 %v241_v12, %v4853_v39 }
 0x14d   :  { %333 = vrot.lane.b32.xlu1 %v256_v16, %s8881_s0  ;;  %v258_v16 = vmul.f32 %v241_v12, %v4836_v33 }
 0x14e   :  { %331 = vrot.lane.b32.xlu0 %v255_v22, %s8881_s0 }
 0x151   :  { %365 = vrot.lane.b32.xlu1 %v272_v27, %s8881_s0  ;;  %v257_v27 = vmul.f32 %v241_v12, %v4855_v40 }
 0x152   :  { %363 = vrot.lane.b32.xlu0 %v271_v28, %s8881_s0 }
 0x155   :  { %644 = vrot.lane.b32.xlu1 %v571_v30, %s8890_s21 }
 0x156   :  { %642 = vrot.lane.b32.xlu0 %v570_v31, %s8890_s21  ;;  %v273_v31 = vmul.f32 %v241_v12, %v4851_v38  ;;  %v848_v12 = vstv %s4790_s10  ;;  %s8901_s10 = sld [smem:[#allocation19_spill]] }
 0x159   :  { %676 = vrot.lane.b32.xlu1 %v587_v35, %s8890_s21  ;;  %v554_v35 = vstv %s4778_s9  ;;  %s8894_s9 = sld [smem:[#allocation15_spill]] }
 0x15a   :  { %674 = vrot.lane.b32.xlu0 %v586_v48, %s8890_s21  ;;  %v573_v48 = vmul.f32 %v554_v35, %v4923_v11 }
 0x15c   :  { %v1142_v50 = vstv %s8901_s10  ;;  %s4468_s10 = smov 95  }
 0x15d   :  { %936 = vrot.lane.b32.xlu1 %v867_v59, %s4464_s8 }
 0x15e   :  { %934 = vrot.lane.b32.xlu0 %v866_v32, %s4464_s8  ;;  %v572_v32 = vmul.f32 %v554_v35, %v4927_v13  ;;  %v869_v13 = vmul.f32 %v848_v12, %v4997_v1 }
 0x15f   :  { %v5104_v3 = vpop.permute.xlu1 %309 }
 0x160   :  { %v5107_v5 = vpop.permute.xlu0 %307 }
 0x161   :  { %968 = vrot.lane.b32.xlu1 %v883_v6, %s4464_s8 }
 0x162   :  { %966 = vrot.lane.b32.xlu0 %v882_v10, %s4464_s8  ;;  %v589_v10 = vmul.f32 %v554_v35, %v4939_v19 }
 0x163   :  { %v5114_v15 = vpop.permute.xlu1 %313 }
 0x164   :  { %v5117_v22 = vpop.permute.xlu0 %311 }
 0x165   :  { %337 = vrot.lane.b32.xlu1 %v258_v16, %s8881_s0 }
 0x166   :  { %335 = vrot.lane.b32.xlu0 %v257_v27, %s8881_s0  ;;  %v588_v27 = vmul.f32 %v554_v35, %v4943_v21  ;;  %v885_v21 = vmul.f32 %v848_v12, %v5000_v2 }
 0x167   :  { %v5122_v28 = vpop.permute.xlu1 %341 }
 0x168   :  { %v5125_v30 = vpop.permute.xlu0 %339 }
 0x169   :  { %369 = vrot.lane.b32.xlu1 %v274_v29, %s8881_s0 }
 0x16a   :  { %367 = vrot.lane.b32.xlu0 %v273_v31, %s8881_s0  ;;  %v868_v31 = vmul.f32 %v848_v12, %v4994_v0  ;;  %s8956_s0 = sld [smem:[#allocation31_spill]] }
 0x16b   :  { %v5131_v41 = vpop.permute.xlu1 %345 }
 0x16c   :  { %v5134_v59 = vpop.permute.xlu0 %343 }
 0x16d   :  { %648 = vrot.lane.b32.xlu1 %v573_v48, %s8890_s21  ;;  %v884_v48 = vmul.f32 %v848_v12, %v5005_v4 }
 0x16e   :  { %646 = vrot.lane.b32.xlu0 %v572_v32, %s8890_s21  ;;  %v1136_v32 = vstv %s8891_s5  ;;  %s4373_s5 = spop %4372 }
 0x16f   :  { %v5139_v6 = vpop.permute.xlu1 %317  ;;  %v1176_v56 = vmul.f32 %v1136_v32, %v4853_v39  ;;  %s5615_s6 = spop %4374 }
 0x170   :  { %v5143_v16 = vpop.permute.xlu0 %315 }
 0x171   :  { %680 = vrot.lane.b32.xlu1 %v589_v10, %s8890_s21 }
 0x172   :  { %678 = vrot.lane.b32.xlu0 %v588_v27, %s8890_s21  ;;  %v1160_v27 = vmul.f32 %v1136_v32, %v4836_v33 }
 0x173   :  { %v5148_v11 = vpop.permute.xlu1 %349 }
 0x174   :  { %v5151_v29 = vpop.permute.xlu0 %347 }
 0x175   :  { %940 = vrot.lane.b32.xlu1 %v869_v13, %s4464_s8 }
 0x176   :  { %938 = vrot.lane.b32.xlu0 %v868_v31, %s4464_s8  ;;  %v1159_v31 = vmul.f32 %v1136_v32, %v4855_v40 }
 0x177   :  { %v5156_v19 = vpop.permute.xlu1 %321 }
 0x178   :  { %v5159_v35 = vpop.permute.xlu0 %319 }
 0x179   :  { %972 = vrot.lane.b32.xlu1 %v885_v21, %s4464_s8  ;;  %v1162_v21 = vmul.f32 %v1139_v24, %v4836_v33 }
 0x17a   :  { %970 = vrot.lane.b32.xlu0 %v884_v48, %s4464_s8  ;;  %v1161_v48 = vmul.f32 %v1139_v24, %v4855_v40 }
 0x17b   :  { %v5165_v10 = vpop.permute.xlu1 %353 }
 0x17c   :  { %v5168_v13 = vpop.permute.xlu0 %351 }
 0x17d   :  { %1225 = vrot.lane.b32.xlu1 %v1160_v27, %s4465_s7 }
 0x17e   :  { %1223 = vrot.lane.b32.xlu0 %v1159_v31, %s4465_s7  ;;  %v1175_v31 = vmul.f32 %v1136_v32, %v4851_v38  ;;  %v851_v32 = vstv %s8894_s9 }
 0x17f   :  { %v5174_v12 = vpop.permute.xlu1 %628  ;;  %v887_v53 = vmul.f32 %v851_v32, %v5000_v2 }
 0x180   :  { %v5177_v25 = vpop.permute.xlu0 %626 }
 0x181   :  { %1229 = vrot.lane.b32.xlu1 %v1162_v21, %s4465_s7 }
 0x182   :  { %1227 = vrot.lane.b32.xlu0 %v1161_v48, %s4465_s7  ;;  %v1177_v48 = vmul.f32 %v1139_v24, %v4851_v38 }
 0x183   :  { %v5182_v26 = vpop.permute.xlu1 %632 }
 0x184   :  { %8893 = vst [vmem:[#allocation40_spill] sm:$0xff] %v5182_v26  ;;  %v5185_v27 = vpop.permute.xlu0 %630 }
 0x185   :  { %8895 = vst [vmem:[#allocation41_spill] sm:$0xff] %v5185_v27  ;;  %1257 = vrot.lane.b32.xlu1 %v1176_v56, %s4465_s7 }
 0x186   :  { %1255 = vrot.lane.b32.xlu0 %v1175_v31, %s4465_s7 }
 0x187   :  { %v5190_v57 = vpop.permute.xlu1 %660 }
 0x188   :  { %8896 = vst [vmem:[#allocation42_spill] sm:$0xff] %v5190_v57  ;;  %v5193_v21 = vpop.permute.xlu0 %658 }
 0x189   :  { %8897 = vst [vmem:[#allocation43_spill] sm:$0xff] %v5193_v21  ;;  %1261 = vrot.lane.b32.xlu1 %v1178_v54, %s4465_s7  ;;  %v871_v54 = vmul.f32 %v851_v32, %v4997_v1 }
 0x18a   :  { %1259 = vrot.lane.b32.xlu0 %v1177_v48, %s4465_s7 }
 0x18b   :  { %v5198_v55 = vpop.permute.xlu1 %664 }
 0x18c   :  { %8898 = vst [vmem:[#allocation44_spill] sm:$0xff] %v5198_v55  ;;  %v5200_v52 = vpop.permute.xlu0 %662 }
 0x18d   :  { %8899 = vst [vmem:[#allocation45_spill] sm:$0xff] %v5200_v52  ;;  %652 = vrot.lane.b32.xlu1 %v4961_v36, %s8890_s21 }
 0x18e   :  { %650 = vrot.lane.b32.xlu0 %v4964_v37, %s8890_s21  ;;  %v870_v37 = vmul.f32 %v851_v32, %v4994_v0 }
 0x18f   :  { %v5206_v56 = vpop.permute.xlu1 %325 }
 0x190   :  { %8900 = vst [vmem:[#allocation46_spill] sm:$0xff] %v5206_v56  ;;  %v5209_v31 = vpop.permute.xlu0 %323 }
 0x191   :  { %8902 = vst [vmem:[#allocation47_spill] sm:$0xff] %v5209_v31  ;;  %684 = vrot.lane.b32.xlu1 %v4968_v46, %s8890_s21 }
 0x192   :  { %682 = vrot.lane.b32.xlu0 %v4971_v47, %s8890_s21  ;;  %v886_v47 = vmul.f32 %v851_v32, %v5005_v4 }
 0x193   :  { %v5215_v24 = vpop.permute.xlu1 %357 }
 0x194   :  { %8903 = vst [vmem:[#allocation48_spill] sm:$0xff] %v5215_v24  ;;  %v5218_v36 = vpop.permute.xlu0 %355 }
 0x195   :  { %8904 = vst [vmem:[#allocation49_spill] sm:$0xff] %v5218_v36  ;;  %944 = vrot.lane.b32.xlu1 %v871_v54, %s4464_s8  ;;  %v1164_v36 = vmul.f32 %v1142_v50, %v4836_v33 }
 0x196   :  { %942 = vrot.lane.b32.xlu0 %v870_v37, %s4464_s8  ;;  %v1163_v37 = vmul.f32 %v1142_v50, %v4855_v40 }
 0x197   :  { %v5223_v48 = vpop.permute.xlu1 %636 }
 0x198   :  { %8905 = vst [vmem:[#allocation50_spill] sm:$0xff] %v5223_v48  ;;  %v5226_v46 = vpop.permute.xlu0 %634  ;;  %v5655_v48 = vld [vmem:[#allocation2 + $0x14] sm:$0xf] }
 0x199   :  { %8906 = vst [vmem:[#allocation51_spill] sm:$0xff] %v5226_v46  ;;  %976 = vrot.lane.b32.xlu1 %v887_v53, %s4464_s8  ;;  %v1180_v53 = vmul.f32 %v1142_v50, %v4853_v39 }
 0x19a   :  { %974 = vrot.lane.b32.xlu0 %v886_v47, %s4464_s8  ;;  %v1179_v47 = vmul.f32 %v1142_v50, %v4851_v38 }
 0x19b   :  { %v5232_v51 = vpop.permute.xlu1 %668 }
 0x19c   :  { %8907 = vst [vmem:[#allocation52_spill] sm:$0xff] %v5232_v51  ;;  %v5235_v54 = vpop.permute.xlu0 %666 }
 0x19d   :  { %8909 = vst [vmem:[#allocation53_spill] sm:$0xff] %v5235_v54  ;;  %1233 = vrot.lane.b32.xlu1 %v1164_v36, %s4465_s7 }
 0x19e   :  { %1231 = vrot.lane.b32.xlu0 %v1163_v37, %s4465_s7  ;;  %v854_v37 = vstv %s8908_s11 }
 0x19f   :  { %v5240_v46 = vpop.permute.xlu1 %329 }
 0x1a0   :  { %8910 = vst [vmem:[#allocation54_spill] sm:$0xff] %v5240_v46  ;;  %v5243_v32 = vpop.permute.xlu0 %327 }
 0x1a1   :  { %8911 = vst [vmem:[#allocation55_spill] sm:$0xff] %v5243_v32  ;;  %1265 = vrot.lane.b32.xlu1 %v1180_v53, %s4465_s7  ;;  %v873_v53 = vmul.f32 %v854_v37, %v4997_v1  ;;  %v1145_v1 = vstv %s8915_s13 }
 0x1a2   :  { %1263 = vrot.lane.b32.xlu0 %v1179_v47, %s4465_s7 }
 0x1a3   :  { %v5248_v51 = vpop.permute.xlu1 %361 }
 0x1a4   :  { %8912 = vst [vmem:[#allocation56_spill] sm:$0xff] %v5248_v51  ;;  %v5250_v54 = vpop.permute.xlu0 %359 }
 0x1a5   :  { %8913 = vst [vmem:[#allocation57_spill] sm:$0xff] %v5250_v54  ;;  %656 = vrot.lane.b32.xlu1 %v4980_v60, %s8890_s21 }
 0x1a6   :  { %654 = vrot.lane.b32.xlu0 %v4983_v61, %s8890_s21  ;;  %v872_v61 = vmul.f32 %v854_v37, %v4994_v0 }
 0x1a7   :  { %v5256_v36 = vpop.permute.xlu1 %640 }
 0x1a8   :  { %8914 = vst [vmem:[#allocation58_spill] sm:$0xff] %v5256_v36  ;;  %v5259_v32 = vpop.permute.xlu0 %638  ;;  %v2044_v36 = vstv %s4373_s5 }
 0x1a9   :  { %8916 = vst [vmem:[#allocation59_spill] sm:$0xff] %v5259_v32  ;;  %688 = vrot.lane.b32.xlu1 %v4986_v62, %s8890_s21  ;;  %v889_v32 = vmul.f32 %v854_v37, %v5000_v2  ;;  %v1165_v2 = vmul.f32 %v1145_v1, %v4855_v40 }
 0x1aa   :  { %686 = vrot.lane.b32.xlu0 %v4990_v63, %s8890_s21  ;;  %v888_v63 = vmul.f32 %v854_v37, %v5005_v4  ;;  %s9004_s21 = sld [smem:[#allocation14_spill]] }
 0x1ab   :  { %v5265_v50 = vpop.permute.xlu1 %672 }
 0x1ac   :  { %8917 = vst [vmem:[#allocation60_spill] sm:$0xff] %v5265_v50  ;;  %v5268_v60 = vpop.permute.xlu0 %670  ;;  %v1418_v50 = vrot.slane %v5088_v34, 4 }
 0x1ad   :  { %8918 = vst [vmem:[#allocation61_spill] sm:$0xff] %v5268_v60  ;;  %948 = vrot.lane.b32.xlu1 %v873_v53, %s4464_s8  ;;  %v1166_v53 = vmul.f32 %v1145_v1, %v4836_v33 }
 0x1ae   :  { %946 = vrot.lane.b32.xlu0 %v872_v61, %s4464_s8  ;;  %v1420_v4 = vsel %vm1419_vm9, %v1418_v50, %v5088_v34  ;;  %v1444_v34 = vstv %s8921_s14 }
 0x1af   :  { %v5273_v47 = vpop.permute.xlu1 %928 }
 0x1b0   :  { %8919 = vst [vmem:[#allocation62_spill] sm:$0xff] %v5273_v47  ;;  %v5276_v62 = vpop.permute.xlu0 %926  ;;  %v1447_v47 = vstv %s4818_s19  ;;  %s4467_s19 = smov 96  }
 0x1b1   :  { %8920 = vst [vmem:[#allocation63_spill] sm:$0xff] %v5276_v62  ;;  %980 = vrot.lane.b32.xlu1 %v889_v32, %s4464_s8  ;;  %v5293_v32 = vmul.f32 %v1418_v50, %v4836_v33  ;;  %v1181_v62 = vmul.f32 %v1145_v1, %v4851_v38 }
 0x1b2   :  { %978 = vrot.lane.b32.xlu0 %v888_v63, %s4464_s8  ;;  %v1182_v63 = vmul.f32 %v1145_v1, %v4853_v39  ;;  %v5317_v1 = vmul.f32 %v1418_v50, %v4853_v39 }
 0x1b3   :  { %v5283_v0 = vpop.permute.xlu1 %932 }
 0x1b4   :  { %8922 = vst [vmem:[#allocation64_spill] sm:$0xff] %v5283_v0  ;;  %v5286_v61 = vpop.permute.xlu0 %930  ;;  %v5299_v0 = vmul.f32 %v1420_v4, %v4855_v40  ;;  %v1484_v50 = vmul.f32 %v1444_v34, %v5317_v1 }
 0x1b5   :  { %8923 = vst [vmem:[#allocation65_spill] sm:$0xff] %v5286_v61  ;;  %1237 = vrot.lane.b32.xlu1 %v1166_v53, %s4465_s7 }
 0x1b6   :  { %1235 = vrot.lane.b32.xlu0 %v1165_v2, %s4465_s7  ;;  %v1468_v2 = vmul.f32 %v1444_v34, %v5293_v32  ;;  %v1467_v60 = vmul.f32 %v1444_v34, %v5299_v0 }
 0x1b7   :  { %v5295_v37 = vpop.permute.xlu1 %960 }
 0x1b8   :  { %8924 = vst [vmem:[#allocation66_spill] sm:$0xff] %v5295_v37  ;;  %v5301_v61 = vpop.permute.xlu0 %958 }
 0x1b9   :  { %8925 = vst [vmem:[#allocation67_spill] sm:$0xff] %v5301_v61  ;;  %1269 = vrot.lane.b32.xlu1 %v1182_v63, %s4465_s7 }
 0x1ba   :  { %1267 = vrot.lane.b32.xlu0 %v1181_v62, %s4465_s7  ;;  %v1470_v62 = vmul.f32 %v1447_v47, %v5293_v32 }
 0x1bb   :  { %v5307_v53 = vpop.permute.xlu1 %964 }
 0x1bc   :  { %8926 = vst [vmem:[#allocation68_spill] sm:$0xff] %v5307_v53  ;;  %v5311_v37 = vpop.permute.xlu0 %962  ;;  %v5323_v53 = vmul.f32 %v1420_v4, %v4851_v38 }
 0x1bd   :  { %8927 = vst [vmem:[#allocation69_spill] sm:$0xff] %v5311_v37  ;;  %1533 = vrot.lane.b32.xlu1 %v1468_v2, %s4466_s15  ;;  %v1469_v37 = vmul.f32 %v1447_v47, %v5299_v0 }
 0x1be   :  { %1531 = vrot.lane.b32.xlu0 %v1467_v60, %s4466_s15 }
 0x1bf   :  { %v5319_v63 = vpop.permute.xlu1 %333 }
 0x1c0   :  { %8928 = vst [vmem:[#allocation70_spill] sm:$0xff] %v5319_v63  ;;  %v5325_v61 = vpop.permute.xlu0 %331  ;;  %v1483_v63 = vmul.f32 %v1444_v34, %v5323_v53 }
 0x1c1   :  { %8929 = vst [vmem:[#allocation71_spill] sm:$0xff] %v5325_v61  ;;  %1537 = vrot.lane.b32.xlu1 %v1470_v62, %s4466_s15  ;;  %v1486_v61 = vmul.f32 %v1447_v47, %v5317_v1 }
 0x1c2   :  { %1535 = vrot.lane.b32.xlu0 %v1469_v37, %s4466_s15  ;;  %v1485_v37 = vmul.f32 %v1447_v47, %v5323_v53  ;;  %v1148_v47 = vstv %s8932_s22 }
 0x1c3   :  { %v5330_v2 = vpop.permute.xlu1 %365 }
 0x1c4   :  { %8930 = vst [vmem:[#allocation72_spill] sm:$0xff] %v5330_v2  ;;  %v5333_v60 = vpop.permute.xlu0 %363  ;;  %v5636_v2 = vld [vmem:[#allocation2] sm:$0xff] }
 0x1c5   :  { %8931 = vst [vmem:[#allocation73_spill] sm:$0xff] %v5333_v60  ;;  %1565 = vrot.lane.b32.xlu1 %v1484_v50, %s4466_s15 }
 0x1c6   :  { %1563 = vrot.lane.b32.xlu0 %v1483_v63, %s4466_s15 }
 0x1c7   :  { %v5338_v4 = vpop.permute.xlu1 %644 }
 0x1c8   :  { %8933 = vst [vmem:[#allocation74_spill] sm:$0xff] %v5338_v4  ;;  %v5341_v62 = vpop.permute.xlu0 %642 }
 0x1c9   :  { %8934 = vst [vmem:[#allocation75_spill] sm:$0xff] %v5341_v62  ;;  %1569 = vrot.lane.b32.xlu1 %v1486_v61, %s4466_s15 }
 0x1ca   :  { %1567 = vrot.lane.b32.xlu0 %v1485_v37, %s4466_s15  ;;  %v1168_v37 = vmul.f32 %v1148_v47, %v4836_v33 }
 0x1cb   :  { %v5346_v60 = vpop.permute.xlu1 %676 }
 0x1cc   :  { %8935 = vst [vmem:[#allocation76_spill] sm:$0xff] %v5346_v60  ;;  %v5348_v34 = vpop.permute.xlu0 %674  ;;  %v5626_v60 = vld [vmem:[#allocation2 + $0x8] sm:$0xf] }
 0x1cd   :  { %8936 = vst [vmem:[#allocation77_spill] sm:$0xff] %v5348_v34  ;;  %952 = vrot.lane.b32.xlu1 %v5012_v7, %s4464_s8  ;;  %v2067_v55 = vmul.f32 %v5626_v60, %v2044_v36 }
 0x1ce   :  { %950 = vrot.lane.b32.xlu0 %v5015_v8, %s4464_s8  ;;  %v1167_v8 = vmul.f32 %v1148_v47, %v4855_v40 }
 0x1cf   :  { %v5354_v63 = vpop.permute.xlu1 %936 }
 0x1d0   :  { %8937 = vst [vmem:[#allocation78_spill] sm:$0xff] %v5354_v63  ;;  %v5356_v50 = vpop.permute.xlu0 %934 }
 0x1d1   :  { %8939 = vst [vmem:[#allocation79_spill] sm:$0xff] %v5356_v50  ;;  %984 = vrot.lane.b32.xlu1 %v5018_v9, %s4464_s8  ;;  %v1184_v9 = vmul.f32 %v1148_v47, %v4853_v39 }
 0x1d2   :  { %982 = vrot.lane.b32.xlu0 %v5023_v14, %s4464_s8  ;;  %v1183_v14 = vmul.f32 %v1148_v47, %v4851_v38 }
 0x1d3   :  { %v5363_v61 = vpop.permute.xlu1 %968 }
 0x1d4   :  { %8940 = vst [vmem:[#allocation80_spill] sm:$0xff] %v5363_v61  ;;  %v5366_v7 = vpop.permute.xlu0 %966  ;;  %v1450_v61 = vstv %s8938_s20 }
 0x1d5   :  { %8941 = vst [vmem:[#allocation81_spill] sm:$0xff] %v5366_v7  ;;  %1241 = vrot.lane.b32.xlu1 %v1168_v37, %s4465_s7  ;;  %v1472_v34 = vmul.f32 %v1450_v61, %v5293_v32  ;;  %v1488_v47 = vmul.f32 %v1450_v61, %v5317_v1 }
 0x1d6   :  { %1239 = vrot.lane.b32.xlu0 %v1167_v8, %s4465_s7  ;;  %v1471_v8 = vmul.f32 %v1450_v61, %v5299_v0 }
 0x1d7   :  { %v5371_v50 = vpop.permute.xlu1 %337 }
 0x1d8   :  { %8942 = vst [vmem:[#allocation82_spill] sm:$0xff] %v5371_v50  ;;  %v5374_v63 = vpop.permute.xlu0 %335 }
 0x1d9   :  { %8943 = vst [vmem:[#allocation83_spill] sm:$0xff] %v5374_v63  ;;  %1273 = vrot.lane.b32.xlu1 %v1184_v9, %s4465_s7 }
 0x1da   :  { %1271 = vrot.lane.b32.xlu0 %v1183_v14, %s4465_s7  ;;  %v1487_v14 = vmul.f32 %v1450_v61, %v5323_v53  ;;  %v1151_v61 = vstv %s8946_s18 }
 0x1db   :  { %v5380_v7 = vpop.permute.xlu1 %369 }
 0x1dc   :  { %8944 = vst [vmem:[#allocation84_spill] sm:$0xff] %v5380_v7  ;;  %v5383_v37 = vpop.permute.xlu0 %367 }
 0x1dd   :  { %8945 = vst [vmem:[#allocation85_spill] sm:$0xff] %v5383_v37  ;;  %1541 = vrot.lane.b32.xlu1 %v1472_v34, %s4466_s15 }
 0x1de   :  { %1539 = vrot.lane.b32.xlu0 %v1471_v8, %s4466_s15 }
 0x1df   :  { %v5388_v63 = vpop.permute.xlu1 %648 }
 0x1e0   :  { %8947 = vst [vmem:[#allocation86_spill] sm:$0xff] %v5388_v63  ;;  %v5391_v9 = vpop.permute.xlu0 %646 }
 0x1e1   :  { %8948 = vst [vmem:[#allocation87_spill] sm:$0xff] %v5391_v9  ;;  %1573 = vrot.lane.b32.xlu1 %v1488_v47, %s4466_s15  ;;  %v5608_v9 = vstv %s9004_s21  ;;  %s9513_s21 = sld [smem:[#allocation229_spill]] }
 0x1e2   :  { %1571 = vrot.lane.b32.xlu0 %v1487_v14, %s4466_s15  ;;  %v1170_v14 = vmul.f32 %v1151_v61, %v4836_v33 }
 0x1e3   :  { %v5396_v37 = vpop.permute.xlu1 %680 }
 0x1e4   :  { %8949 = vst [vmem:[#allocation88_spill] sm:$0xff] %v5396_v37  ;;  %v5398_v7 = vpop.permute.xlu0 %678 }
 0x1e5   :  { %8950 = vst [vmem:[#allocation89_spill] sm:$0xff] %v5398_v7  ;;  %956 = vrot.lane.b32.xlu1 %v5030_v17, %s4464_s8  ;;  %v1169_v17 = vmul.f32 %v1151_v61, %v4855_v40 }
 0x1e6   :  { %954 = vrot.lane.b32.xlu0 %v5033_v18, %s4464_s8 }
 0x1e7   :  { %v5404_v34 = vpop.permute.xlu1 %940 }
 0x1e8   :  { %8951 = vst [vmem:[#allocation90_spill] sm:$0xff] %v5404_v34  ;;  %v5406_v8 = vpop.permute.xlu0 %938 }
 0x1e9   :  { %8952 = vst [vmem:[#allocation91_spill] sm:$0xff] %v5406_v8  ;;  %988 = vrot.lane.b32.xlu1 %v5036_v20, %s4464_s8  ;;  %v1186_v20 = vmul.f32 %v1151_v61, %v4853_v39  ;;  %v1453_v8 = vstv %s4822_s23  ;;  %s8965_s23 = sld [smem:[#allocation23_spill]] }
 0x1ea   :  { %986 = vrot.lane.b32.xlu0 %v5040_v23, %s4464_s8  ;;  %v1185_v23 = vmul.f32 %v1151_v61, %v4851_v38  ;;  %s9007_s8 = sld [smem:[#allocation30_spill]] }
 0x1eb   :  { %v5413_v47 = vpop.permute.xlu1 %972 }
 0x1ec   :  { %8953 = vst [vmem:[#allocation92_spill] sm:$0xff] %v5413_v47  ;;  %v5416_v7 = vpop.permute.xlu0 %970 }
 0x1ed   :  { %8954 = vst [vmem:[#allocation93_spill] sm:$0xff] %v5416_v7  ;;  %1245 = vrot.lane.b32.xlu1 %v1170_v14, %s4465_s7  ;;  %v1474_v7 = vmul.f32 %v1453_v8, %v5293_v32 }
 0x1ee   :  { %1243 = vrot.lane.b32.xlu0 %v1169_v17, %s4465_s7  ;;  %v1473_v17 = vmul.f32 %v1453_v8, %v5299_v0 }
 0x1ef   :  { %v5421_v18 = vpop.permute.xlu1 %1225 }
 0x1f0   :  { %8955 = vst [vmem:[#allocation94_spill] sm:$0xff] %v5421_v18  ;;  %v5425_v34 = vpop.permute.xlu0 %1223 }
 0x1f1   :  { %8957 = vst [vmem:[#allocation95_spill] sm:$0xff] %v5425_v34  ;;  %1277 = vrot.lane.b32.xlu1 %v1186_v20, %s4465_s7  ;;  %v1490_v34 = vmul.f32 %v1453_v8, %v5317_v1  ;;  %v1489_v20 = vmul.f32 %v1453_v8, %v5323_v53 }
 0x1f2   :  { %1275 = vrot.lane.b32.xlu0 %v1185_v23, %s4465_s7  ;;  %v1744_v23 = vstv %s8956_s0 }
 0x1f3   :  { %v5431_v14 = vpop.permute.xlu1 %1229 }
 0x1f4   :  { %8958 = vst [vmem:[#allocation96_spill] sm:$0xff] %v5431_v14  ;;  %v5434_v18 = vpop.permute.xlu0 %1227  ;;  %v1768_v14 = vmul.f32 %v1744_v23, %v4864_v44 }
 0x1f5   :  { %8959 = vst [vmem:[#allocation97_spill] sm:$0xff] %v5434_v18  ;;  %1545 = vrot.lane.b32.xlu1 %v1474_v7, %s4466_s15  ;;  %v1767_v7 = vmul.f32 %v1744_v23, %v4867_v45 }
 0x1f6   :  { %1543 = vrot.lane.b32.xlu0 %v1473_v17, %s4466_s15  ;;  %v1747_v17 = vstv %s4838_s1  ;;  %s8969_s1 = sld [smem:[#allocation27_spill]] }
 0x1f7   :  { %v5439_v61 = vpop.permute.xlu1 %1257  ;;  %v1770_v8 = vmul.f32 %v1747_v17, %v4864_v44 }
 0x1f8   :  { %8960 = vst [vmem:[#allocation98_spill] sm:$0xff] %v5439_v61  ;;  %v5443_v47 = vpop.permute.xlu0 %1255  ;;  %v5601_v61 = vstv %s9002_s17 }
 0x1f9   :  { %8961 = vst [vmem:[#allocation99_spill] sm:$0xff] %v5443_v47  ;;  %1577 = vrot.lane.b32.xlu1 %v1490_v34, %s4466_s15  ;;  %v1769_v34 = vmul.f32 %v1747_v17, %v4867_v45 }
 0x1fa   :  { %1575 = vrot.lane.b32.xlu0 %v1489_v20, %s4466_s15 }
 0x1fb   :  { %v5448_v18 = vpop.permute.xlu1 %1261 }
 0x1fc   :  { %8962 = vst [vmem:[#allocation100_spill] sm:$0xff] %v5448_v18  ;;  %v5452_v37 = vpop.permute.xlu0 %1259 }
 0x1fd   :  { %8963 = vst [vmem:[#allocation101_spill] sm:$0xff] %v5452_v37  ;;  %1833 = vrot.lane.b32.xlu1 %v1768_v14, %s4467_s19  ;;  %v1784_v37 = vmul.f32 %v1744_v23, %v4861_v43  ;;  %v1783_v14 = vmul.f32 %v1744_v23, %v4858_v42 }
 0x1fe   :  { %1831 = vrot.lane.b32.xlu0 %v1767_v7, %s4467_s19 }
 0x1ff   :  { %v5457_v47 = vpop.permute.xlu1 %652 }
 0x200   :  { %8964 = vst [vmem:[#allocation102_spill] sm:$0xff] %v5457_v47  ;;  %v5460_v20 = vpop.permute.xlu0 %650  ;;  %v1786_v47 = vmul.f32 %v1747_v17, %v4861_v43 }
 0x201   :  { %8966 = vst [vmem:[#allocation103_spill] sm:$0xff] %v5460_v20  ;;  %1837 = vrot.lane.b32.xlu1 %v1770_v8, %s4467_s19  ;;  %v1785_v8 = vmul.f32 %v1747_v17, %v4858_v42 }
 0x202   :  { %1835 = vrot.lane.b32.xlu0 %v1769_v34, %s4467_s19 }
 0x203   :  { %v5465_v18 = vpop.permute.xlu1 %684 }
 0x204   :  { %8967 = vst [vmem:[#allocation104_spill] sm:$0xff] %v5465_v18  ;;  %v5468_v7 = vpop.permute.xlu0 %682  ;;  %v1154_v18 = vstv %s8965_s23 }
 0x205   :  { %8968 = vst [vmem:[#allocation105_spill] sm:$0xff] %v5468_v7  ;;  %1865 = vrot.lane.b32.xlu1 %v1784_v37, %s4467_s19  ;;  %v1172_v37 = vmul.f32 %v1154_v18, %v4836_v33 }
 0x206   :  { %1863 = vrot.lane.b32.xlu0 %v1783_v14, %s4467_s19  ;;  %v1171_v14 = vmul.f32 %v1154_v18, %v4855_v40 }
 0x207   :  { %v5473_v20 = vpop.permute.xlu1 %944 }
 0x208   :  { %8970 = vst [vmem:[#allocation106_spill] sm:$0xff] %v5473_v20  ;;  %v5476_v34 = vpop.permute.xlu0 %942 }
 0x209   :  { %8971 = vst [vmem:[#allocation107_spill] sm:$0xff] %v5476_v34  ;;  %1869 = vrot.lane.b32.xlu1 %v1786_v47, %s4467_s19  ;;  %v1188_v47 = vmul.f32 %v1154_v18, %v4853_v39  ;;  %v1456_v34 = vstv %s8969_s1 }
 0x20a   :  { %1867 = vrot.lane.b32.xlu0 %v1785_v8, %s4467_s19  ;;  %v1187_v8 = vmul.f32 %v1154_v18, %v4851_v38  ;;  %v1491_v18 = vmul.f32 %v1456_v34, %v5323_v53 }
 0x20b   :  { %v5481_v23 = vpop.permute.xlu1 %976 }
 0x20c   :  { %8972 = vst [vmem:[#allocation108_spill] sm:$0xff] %v5481_v23  ;;  %v5484_v7 = vpop.permute.xlu0 %974 }
 0x20d   :  { %8973 = vst [vmem:[#allocation109_spill] sm:$0xff] %v5484_v7  ;;  %1249 = vrot.lane.b32.xlu1 %v1172_v37, %s4465_s7  ;;  %v1476_v7 = vmul.f32 %v1456_v34, %v5293_v32  ;;  %v1475_v37 = vmul.f32 %v1456_v34, %v5299_v0 }
 0x20e   :  { %1247 = vrot.lane.b32.xlu0 %v1171_v14, %s4465_s7 }
 0x20f   :  { %v5489_v17 = vpop.permute.xlu1 %1233 }
 0x210   :  { %8974 = vst [vmem:[#allocation110_spill] sm:$0xff] %v5489_v17  ;;  %v5493_v20 = vpop.permute.xlu0 %1231 }
 0x211   :  { %8975 = vst [vmem:[#allocation111_spill] sm:$0xff] %v5493_v20  ;;  %1281 = vrot.lane.b32.xlu1 %v1188_v47, %s4465_s7  ;;  %v1492_v20 = vmul.f32 %v1456_v34, %v5317_v1  ;;  %v1750_v47 = vstv %s4841_s4  ;;  %s8983_s4 = sld [smem:[#allocation28_spill]] }
 0x212   :  { %1279 = vrot.lane.b32.xlu0 %v1187_v8, %s4465_s7  ;;  %v1788_v34 = vmul.f32 %v1750_v47, %v4861_v43 }
 0x213   :  { %v5499_v23 = vpop.permute.xlu1 %1265 }
 0x214   :  { %8976 = vst [vmem:[#allocation112_spill] sm:$0xff] %v5499_v23  ;;  %v5502_v14 = vpop.permute.xlu0 %1263 }
 0x215   :  { %8977 = vst [vmem:[#allocation113_spill] sm:$0xff] %v5502_v14  ;;  %1549 = vrot.lane.b32.xlu1 %v1476_v7, %s4466_s15  ;;  %v1772_v14 = vmul.f32 %v1750_v47, %v4864_v44  ;;  %v1771_v7 = vmul.f32 %v1750_v47, %v4867_v45 }
 0x216   :  { %1547 = vrot.lane.b32.xlu0 %v1475_v37, %s4466_s15 }
 0x217   :  { %v5507_v17 = vpop.permute.xlu1 %656 }
 0x218   :  { %8978 = vst [vmem:[#allocation114_spill] sm:$0xff] %v5507_v17  ;;  %v5511_v8 = vpop.permute.xlu0 %654 }
 0x219   :  { %8980 = vst [vmem:[#allocation115_spill] sm:$0xff] %v5511_v8  ;;  %1581 = vrot.lane.b32.xlu1 %v1492_v20, %s4466_s15  ;;  %v1787_v20 = vmul.f32 %v1750_v47, %v4858_v42 }
 0x21a   :  { %1579 = vrot.lane.b32.xlu0 %v1491_v18, %s4466_s15 }
 0x21b   :  { %v5516_v23 = vpop.permute.xlu1 %688 }
 0x21c   :  { %8981 = vst [vmem:[#allocation116_spill] sm:$0xff] %v5516_v23  ;;  %v5519_v37 = vpop.permute.xlu0 %686  ;;  %v1157_v23 = vstv %s8979_s26  ;;  %s9476_s26 = smov 49  }
 0x21d   :  { %8982 = vst [vmem:[#allocation117_spill] sm:$0xff] %v5519_v37  ;;  %1841 = vrot.lane.b32.xlu1 %v1772_v14, %s4467_s19  ;;  %v1174_v37 = vmul.f32 %v1157_v23, %v4836_v33  ;;  %v1173_v14 = vmul.f32 %v1157_v23, %v4855_v40  ;;  %v1190_v47 = vmul.f32 %v1157_v23, %v4853_v39 }
 0x21e   :  { %1839 = vrot.lane.b32.xlu0 %v1771_v7, %s4467_s19 }
 0x21f   :  { %v5524_v8 = vpop.permute.xlu1 %948 }
 0x220   :  { %8984 = vst [vmem:[#allocation118_spill] sm:$0xff] %v5524_v8  ;;  %v5527_v18 = vpop.permute.xlu0 %946 }
 0x221   :  { %8985 = vst [vmem:[#allocation119_spill] sm:$0xff] %v5527_v18  ;;  %1873 = vrot.lane.b32.xlu1 %v1788_v34, %s4467_s19  ;;  %v1189_v34 = vmul.f32 %v1157_v23, %v4851_v38 }
 0x222   :  { %1871 = vrot.lane.b32.xlu0 %v1787_v20, %s4467_s19  ;;  %v1459_v20 = vstv %s8983_s4 }
 0x223   :  { %v5533_v17 = vpop.permute.xlu1 %980  ;;  %v1478_v33 = vmul.f32 %v1459_v20, %v5293_v32  ;;  %v1494_v38 = vmul.f32 %v1459_v20, %v5317_v1  ;;  %v1493_v23 = vmul.f32 %v1459_v20, %v5323_v53 }
 0x224   :  { %8986 = vst [vmem:[#allocation120_spill] sm:$0xff] %v5533_v17  ;;  %v5536_v7 = vpop.permute.xlu0 %978 }
 0x225   :  { %8987 = vst [vmem:[#allocation121_spill] sm:$0xff] %v5536_v7  ;;  %1253 = vrot.lane.b32.xlu1 %v1174_v37, %s4465_s7  ;;  %v1477_v37 = vmul.f32 %v1459_v20, %v5299_v0  ;;  %v5574_v20 = vstv %s8992_s27 }
 0x226   :  { %1251 = vrot.lane.b32.xlu0 %v1173_v14, %s4465_s7 }
 0x227   :  { %v5541_v18 = vpop.permute.xlu1 %1237 }
 0x228   :  { %8988 = vst [vmem:[#allocation122_spill] sm:$0xff] %v5541_v18  ;;  %v5545_v8 = vpop.permute.xlu0 %1235  ;;  %v5590_v18 = vstv %s4371_s30 }
 0x229   :  { %8989 = vst [vmem:[#allocation123_spill] sm:$0xff] %v5545_v8  ;;  %1285 = vrot.lane.b32.xlu1 %v1190_v47, %s4465_s7  ;;  %v1753_v47 = vstv %s4844_s12  ;;  %s9001_s12 = sld [smem:[#allocation11_spill]] }
 0x22a   :  { %1283 = vrot.lane.b32.xlu0 %v1189_v34, %s4465_s7  ;;  %v1789_v8 = vmul.f32 %v1753_v47, %v4858_v42  ;;  %s5640_s7 = spop %4376 }
 0x22b   :  { %v5550_v40 = vpop.permute.xlu1 %1269  ;;  %s5660_s9 = spop %4378 }
 0x22c   :  { %8990 = vst [vmem:[#allocation124_spill] sm:$0xff] %v5550_v40  ;;  %v5553_v14 = vpop.permute.xlu0 %1267  ;;  %s5682_s11 = spop %4380 }
 0x22d   :  { %8991 = vst [vmem:[#allocation125_spill] sm:$0xff] %v5553_v14  ;;  %1553 = vrot.lane.b32.xlu1 %v1478_v33, %s4466_s15  ;;  %v1774_v33 = vmul.f32 %v1753_v47, %v4864_v44 }
 0x22e   :  { %1551 = vrot.lane.b32.xlu0 %v1477_v37, %s4466_s15  ;;  %v1773_v37 = vmul.f32 %v1753_v47, %v4867_v45 }
 0x22f   :  { %v5558_v39 = vpop.permute.xlu1 %1533  ;;  %v5598_v17 = vstv %s9001_s12 }
 0x230   :  { %8994 = vst [vmem:[#allocation126_spill] sm:$0xff] %v5558_v39  ;;  %v5562_v34 = vpop.permute.xlu0 %1531 }
 0x231   :  { %8996 = vst [vmem:[#allocation127_spill] sm:$0xff] %v5562_v34  ;;  %1585 = vrot.lane.b32.xlu1 %v1494_v38, %s4466_s15  ;;  %v5577_v38 = vstv %s8993_s28  ;;  %v1790_v34 = vmul.f32 %v1753_v47, %v4861_v43  ;;  %s9477_s28 = sld [smem:[#allocation230_spill]] }
 0x232   :  { %1583 = vrot.lane.b32.xlu0 %v1493_v23, %s4466_s15  ;;  %v98_v23 = vrot.slane %v5095_v49, 4 }
 0x233   :  { %v5567_v14 = vpop.permute.xlu1 %1537 }
 0x234   :  { %8998 = vst [vmem:[#allocation128_spill] sm:$0xff] %v5567_v14  ;;  %v5570_v40 = vpop.permute.xlu0 %1535  ;;  %v2323_v14 = vrot.slane %v5099_v58, 4  ;;  %v100_v47 = vsel %vm99_vm10, %v98_v23, %v5095_v49  ;;  %v2065_v49 = vmul.f32 %v5626_v60, %v5590_v18  ;;  %v5658_v24 = vmul.f32 %v5655_v48, %v98_v23 }
 0x235   :  { %8999 = vst [vmem:[#allocation129_spill] sm:$0xff] %v5570_v40  ;;  %1845 = vrot.lane.b32.xlu1 %v1774_v33, %s4467_s19  ;;  %v1462_v40 = vstv %s8995_s3  ;;  %v5587_v33 = vstv %s8997_s29  ;;  %v5645_v51 = vmul.f32 %v5636_v2, %v100_v47 }
 0x236   :  { %1843 = vrot.lane.b32.xlu0 %v1773_v37, %s4467_s19  ;;  %v5595_v37 = vstv %s9000_s16  ;;  %v5613_v63 = vmul.f32 %v1462_v40, %v5299_v0  ;;  %v5621_v50 = vmul.f32 %v1462_v40, %v5293_v32  ;;  %v5633_v4 = vmul.f32 %v1462_v40, %v5317_v1 }
 0x237   :  { %v5584_v39 = vpop.permute.xlu1 %1565  ;;  %v5667_v31 = vmul.f32 %v5626_v60, %v2323_v14 }
 0x238   :  { %9005 = vst [vmem:[#allocation130_spill] sm:$0xff] %v5584_v39  ;;  %v5592_v7 = vpop.permute.xlu0 %1563  ;;  %v5605_v39 = vstv %s9003_s2 }
 0x239   :  { %9006 = vst [vmem:[#allocation131_spill] sm:$0xff] %v5592_v7  ;;  %1877 = vrot.lane.b32.xlu1 %v1790_v34, %s4467_s19  ;;  %v2325_v7 = vsel %vm2324_vm11, %v2323_v14, %v5099_v58  ;;  %v5624_v34 = vmul.f32 %v1462_v40, %v5323_v53  ;;  %v2064_v58 = vmul.f32 %v5636_v2, %v5590_v18  ;;  %v5650_v40 = vld [vmem:[#allocation2 + $0xc] sm:$0xff] }
 0x23a   :  { %1875 = vrot.lane.b32.xlu0 %v1789_v8, %s4467_s19  ;;  %v1465_v8 = vstv %s9007_s8  ;;  %v5653_v46 = vmul.f32 %v5650_v40, %v100_v47  ;;  %v5670_v56 = vmul.f32 %v5650_v40, %v2325_v7  ;;  %v1756_v47 = vstv %s4847_s24  ;;  %s5696_s24 = spop %4382  ;;  %s9481_s8 = sld [smem:[#allocation223_spill]] }
 0x23b   :  { %v5630_v62 = vpop.permute.xlu1 %1569  ;;  %v5678_v52 = vmul.f32 %v1465_v8, %v5299_v0  ;;  %v5690_v57 = vmul.f32 %v1465_v8, %v5323_v53  ;;  %v2047_v53 = vstv %s5615_s6  ;;  %s9514_s6 = sld [smem:[#allocation226_spill]] }
 0x23c   :  { %9008 = vst [vmem:[#allocation132_spill] sm:$0xff] %v5630_v62  ;;  %v5642_v54 = vpop.permute.xlu0 %1567  ;;  %v5648_v62 = vmul.f32 %v5626_v60, %v98_v23  ;;  %v5675_v23 = vmul.f32 %v5655_v48, %v2323_v14  ;;  %v2066_v14 = vmul.f32 %v5636_v2, %v2044_v36 }
 0x23d   :  { %9009 = vst [vmem:[#allocation133_spill] sm:$0xff] %v5642_v54  ;;  %2130 = vrot.lane.b32.xlu1 %v2065_v49, %s4468_s10  ;;  %v5664_v54 = vmul.f32 %v5636_v2, %v2325_v7  ;;  %9010 = vst [vmem:[#allocation134_spill] sm:$0xff] %v5678_v52  ;;  %v1759_v49 = vstv %s4849_s25  ;;  %v5687_v7 = vmul.f32 %v1465_v8, %v5293_v32  ;;  %s5723_s25 = spop %4384 }
 0x23e   :  { %2128 = vrot.lane.b32.xlu0 %v2064_v58, %s4468_s10  ;;  %9013 = vst [vmem:[#allocation137_spill] sm:$0xff] %v5690_v57  ;;  %v5693_v58 = vmul.f32 %v1465_v8, %v5317_v1  ;;  %v5701_v52 = vmul.f32 %v1756_v47, %v4867_v45  ;;  %v5707_v32 = vmul.f32 %v1756_v47, %v4858_v42  ;;  %s5734_s13 = spop %4386 }
 0x23f   :  { %v5684_v21 = vpop.permute.xlu1 %952  ;;  %9012 = vst [vmem:[#allocation136_spill] sm:$0xff] %v5687_v7  ;;  %v5712_v1 = vmul.f32 %v1756_v47, %v4861_v43  ;;  %v5715_v8 = vmul.f32 %v1759_v49, %v4867_v45  ;;  %v5721_v57 = vmul.f32 %v1759_v49, %v4858_v42  ;;  %v2081_v45 = vmul.f32 %v5655_v48, %v5590_v18  ;;  %s4389_s14 = spop %4388 }
 0x240   :  { %9011 = vst [vmem:[#allocation135_spill] sm:$0xff] %v5684_v21  ;;  %9014 = vst [vmem:[#allocation138_spill] sm:$0xff] %v5693_v58  ;;  %v5698_v0 = vpop.permute.xlu0 %950  ;;  %v5704_v21 = vmul.f32 %v1756_v47, %v4864_v44  ;;  %v2080_v47 = vmul.f32 %v5650_v40, %v5590_v18  ;;  %v5750_v18 = vmul.f32 %v5650_v40, %v2047_v53  ;;  %v2059_v7 = vstv %s5696_s24  ;;  %s4391_s22 = spop %4390  ;;  %s9516_s24 = sld [smem:[#allocation225_spill]] }
 0x241   :  { %9015 = vst [vmem:[#allocation139_spill] sm:$0xff] %v5698_v0  ;;  %2134 = vrot.lane.b32.xlu1 %v2067_v55, %s4468_s10  ;;  %9016 = vst [vmem:[#allocation140_spill] sm:$0xff] %v5715_v8  ;;  %v5718_v0 = vmul.f32 %v1759_v49, %v4864_v44  ;;  %v5727_v55 = vmul.f32 %v1759_v49, %v4861_v43  ;;  %v2050_v8 = vstv %s5640_s7  ;;  %v2053_v43 = vstv %s5660_s9  ;;  %s4393_s20 = spop %4392  ;;  %s9515_s9 = sld [smem:[#allocation224_spill]] }
 0x242   :  { %9018 = vst [vmem:[#allocation142_spill] sm:$0xff] %v5721_v57  ;;  %2132 = vrot.lane.b32.xlu0 %v2066_v14, %s4468_s10  ;;  %v2082_v44 = vmul.f32 %v5650_v40, %v2044_v36  ;;  %v2083_v57 = vmul.f32 %v5655_v48, %v2044_v36  ;;  %v5741_v14 = vmul.f32 %v5636_v2, %v2047_v53  ;;  %s4395_s18 = spop %4394 }
 0x243   :  { %9017 = vst [vmem:[#allocation141_spill] sm:$0xff] %v5718_v0  ;;  %9019 = vst [vmem:[#allocation143_spill] sm:$0xff] %v5727_v55  ;;  %v5736_v42 = vpop.permute.xlu1 %984  ;;  %v5747_v55 = vmul.f32 %v5626_v60, %v2047_v53  ;;  %v5753_v0 = vmul.f32 %v5655_v48, %v2047_v53  ;;  %v5758_v36 = vmul.f32 %v5636_v2, %v2050_v8  ;;  %s4397_s0 = spop %4396 }
 0x244   :  { %9020 = vst [vmem:[#allocation144_spill] sm:$0xff] %v5736_v42  ;;  %v5744_v49 = vpop.permute.xlu0 %982  ;;  %v2056_v42 = vstv %s5682_s11  ;;  %v5761_v58 = vmul.f32 %v5626_v60, %v2050_v8  ;;  %v5769_v53 = vmul.f32 %v5655_v48, %v2050_v8  ;;  %v5772_v27 = vmul.f32 %v5636_v2, %v2053_v43  ;;  %s4399_s23 = spop %4398 }
 0x245   :  { %9021 = vst [vmem:[#allocation145_spill] sm:$0xff] %v5744_v49  ;;  %2162 = vrot.lane.b32.xlu1 %v2081_v45, %s4468_s10  ;;  %9022 = vst [vmem:[#allocation146_spill] sm:$0xff] %v5758_v36  ;;  %v5764_v49 = vmul.f32 %v5650_v40, %v2050_v8  ;;  %v5775_v45 = vmul.f32 %v5626_v60, %v2053_v43  ;;  %v5778_v36 = vmul.f32 %v5650_v40, %v2053_v43  ;;  %s4401_s1 = spop %4400 }
 0x246   :  { %9023 = vst [vmem:[#allocation147_spill] sm:$0xff] %v5761_v58  ;;  %2160 = vrot.lane.b32.xlu0 %v2080_v47, %s4468_s10  ;;  %9025 = vst [vmem:[#allocation149_spill] sm:$0xff] %v5769_v53  ;;  %v5786_v26 = vmul.f32 %v5636_v2, %v2056_v42  ;;  %v5789_v8 = vmul.f32 %v5626_v60, %v2056_v42  ;;  %v2062_v47 = vstv %s5723_s25 }
 0x247   :  { %9024 = vst [vmem:[#allocation148_spill] sm:$0xff] %v5764_v49  ;;  %9026 = vst [vmem:[#allocation150_spill] sm:$0xff] %v5772_v27  ;;  %v5780_v58 = vpop.permute.xlu1 %1241  ;;  %v5783_v49 = vmul.f32 %v5655_v48, %v2053_v43  ;;  %v2349_v43 = vstv %s5734_s13  ;;  %v6095_v53 = vmul.f32 %v5605_v39, %v5653_v46 }
 0x248   :  { %9027 = vst [vmem:[#allocation151_spill] sm:$0xff] %v5775_v45  ;;  %9028 = vst [vmem:[#allocation152_spill] sm:$0xff] %v5778_v36  ;;  %v5792_v27 = vpop.permute.xlu0 %1239  ;;  %v5795_v45 = vmul.f32 %v5650_v40, %v2056_v42  ;;  %v5798_v36 = vmul.f32 %v5655_v48, %v2056_v42  ;;  %v5816_v42 = vmul.f32 %v5636_v2, %v2062_v47 }
 0x249   :  { %9029 = vst [vmem:[#allocation153_spill] sm:$0xff] %v5780_v58  ;;  %9030 = vst [vmem:[#allocation154_spill] sm:$0xff] %v5783_v49  ;;  %v5801_v58 = vmul.f32 %v5636_v2, %v2059_v7  ;;  %2166 = vrot.lane.b32.xlu1 %v2083_v57, %s4468_s10  ;;  %v5822_v57 = vmul.f32 %v5650_v40, %v2062_v47  ;;  %v5836_v2 = vmul.f32 %v2349_v43, %v5670_v56 }
 0x24a   :  { %9031 = vst [vmem:[#allocation155_spill] sm:$0xff] %v5786_v26  ;;  %9032 = vst [vmem:[#allocation156_spill] sm:$0xff] %v5789_v8  ;;  %v5806_v26 = vmul.f32 %v5626_v60, %v2059_v7  ;;  %v5809_v8 = vmul.f32 %v5650_v40, %v2059_v7  ;;  %2164 = vrot.lane.b32.xlu0 %v2082_v44, %s4468_s10  ;;  %v5833_v44 = vmul.f32 %v2349_v43, %v5667_v31 }
 0x24b   :  { %9033 = vst [vmem:[#allocation157_spill] sm:$0xff] %v5792_v27  ;;  %9034 = vst [vmem:[#allocation158_spill] sm:$0xff] %v5795_v45  ;;  %v5812_v27 = vmul.f32 %v5655_v48, %v2059_v7  ;;  %v2352_v45 = vstv %s4389_s14  ;;  %v5830_v7 = vmul.f32 %v2349_v43, %v5664_v54  ;;  %v5841_v40 = vmul.f32 %v2349_v43, %v5675_v23  ;;  %s9517_s14 = sld [smem:[#allocation232_spill]] }
 0x24c   :  { %9035 = vst [vmem:[#allocation159_spill] sm:$0xff] %v5798_v36  ;;  %9036 = vst [vmem:[#allocation160_spill] sm:$0xff] %v5801_v58  ;;  %v5819_v58 = vmul.f32 %v5626_v60, %v2062_v47  ;;  %v2355_v36 = vstv %s4391_s22  ;;  %v5838_v60 = vpop.permute.xlu0 %1271  ;;  %v2361_v43 = vstv %s4395_s18  ;;  %s4473_s22 = smov [#allocation3]  }
 0x24d   :  { %9037 = vst [vmem:[#allocation161_spill] sm:$0xff] %v5806_v26  ;;  %9038 = vst [vmem:[#allocation162_spill] sm:$0xff] %v5809_v8  ;;  %v5824_v26 = vpop.permute.xlu1 %1273  ;;  %v5827_v8 = vmul.f32 %v5655_v48, %v2062_v47  ;;  %v5847_v48 = vmul.f32 %v2352_v45, %v5667_v31  ;;  %v2358_v47 = vstv %s4393_s20  ;;  %1557 = vrot.lane.b32.xlu1 %v5621_v50, %s4466_s15  ;;  %s9518_s20 = sld [smem:[#allocation227_spill]] }
 0x24e   :  { %9039 = vst [vmem:[#allocation163_spill] sm:$0xff] %v5812_v27  ;;  %9040 = vst [vmem:[#allocation164_spill] sm:$0xff] %v5816_v42  ;;  %v5855_v42 = vmul.f32 %v2352_v45, %v5675_v23  ;;  %1555 = vrot.lane.b32.xlu0 %v5613_v63, %s4466_s15  ;;  %v5863_v27 = vmul.f32 %v2355_v36, %v5667_v31  ;;  %v5869_v50 = vmul.f32 %v2355_v36, %v5675_v23 }
 0x24f   :  { %9041 = vst [vmem:[#allocation165_spill] sm:$0xff] %v5819_v58  ;;  %9042 = vst [vmem:[#allocation166_spill] sm:$0xff] %v5822_v57  ;;  %v5844_v57 = vmul.f32 %v2352_v45, %v5664_v54  ;;  %v5858_v58 = vmul.f32 %v2355_v36, %v5664_v54  ;;  %v5874_v49 = vmul.f32 %v2358_v47, %v5664_v54 }
 0x250   :  { %9043 = vst [vmem:[#allocation167_spill] sm:$0xff] %v5824_v26  ;;  %9044 = vst [vmem:[#allocation168_spill] sm:$0xff] %v5827_v8  ;;  %v5852_v8 = vmul.f32 %v2352_v45, %v5670_v56  ;;  %v2364_v26 = vstv %s4397_s0  ;;  %v5880_v63 = vmul.f32 %v2358_v47, %v5670_v56 }
 0x251   :  { %9045 = vst [vmem:[#allocation169_spill] sm:$0xff] %v5830_v7  ;;  %9046 = vst [vmem:[#allocation170_spill] sm:$0xff] %v5833_v44  ;;  %v5871_v45 = vpop.permute.xlu1 %1541  ;;  %1589 = vrot.lane.b32.xlu1 %v5633_v4, %s4466_s15  ;;  %v5913_v4 = vmul.f32 %v2364_v26, %v5675_v23  ;;  %v6054_v44 = vmul.f32 %v5601_v61, %v5645_v51 }
 0x252   :  { %9047 = vst [vmem:[#allocation171_spill] sm:$0xff] %v5836_v2  ;;  %9048 = vst [vmem:[#allocation172_spill] sm:$0xff] %v5838_v60  ;;  %v5866_v60 = vmul.f32 %v2355_v36, %v5670_v56  ;;  %v5888_v36 = vmul.f32 %v2361_v43, %v5664_v54  ;;  %1587 = vrot.lane.b32.xlu0 %v5624_v34, %s4466_s15 }
 0x253   :  { %9049 = vst [vmem:[#allocation173_spill] sm:$0xff] %v5841_v40  ;;  %9050 = vst [vmem:[#allocation174_spill] sm:$0xff] %v5844_v57  ;;  %v389_v40 = vrot.slane %v5134_v59, 4  ;;  %v6047_v57 = vmul.f32 %v5601_v61, %v5648_v62 }
 0x254   :  { %9051 = vst [vmem:[#allocation175_spill] sm:$0xff] %v5847_v48  ;;  %9052 = vst [vmem:[#allocation176_spill] sm:$0xff] %v5852_v8  ;;  %v2367_v8 = vstv %s4399_s23  ;;  %s9512_s23 = sld [smem:[#allocation231_spill]] }
 0x255   :  { %9053 = vst [vmem:[#allocation177_spill] sm:$0xff] %v5855_v42  ;;  %9054 = vst [vmem:[#allocation178_spill] sm:$0xff] %v5858_v58  ;;  %v5877_v58 = vmul.f32 %v2358_v47, %v5667_v31  ;;  %1849 = vrot.lane.b32.xlu1 %v5704_v21, %s4467_s19  ;;  %v5969_v21 = vmul.f32 %v5574_v20, %v5653_v46  ;;  %v6035_v42 = vmul.f32 %v5598_v17, %v5658_v24 }
 0x256   :  { %9055 = vst [vmem:[#allocation179_spill] sm:$0xff] %v5863_v27  ;;  %9056 = vst [vmem:[#allocation180_spill] sm:$0xff] %v5866_v60  ;;  %v5882_v27 = vpop.permute.xlu0 %1539  ;;  %v5885_v60 = vmul.f32 %v2358_v47, %v5675_v23  ;;  %v5905_v47 = vmul.f32 %v2364_v26, %v5667_v31  ;;  %1847 = vrot.lane.b32.xlu0 %v5701_v52, %s4467_s19  ;;  %v5987_v52 = vmul.f32 %v5587_v33, %v5645_v51 }
 0x257   :  { %9057 = vst [vmem:[#allocation181_spill] sm:$0xff] %v5869_v50  ;;  %9058 = vst [vmem:[#allocation182_spill] sm:$0xff] %v5871_v45  ;;  %v5891_v45 = vmul.f32 %v2361_v43, %v5667_v31  ;;  %v2370_v50 = vstv %s4401_s1  ;;  %s9519_s1 = sld [smem:[#allocation228_spill]] }
 0x258   :  { %9059 = vst [vmem:[#allocation183_spill] sm:$0xff] %v5874_v49  ;;  %9060 = vst [vmem:[#allocation184_spill] sm:$0xff] %v5877_v58  ;;  %v5896_v49 = vmul.f32 %v2361_v43, %v5670_v56  ;;  %v5902_v58 = vmul.f32 %v2364_v26, %v5664_v54  ;;  %v5930_v34 = vmul.f32 %v2370_v50, %v5664_v54 }
 0x259   :  { %9061 = vst [vmem:[#allocation185_spill] sm:$0xff] %v5880_v63  ;;  %9062 = vst [vmem:[#allocation186_spill] sm:$0xff] %v5882_v27  ;;  %v5899_v63 = vmul.f32 %v2361_v43, %v5675_v23  ;;  %v5919_v43 = vmul.f32 %v2367_v8, %v5667_v31  ;;  %1881 = vrot.lane.b32.xlu1 %v5712_v1, %s4467_s19  ;;  %v6027_v27 = vmul.f32 %v5598_v17, %v5648_v62 }
 0x25a   :  { %9063 = vst [vmem:[#allocation187_spill] sm:$0xff] %v5885_v60  ;;  %9064 = vst [vmem:[#allocation188_spill] sm:$0xff] %v5888_v36  ;;  %v5910_v36 = vmul.f32 %v2364_v26, %v5670_v56  ;;  %v5933_v26 = vmul.f32 %v2370_v50, %v5667_v31  ;;  %v5955_v31 = vmul.f32 %v5577_v38, %v5648_v62  ;;  %1879 = vrot.lane.b32.xlu0 %v5707_v32, %s4467_s19 }
 0x25b   :  { %9065 = vst [vmem:[#allocation189_spill] sm:$0xff] %v5891_v45  ;;  %9066 = vst [vmem:[#allocation190_spill] sm:$0xff] %v5896_v49  ;;  %v5916_v49 = vmul.f32 %v2367_v8, %v5664_v54  ;;  %v5963_v54 = vmul.f32 %v5574_v20, %v5658_v24  ;;  %v6007_v45 = vmul.f32 %v5595_v37, %v5645_v51  ;;  %v390_v32 = vrot.slane %v5131_v41, 4 }
 0x25c   :  { %9067 = vst [vmem:[#allocation191_spill] sm:$0xff] %v5899_v63  ;;  %9068 = vst [vmem:[#allocation192_spill] sm:$0xff] %v5902_v58  ;;  %v5921_v63 = vpop.permute.xlu1 %1573  ;;  %v5924_v58 = vmul.f32 %v2367_v8, %v5670_v56  ;;  %v6011_v60 = vmul.f32 %v5595_v37, %v5658_v24  ;;  %v6031_v1 = vmul.f32 %v5598_v17, %v5645_v51 }
 0x25d   :  { %9069 = vst [vmem:[#allocation193_spill] sm:$0xff] %v5905_v47  ;;  %9070 = vst [vmem:[#allocation194_spill] sm:$0xff] %v5910_v36  ;;  %v5927_v47 = vmul.f32 %v2367_v8, %v5675_v23  ;;  %v5935_v36 = vpop.permute.xlu0 %1571  ;;  %v5949_v8 = vmul.f32 %v5574_v20, %v5645_v51  ;;  %2138 = vrot.lane.b32.xlu1 %v5747_v55, %s4468_s10 }
 0x25e   :  { %9071 = vst [vmem:[#allocation195_spill] sm:$0xff] %v5913_v4  ;;  %9072 = vst [vmem:[#allocation196_spill] sm:$0xff] %v5916_v49  ;;  %v5938_v49 = vmul.f32 %v2370_v50, %v5670_v56  ;;  %v5959_v56 = vmul.f32 %v5577_v38, %v5645_v51  ;;  %v371_v4 = vrot.slane %v5107_v5, 4  ;;  %2136 = vrot.lane.b32.xlu0 %v5741_v14, %s4468_s10 }
 0x25f   :  { %9073 = vst [vmem:[#allocation197_spill] sm:$0xff] %v5919_v43  ;;  %9074 = vst [vmem:[#allocation198_spill] sm:$0xff] %v5921_v63  ;;  %v5941_v43 = vmul.f32 %v2370_v50, %v5675_v23  ;;  %v5973_v23 = vmul.f32 %v5577_v38, %v5658_v24  ;;  %v5977_v50 = vmul.f32 %v5577_v38, %v5653_v46 }
 0x260   :  { %9075 = vst [vmem:[#allocation199_spill] sm:$0xff] %v5924_v58  ;;  %9076 = vst [vmem:[#allocation200_spill] sm:$0xff] %v5927_v47  ;;  %v5945_v58 = vmul.f32 %v5574_v20, %v5648_v62  ;;  %v5991_v20 = vmul.f32 %v5587_v33, %v5658_v24  ;;  %v5999_v38 = vmul.f32 %v5595_v37, %v5648_v62  ;;  %v372_v47 = vrot.slane %v5104_v3, 4 }
 0x261   :  { %9077 = vst [vmem:[#allocation201_spill] sm:$0xff] %v5930_v34  ;;  %9078 = vst [vmem:[#allocation202_spill] sm:$0xff] %v5933_v26  ;;  %v5995_v34 = vmul.f32 %v5587_v33, %v5653_v46  ;;  %v6001_v26 = vpop.permute.xlu0 %954  ;;  %v6023_v63 = vmul.f32 %v5595_v37, %v5653_v46  ;;  %v6043_v37 = vmul.f32 %v5598_v17, %v5653_v46  ;;  %2170 = vrot.lane.b32.xlu1 %v5753_v0, %s4468_s10 }
 0x262   :  { %9079 = vst [vmem:[#allocation203_spill] sm:$0xff] %v5935_v36  ;;  %9080 = vst [vmem:[#allocation204_spill] sm:$0xff] %v5938_v49  ;;  %v5981_v49 = vmul.f32 %v5587_v33, %v5648_v62  ;;  %v374_v33 = vrot.slane %v5114_v15, 4  ;;  %v387_v36 = vrot.slane %v5125_v30, 4  ;;  %v404_v7 = vsel %vm403_vm12, %v371_v4, %v372_v47  ;;  %2168 = vrot.lane.b32.xlu0 %v5750_v18, %s4468_s10 }
 0x263   :  { %9081 = vst [vmem:[#allocation205_spill] sm:$0xff] %v5941_v43  ;;  %v5983_v43 = vpop.permute.xlu1 %956  ;;  %9083 = vst [vmem:[#allocation207_spill] sm:$0xff] %v6001_v26  ;;  %v388_v26 = vrot.slane %v5122_v28, 4  ;;  %v6062_v17 = vmul.f32 %v5601_v61, %v5653_v46  ;;  %v376_v47 = vrot.slane %v5139_v6, 4  ;;  %v375_v4 = vrot.slane %v5143_v16, 4 }
 0x264   :  { %9082 = vst [vmem:[#allocation206_spill] sm:$0xff] %v5983_v43  ;;  %v373_v43 = vrot.slane %v5117_v22, 4  ;;  %9085 = vst [vmem:[#allocation209_spill] sm:$0xff] %v6047_v57  ;;  %v6089_v14 = vmul.f32 %v5605_v39, %v5658_v24 }
 0x265   :  { %v6049_v48 = vpop.permute.xlu0 %986  ;;  %9087 = vst [vmem:[#allocation211_spill] sm:$0xff] %v6054_v44  ;;  %9089 = vst [vmem:[#allocation213_spill] sm:$0xff] %v6062_v17  ;;  %v391_v44 = vrot.slane %v5151_v29, 4  ;;  %v377_v17 = vrot.slane %v5159_v35, 4  ;;  %v409_v0 = vsel %vm403_vm12, %v375_v4, %v376_v47  ;;  %v9101_v4 = vld [vmem:[#allocation42_spill] sm:$0xff] }
 0x266   :  { %9086 = vst [vmem:[#allocation210_spill] sm:$0xff] %v6049_v48  ;;  %v407_v57 = vsel %vm403_vm12, %v373_v43, %v374_v33  ;;  %v421_v48 = vsel %vm403_vm12, %v387_v36, %v388_v26  ;;  %v423_v43 = vsel %vm403_vm12, %v389_v40, %v390_v32  ;;  %v6081_v36 = vmul.f32 %v5605_v39, %v5648_v62 }
 0x267   :  { %v6037_v2 = vpop.permute.xlu1 %988  ;;  %v6085_v26 = vmul.f32 %v5605_v39, %v5645_v51  ;;  %9092 = vst [vmem:[#allocation216_spill] sm:$0xff] %v6095_v53  ;;  %v6099_v40 = vmul.f32 %v5608_v9, %v5648_v62  ;;  %v6103_v32 = vmul.f32 %v5608_v9, %v5645_v51  ;;  %v408_v39 = vsel %vm405_vm13, %v5117_v22, %v407_v57 }
 0x268   :  { %9084 = vst [vmem:[#allocation208_spill] sm:$0xff] %v6037_v2  ;;  %v6058_v2 = vmul.f32 %v5601_v61, %v5658_v24  ;;  %v378_v61 = vrot.slane %v5156_v19, 4  ;;  %v422_v62 = vsel %vm405_vm13, %v5125_v30, %v421_v48  ;;  %v6119_v51 = vmul.f32 %v5608_v9, %v5653_v46  ;;  %v9099_v48 = vld [vmem:[#allocation40_spill] sm:$0xff] }
 0x269   :  { %v6091_v33 = vpop.permute.xlu0 %1243  ;;  %9093 = vst [vmem:[#allocation217_spill] sm:$0xff] %v6099_v40  ;;  %9094 = vst [vmem:[#allocation218_spill] sm:$0xff] %v6103_v32  ;;  %v394_v30 = vrot.slane %v5165_v10, 4  ;;  %v691_v46 = vrot.slane %v5174_v12, 4  ;;  %v9104_v32 = vld [vmem:[#allocation134_spill] sm:$0xff]  ;;  %v471_v40 = vadd.f32 %v408_v39, %v5959_v56  ;;  %v485_v53 = vadd.f32 %v422_v62, %v5969_v21  ;;  %v9112_v62 = vld [vmem:[#allocation137_spill] sm:$0xff] }
 0x26a   :  { %9088 = vst [vmem:[#allocation212_spill] sm:$0xff] %v6058_v2  ;;  %v392_v2 = vrot.slane %v5148_v11, 4  ;;  %9091 = vst [vmem:[#allocation215_spill] sm:$0xff] %v6091_v33  ;;  %v406_v33 = vsel %vm405_vm13, %v5107_v5, %v404_v7  ;;  %v411_v22 = vsel %vm403_vm12, %v377_v17, %v378_v61  ;;  %v393_v7 = vrot.slane %v5168_v13, 4  ;;  %v9103_v61 = vld [vmem:[#allocation136_spill] sm:$0xff]  ;;  %1559 = vrot.lane.b32.xlu0 %v9104_v32, %s4466_s15  ;;  %v9107_v21 = vld [vmem:[#allocation138_spill] sm:$0xff] }
 0x26b   :  { %v6076_v55 = vpop.permute.xlu1 %1245  ;;  %9096 = vst [vmem:[#allocation220_spill] sm:$0xff] %v6119_v51  ;;  %1561 = vrot.lane.b32.xlu1 %v9103_v61, %s4466_s15  ;;  %v469_v51 = vadd.f32 %v406_v33, %v5949_v8  ;;  %v488_v61 = vadd.f32 %v5131_v41, %v5973_v23  ;;  %v9110_v33 = vld [vmem:[#allocation46_spill] sm:$0xff] }
 0x26c   :  { %9090 = vst [vmem:[#allocation214_spill] sm:$0xff] %v6076_v55  ;;  %v6107_v55 = vmul.f32 %v5608_v9, %v5658_v24  ;;  %v424_v24 = vsel %vm405_vm13, %v5134_v59, %v423_v43  ;;  %v425_v5 = vsel %vm403_vm12, %v391_v44, %v392_v2  ;;  %v690_v9 = vrot.slane %v5177_v25, 4  ;;  %v9100_v43 = vld [vmem:[#allocation41_spill] sm:$0xff]  ;;  %v9102_v2 = vld [vmem:[#allocation43_spill] sm:$0xff] }
 0x26d   :  { %v6134_v18 = vpop.permute.xlu0 %1275  ;;  %v693_v59 = vrot.slane %v9099_v48, 4  ;;  %v692_v47 = vrot.slane %v9100_v43, 4  ;;  %v707_v44 = vrot.slane %v9101_v4, 4  ;;  %v706_v17 = vrot.slane %v9102_v2, 4 }
 0x26e   :  { %9095 = vst [vmem:[#allocation219_spill] sm:$0xff] %v6107_v55  ;;  %9098 = vst [vmem:[#allocation222_spill] sm:$0xff] %v6134_v18  ;;  %v472_v55 = vadd.f32 %v5114_v15, %v5955_v31  ;;  %v486_v18 = vadd.f32 %v5122_v28, %v5963_v54  ;;  %v6162_v15 = vadd.f32 %v424_v24, %v5977_v50  ;;  %v9109_v50 = vld [vmem:[#allocation45_spill] sm:$0xff]  ;;  %v380_v32 = vrot.slane %v9110_v33, 4 }
 0x26f   :  { %v6128_v57 = vpop.permute.xlu1 %1277  ;;  %v410_v28 = vsel %vm405_vm13, %v5143_v16, %v409_v0  ;;  %v426_v8 = vsel %vm405_vm13, %v5151_v29, %v425_v5  ;;  %v412_v31 = vsel %vm405_vm13, %v5159_v35, %v411_v22  ;;  %v427_v41 = vsel %vm403_vm12, %v393_v7, %v394_v30  ;;  %1593 = vrot.lane.b32.xlu1 %v9107_v21, %s4466_s15  ;;  %v9108_v16 = vld [vmem:[#allocation44_spill] sm:$0xff]  ;;  %v9111_v35 = vld [vmem:[#allocation47_spill] sm:$0xff] }
 0x270   :  { %9097 = vst [vmem:[#allocation221_spill] sm:$0xff] %v6128_v57  ;;  %v470_v57 = vadd.f32 %v5104_v3, %v5945_v58  ;;  %v6157_v3 = vadd.f32 %v5139_v6, %v5981_v49  ;;  %v722_v6 = vsel %vm403_vm12, %v690_v9, %v691_v46  ;;  %v725_v49 = vsel %vm403_vm12, %v692_v47, %v693_v59  ;;  %v9114_v46 = vld [vmem:[#allocation48_spill] sm:$0xff] }
 0x271   :  { %v6170_v56 = vpop.permute.xlu0 %1543  ;;  %v739_v54 = vsel %vm403_vm12, %v706_v17, %v707_v44  ;;  %v709_v23 = vrot.slane %v9108_v16, 4  ;;  %v708_v29 = vrot.slane %v9109_v50, 4  ;;  %v379_v39 = vrot.slane %v9111_v35, 4  ;;  %1591 = vrot.lane.b32.xlu0 %v9112_v62, %s4466_s15  ;;  %v9118_v44 = vld [vmem:[#allocation50_spill] sm:$0xff]  ;;  %s4469_s15 = smov 94  }
 0x272   :  { %9106 = vst [vmem:[#allocation41_spill] sm:$0xff] %v6170_v56  ;;  %v6185_v24 = vadd.f32 %v410_v28, %v5987_v52  ;;  %v6189_v0 = vadd.f32 %v5148_v11, %v5991_v20  ;;  %v6192_v5 = vadd.f32 %v426_v8, %v5995_v34  ;;  %v6196_v22 = vadd.f32 %v5156_v19, %v5999_v38  ;;  %v9115_v11 = vld [vmem:[#allocation49_spill] sm:$0xff]  ;;  %v9119_v28 = vld [vmem:[#allocation51_spill] sm:$0xff]  ;;  %v9120_v8 = vld [vmem:[#allocation140_spill] sm:$0xff] }
 0x273   :  { %v6159_v58 = vpop.permute.xlu1 %1545  ;;  %v6201_v7 = vadd.f32 %v412_v31, %v6007_v45  ;;  %v6205_v52 = vadd.f32 %v5165_v10, %v6011_v60  ;;  %v396_v9 = vrot.slane %v9114_v46, 4  ;;  %v395_v20 = vrot.slane %v9115_v11, 4  ;;  %v9117_v10 = vld [vmem:[#allocation141_spill] sm:$0xff] }
 0x274   :  { %9105 = vst [vmem:[#allocation40_spill] sm:$0xff] %v6159_v58  ;;  %v428_v34 = vsel %vm405_vm13, %v5168_v13, %v427_v41  ;;  %v724_v19 = vsel %vm723_vm14, %v5177_v25, %v722_v6  ;;  %v726_v45 = vsel %vm723_vm14, %v9100_v43, %v725_v49  ;;  %v740_v38 = vsel %vm723_vm14, %v9102_v2, %v739_v54  ;;  %v9121_v25 = vld [vmem:[#allocation52_spill] sm:$0xff]  ;;  %v9122_v43 = vld [vmem:[#allocation53_spill] sm:$0xff]  ;;  %v9123_v6 = vld [vmem:[#allocation54_spill] sm:$0xff] }
 0x275   :  { %v6209_v59 = vpop.permute.xlu0 %1575  ;;  %1853 = vrot.lane.b32.xlu1 %v9117_v10, %s4467_s19  ;;  %v741_v60 = vsel %vm403_vm12, %v708_v29, %v709_v23  ;;  %v413_v47 = vsel %vm403_vm12, %v379_v39, %v380_v32  ;;  %v695_v17 = vrot.slane %v9118_v44, 4  ;;  %v694_v13 = vrot.slane %v9119_v28, 4  ;;  %1851 = vrot.lane.b32.xlu0 %v9120_v8, %s4467_s19  ;;  %v9124_v49 = vld [vmem:[#allocation55_spill] sm:$0xff] }
 0x276   :  { %9116 = vst [vmem:[#allocation43_spill] sm:$0xff] %v6209_v59  ;;  %v711_v31 = vrot.slane %v9121_v25, 4  ;;  %v710_v41 = vrot.slane %v9122_v43, 4  ;;  %v382_v2 = vrot.slane %v9123_v6, 4  ;;  %v381_v54 = vrot.slane %v9124_v49, 4 }
 0x277   :  { %v6198_v30 = vpop.permute.xlu1 %1577  ;;  %v6234_v23 = vadd.f32 %v428_v34, %v6023_v63  ;;  %v6237_v29 = vadd.f32 %v5174_v12, %v470_v57  ;;  %v6240_v32 = vadd.f32 %v9099_v48, %v472_v55  ;;  %v429_v39 = vsel %vm403_vm12, %v395_v20, %v396_v9  ;;  %v9127_v12 = vld [vmem:[#allocation143_spill] sm:$0xff] }
 0x278   :  { %9113 = vst [vmem:[#allocation42_spill] sm:$0xff] %v6198_v30  ;;  %v6245_v10 = vadd.f32 %v724_v19, %v469_v51  ;;  %v6247_v8 = vadd.f32 %v726_v45, %v471_v40  ;;  %v6250_v59 = vadd.f32 %v9101_v4, %v486_v18  ;;  %v6253_v63 = vadd.f32 %v9108_v16, %v488_v61  ;;  %v9128_v18 = vld [vmem:[#allocation142_spill] sm:$0xff]  ;;  %v9133_v34 = vld [vmem:[#allocation59_spill] sm:$0xff]  ;;  %v9148_v30 = vld [vmem:[#allocation149_spill] sm:$0xff] }
 0x279   :  { %v6243_v62 = vpop.permute.xlu0 %1831  ;;  %1885 = vrot.lane.b32.xlu1 %v9127_v12, %s4467_s19  ;;  %v6257_v57 = vadd.f32 %v740_v38, %v485_v53  ;;  %v742_v55 = vsel %vm723_vm14, %v9109_v50, %v741_v60  ;;  %v6263_v51 = vadd.f32 %v9110_v33, %v6027_v27  ;;  %v414_v40 = vsel %vm405_vm13, %v9111_v35, %v413_v47  ;;  %v9130_v27 = vld [vmem:[#allocation56_spill] sm:$0xff]  ;;  %v9131_v33 = vld [vmem:[#allocation57_spill] sm:$0xff]  ;;  %v9132_v35 = vld [vmem:[#allocation58_spill] sm:$0xff] }
 0x27a   :  { %9126 = vst [vmem:[#allocation134_spill] sm:$0xff] %v6243_v62  ;;  %1883 = vrot.lane.b32.xlu0 %v9128_v18, %s4467_s19  ;;  %v430_v48 = vsel %vm405_vm13, %v9115_v11, %v429_v39  ;;  %v727_v53 = vsel %vm403_vm12, %v694_v13, %v695_v17  ;;  %v743_v4 = vsel %vm403_vm12, %v710_v41, %v711_v31  ;;  %v398_v50 = vrot.slane %v9130_v27, 4  ;;  %v9135_v38 = vld [vmem:[#allocation60_spill] sm:$0xff]  ;;  %v9136_v60 = vld [vmem:[#allocation61_spill] sm:$0xff]  ;;  %v9137_v17 = vld [vmem:[#allocation62_spill] sm:$0xff] }
 0x27b   :  { %v6231_v21 = vpop.permute.xlu1 %1833  ;;  %v415_v61 = vsel %vm403_vm12, %v381_v54, %v382_v2  ;;  %v397_v9 = vrot.slane %v9131_v33, 4  ;;  %v697_v20 = vrot.slane %v9132_v35, 4  ;;  %v696_v19 = vrot.slane %v9133_v34, 4  ;;  %v9138_v31 = vld [vmem:[#allocation63_spill] sm:$0xff] }
 0x27c   :  { %9125 = vst [vmem:[#allocation136_spill] sm:$0xff] %v6231_v21  ;;  %v713_v11 = vrot.slane %v9135_v38, 4  ;;  %v712_v47 = vrot.slane %v9136_v60, 4  ;;  %v991_v13 = vrot.slane %v9137_v17, 4  ;;  %v990_v41 = vrot.slane %v9138_v31, 4  ;;  %v9139_v2 = vld [vmem:[#allocation147_spill] sm:$0xff] }
 0x27d   :  { %v6280_v45 = vpop.permute.xlu0 %1835  ;;  %2142 = vrot.lane.b32.xlu1 %v9139_v2, %s4468_s10  ;;  %v6289_v54 = vadd.f32 %v742_v55, %v6162_v15  ;;  %v6292_v39 = vadd.f32 %v414_v40, %v6031_v1  ;;  %v6296_v12 = vadd.f32 %v9114_v46, %v6035_v42  ;;  %v6300_v18 = vadd.f32 %v9118_v44, %v6157_v3  ;;  %v9142_v55 = vld [vmem:[#allocation64_spill] sm:$0xff]  ;;  %v9143_v40 = vld [vmem:[#allocation65_spill] sm:$0xff]  ;;  %v9147_v21 = vld [vmem:[#allocation67_spill] sm:$0xff] }
 0x27e   :  { %9134 = vst [vmem:[#allocation44_spill] sm:$0xff] %v6280_v45  ;;  %v9141_v45 = vld [vmem:[#allocation146_spill] sm:$0xff]  ;;  %v728_v15 = vsel %vm723_vm14, %v9119_v28, %v727_v53  ;;  %v993_v1 = vrot.slane %v9142_v55, 4  ;;  %v992_v2 = vrot.slane %v9143_v40, 4  ;;  %v744_v42 = vsel %vm723_vm14, %v9122_v43, %v743_v4  ;;  %v9149_v43 = vld [vmem:[#allocation68_spill] sm:$0xff] }
 0x27f   :  { %v6274_v16 = vpop.permute.xlu1 %1837  ;;  %9140 = vst [vmem:[#allocation45_spill] sm:$0xff] %v6300_v18  ;;  %2140 = vrot.lane.b32.xlu0 %v9141_v45, %s4468_s10  ;;  %v416_v3 = vsel %vm405_vm13, %v9124_v49, %v415_v61  ;;  %v431_v46 = vsel %vm403_vm12, %v397_v9, %v398_v50  ;;  %v745_v28 = vsel %vm403_vm12, %v712_v47, %v713_v11  ;;  %v9146_v53 = vld [vmem:[#allocation66_spill] sm:$0xff]  ;;  %v1009_v4 = vrot.slane %v9149_v43, 4  ;;  %v9150_v49 = vld [vmem:[#allocation69_spill] sm:$0xff]  ;;  %v9156_v18 = vld [vmem:[#allocation211_spill] sm:$0xff] }
 0x280   :  { %9129 = vst [vmem:[#allocation138_spill] sm:$0xff] %v6274_v16  ;;  %v6305_v16 = vadd.f32 %v430_v48, %v6043_v37  ;;  %v729_v37 = vsel %vm403_vm12, %v696_v19, %v697_v20  ;;  %v1022_v48 = vsel %vm403_vm12, %v990_v41, %v991_v13  ;;  %v1007_v45 = vrot.slane %v9146_v53, 4  ;;  %v9151_v50 = vld [vmem:[#allocation70_spill] sm:$0xff]  ;;  %v9152_v20 = vld [vmem:[#allocation71_spill] sm:$0xff]  ;;  %v9154_v13 = vld [vmem:[#allocation209_spill] sm:$0xff] }
 0x281   :  { %v6319_v44 = vpop.permute.xlu0 %1863  ;;  %2174 = vrot.lane.b32.xlu1 %v9148_v30, %s4468_s10  ;;  %v1008_v61 = vrot.slane %v9150_v49, 4  ;;  %v384_v9 = vrot.slane %v9151_v50, 4  ;;  %v383_v19 = vrot.slane %v9152_v20, 4  ;;  %v6334_v11 = vadd.f32 %v728_v15, %v6185_v24  ;;  %v9157_v24 = vld [vmem:[#allocation212_spill] sm:$0xff] }
 0x282   :  { %9145 = vst [vmem:[#allocation47_spill] sm:$0xff] %v6319_v44  ;;  %v9153_v44 = vld [vmem:[#allocation148_spill] sm:$0xff]  ;;  %v6338_v47 = vadd.f32 %v9121_v25, %v6189_v0  ;;  %v6342_v30 = vadd.f32 %v9123_v6, %v9154_v13  ;;  %v1025_v41 = vsel %vm403_vm12, %v992_v2, %v993_v1  ;;  %v6348_v58 = vadd.f32 %v744_v42, %v6192_v5 }
 0x283   :  { %v6311_v62 = vpop.permute.xlu1 %1865  ;;  %2172 = vrot.lane.b32.xlu0 %v9153_v44, %s4468_s10  ;;  %v6351_v44 = vadd.f32 %v416_v3, %v9156_v18  ;;  %v6355_v15 = vadd.f32 %v9130_v27, %v9157_v24  ;;  %v432_v0 = vsel %vm405_vm13, %v9131_v33, %v431_v46  ;;  %v6363_v6 = vadd.f32 %v9132_v35, %v6196_v22  ;;  %v9161_v27 = vld [vmem:[#allocation170_spill] sm:$0xff]  ;;  %v9164_v3 = vld [vmem:[#allocation73_spill] sm:$0xff] }
 0x284   :  { %9144 = vst [vmem:[#allocation46_spill] sm:$0xff] %v6311_v62  ;;  %v1006_v62 = vrot.slane %v9147_v21, 4  ;;  %v730_v5 = vsel %vm723_vm14, %v9133_v34, %v729_v37  ;;  %v746_v18 = vsel %vm723_vm14, %v9136_v60, %v745_v28  ;;  %v1024_v1 = vsel %vm1023_vm15, %v9138_v31, %v1022_v48  ;;  %v9162_v34 = vld [vmem:[#allocation169_spill] sm:$0xff]  ;;  %v9163_v60 = vld [vmem:[#allocation72_spill] sm:$0xff]  ;;  %v9165_v46 = vld [vmem:[#allocation74_spill] sm:$0xff] }
 0x285   :  { %9158 = vst [vmem:[#allocation48_spill] sm:$0xff] %v6355_v15  ;;  %v6359_v25 = vpop.permute.xlu0 %1867  ;;  %9160 = vst [vmem:[#allocation141_spill] sm:$0xff] %v6363_v6  ;;  %2438 = vrot.lane.b32.xlu1 %v9161_v27, %s4469_s15  ;;  %v1026_v33 = vsel %vm1023_vm15, %v9143_v40, %v1025_v41  ;;  %v1041_v22 = vsel %vm403_vm12, %v1008_v61, %v1009_v4  ;;  %v417_v35 = vsel %vm403_vm12, %v383_v19, %v384_v9  ;;  %v9166_v28 = vld [vmem:[#allocation75_spill] sm:$0xff]  ;;  %v9168_v40 = vld [vmem:[#allocation76_spill] sm:$0xff] }
 0x286   :  { %9159 = vst [vmem:[#allocation49_spill] sm:$0xff] %v6359_v25  ;;  %v1039_v2 = vsel %vm403_vm12, %v1006_v62, %v1007_v45  ;;  %v400_v42 = vrot.slane %v9163_v60, 4  ;;  %v399_v31 = vrot.slane %v9164_v3, 4  ;;  %v699_v37 = vrot.slane %v9165_v46, 4  ;;  %v9169_v62 = vld [vmem:[#allocation77_spill] sm:$0xff]  ;;  %v9170_v4 = vld [vmem:[#allocation78_spill] sm:$0xff] }
 0x287   :  { %v6345_v56 = vpop.permute.xlu1 %1869  ;;  %2436 = vrot.lane.b32.xlu0 %v9162_v34, %s4469_s15  ;;  %v698_v48 = vrot.slane %v9166_v28, 4  ;;  %v715_v41 = vrot.slane %v9168_v40, 4  ;;  %v714_v45 = vrot.slane %v9169_v62, 4  ;;  %v995_v61 = vrot.slane %v9170_v4, 4  ;;  %v9171_v9 = vld [vmem:[#allocation79_spill] sm:$0xff]  ;;  %v9173_v27 = vld [vmem:[#allocation213_spill] sm:$0xff] }
 0x288   :  { %9155 = vst [vmem:[#allocation137_spill] sm:$0xff] %v6345_v56  ;;  %v994_v19 = vrot.slane %v9171_v9, 4  ;;  %v6393_v34 = vadd.f32 %v432_v0, %v9173_v27  ;;  %v6396_v25 = vadd.f32 %v730_v5, %v6201_v7  ;;  %v6400_v56 = vadd.f32 %v9135_v38, %v6205_v52  ;;  %v9174_v6 = vld [vmem:[#allocation175_spill] sm:$0xff]  ;;  %v9178_v5 = vld [vmem:[#allocation80_spill] sm:$0xff] }
 0x289   :  { %v6390_v24 = vpop.permute.xlu0 %1247  ;;  %2442 = vrot.lane.b32.xlu1 %v9174_v6, %s4469_s15  ;;  %v6409_v15 = vadd.f32 %v746_v18, %v6234_v23  ;;  %v6412_v0 = vadd.f32 %v1024_v1, %v6245_v10  ;;  %v6416_v7 = vadd.f32 %v9142_v55, %v6240_v32  ;;  %v6420_v52 = vadd.f32 %v9146_v53, %v6250_v59  ;;  %v9179_v18 = vld [vmem:[#allocation81_spill] sm:$0xff] }
 0x28a   :  { %9172 = vst [vmem:[#allocation51_spill] sm:$0xff] %v6390_v24  ;;  %v6425_v38 = vadd.f32 %v1026_v33, %v6247_v8  ;;  %v1040_v23 = vsel %vm1023_vm15, %v9147_v21, %v1039_v2  ;;  %v1042_v10 = vsel %vm1023_vm15, %v9150_v49, %v1041_v22  ;;  %v418_v32 = vsel %vm405_vm13, %v9152_v20, %v417_v35  ;;  %v9180_v49 = vld [vmem:[#allocation82_spill] sm:$0xff]  ;;  %v9181_v2 = vld [vmem:[#allocation83_spill] sm:$0xff]  ;;  %v9182_v22 = vld [vmem:[#allocation173_spill] sm:$0xff] }
 0x28b   :  { %v6384_v13 = vpop.permute.xlu1 %1249  ;;  %v433_v59 = vsel %vm403_vm12, %v399_v31, %v400_v42  ;;  %v731_v55 = vsel %vm403_vm12, %v698_v48, %v699_v37  ;;  %v747_v53 = vsel %vm403_vm12, %v714_v45, %v715_v41  ;;  %v1027_v8 = vsel %vm403_vm12, %v994_v19, %v995_v61  ;;  %v9183_v48 = vld [vmem:[#allocation171_spill] sm:$0xff]  ;;  %v9184_v45 = vld [vmem:[#allocation84_spill] sm:$0xff] }
 0x28c   :  { %9167 = vst [vmem:[#allocation50_spill] sm:$0xff] %v6384_v13  ;;  %v6404_v13 = vadd.f32 %v9137_v17, %v6237_v29  ;;  %v9175_v29 = vld [vmem:[#allocation174_spill] sm:$0xff]  ;;  %v1011_v21 = vrot.slane %v9178_v5, 4  ;;  %v1010_v1 = vrot.slane %v9179_v18, 4  ;;  %v386_v33 = vrot.slane %v9180_v49, 4  ;;  %v9222_v24 = vld [vmem:[#allocation35_spill] sm:$0xff] }
 0x28d   :  { %2440 = vrot.lane.b32.xlu0 %v9175_v29, %s4469_s15  ;;  %v6439_v6 = vpop.permute.xlu0 %1279  ;;  %v385_v20 = vrot.slane %v9181_v2, 4  ;;  %2470 = vrot.lane.b32.xlu1 %v9182_v22, %s4469_s15  ;;  %v6448_v35 = vadd.f32 %v1040_v23, %v6257_v57  ;;  %v6452_v42 = vadd.f32 %v9149_v43, %v6253_v63  ;;  %v6455_v31 = vadd.f32 %v1042_v10, %v6289_v54  ;;  %v9185_v43 = vld [vmem:[#allocation85_spill] sm:$0xff]  ;;  %v9188_v29 = vld [vmem:[#allocation86_spill] sm:$0xff]  ;;  %v9189_v10 = vld [vmem:[#allocation87_spill] sm:$0xff] }
 0x28e   :  { %9177 = vst [vmem:[#allocation52_spill] sm:$0xff] %v6439_v6  ;;  %v6459_v37 = vadd.f32 %v9151_v50, %v6081_v36  ;;  %v6464_v41 = vadd.f32 %v418_v32, %v6085_v26  ;;  %v6468_v57 = vadd.f32 %v9163_v60, %v6089_v14  ;;  %v402_v63 = vrot.slane %v9184_v45, 4  ;;  %v9219_v6 = vld [vmem:[#allocation219_spill] sm:$0xff] }
 0x28f   :  { %v6433_v17 = vpop.permute.xlu1 %1281  ;;  %v401_v61 = vrot.slane %v9185_v43, 4  ;;  %v434_v36 = vsel %vm405_vm13, %v9164_v3, %v433_v59  ;;  %v732_v50 = vsel %vm723_vm14, %v9166_v28, %v731_v55  ;;  %v748_v26 = vsel %vm723_vm14, %v9169_v62, %v747_v53  ;;  %v9190_v3 = vld [vmem:[#allocation177_spill] sm:$0xff]  ;;  %v9191_v28 = vld [vmem:[#allocation88_spill] sm:$0xff]  ;;  %v9193_v53 = vld [vmem:[#allocation90_spill] sm:$0xff] }
 0x290   :  { %9176 = vst [vmem:[#allocation140_spill] sm:$0xff] %v6433_v17  ;;  %v1028_v19 = vsel %vm1023_vm15, %v9171_v9, %v1027_v8  ;;  %v1043_v60 = vsel %vm403_vm12, %v1010_v1, %v1011_v21  ;;  %v419_v27 = vsel %vm403_vm12, %v385_v20, %v386_v33  ;;  %v701_v23 = vrot.slane %v9188_v29, 4  ;;  %v9192_v55 = vld [vmem:[#allocation89_spill] sm:$0xff]  ;;  %v9194_v9 = vld [vmem:[#allocation91_spill] sm:$0xff]  ;;  %v9196_v21 = vld [vmem:[#allocation216_spill] sm:$0xff] }
 0x291   :  { %2468 = vrot.lane.b32.xlu0 %v9183_v48, %s4469_s15  ;;  %v6482_v14 = vpop.permute.xlu0 %1547  ;;  %v700_v32 = vrot.slane %v9189_v10, 4  ;;  %2474 = vrot.lane.b32.xlu1 %v9190_v3, %s4469_s15  ;;  %v717_v59 = vrot.slane %v9191_v28, 4  ;;  %v716_v62 = vrot.slane %v9192_v55, 4  ;;  %v997_v22 = vrot.slane %v9193_v53, 4  ;;  %v9195_v48 = vld [vmem:[#allocation176_spill] sm:$0xff] }
 0x292   :  { %9187 = vst [vmem:[#allocation54_spill] sm:$0xff] %v6482_v14  ;;  %v996_v8 = vrot.slane %v9194_v9, 4  ;;  %v6497_v1 = vadd.f32 %v434_v36, %v9196_v21  ;;  %v6501_v33 = vadd.f32 %v9165_v46, %v6263_v51  ;;  %v6505_v20 = vadd.f32 %v9168_v40, %v6296_v12  ;;  %v9198_v36 = vld [vmem:[#allocation45_spill] sm:$0xff] }
 0x293   :  { %v6472_v54 = vpop.permute.xlu1 %1549  ;;  %v435_v3 = vsel %vm403_vm12, %v401_v61, %v402_v63  ;;  %v6518_v21 = vadd.f32 %v9170_v4, %v9198_v36  ;;  %v6522_v51 = vadd.f32 %v9178_v5, %v6338_v47  ;;  %v6527_v46 = vadd.f32 %v1028_v19, %v6334_v11  ;;  %v9202_v40 = vld [vmem:[#allocation217_spill] sm:$0xff]  ;;  %v9205_v61 = vld [vmem:[#allocation32_spill] sm:$0xff]  ;;  %v9208_v19 = vld [vmem:[#allocation94_spill] sm:$0xff] }
 0x294   :  { %9186 = vst [vmem:[#allocation53_spill] sm:$0xff] %v6472_v54  ;;  %v6511_v54 = vadd.f32 %v732_v50, %v6292_v39  ;;  %v1044_v39 = vsel %vm1023_vm15, %v9179_v18, %v1043_v60  ;;  %v420_v4 = vsel %vm405_vm13, %v9181_v2, %v419_v27  ;;  %v9204_v63 = vld [vmem:[#allocation33_spill] sm:$0xff]  ;;  %v436_v47 = vsel %vm405_vm13, %v9185_v43, %v435_v3  ;;  %v9209_v27 = vld [vmem:[#allocation95_spill] sm:$0xff]  ;;  %v9211_v43 = vld [vmem:[#allocation96_spill] sm:$0xff] }
 0x295   :  { %2472 = vrot.lane.b32.xlu0 %v9195_v48, %s4469_s15  ;;  %v6514_v48 = vadd.f32 %v748_v26, %v6305_v16  ;;  %9199 = vst [vmem:[#allocation143_spill] sm:$0xff] %v6522_v51  ;;  %v6524_v12 = vpop.permute.xlu0 %1579  ;;  %9201 = vst [vmem:[#allocation56_spill] sm:$0xff] %v6527_v46  ;;  %v6533_v16 = vadd.f32 %v9180_v49, %v9202_v40  ;;  %1857 = vrot.lane.b32.xlu1 %v9204_v63, %s4467_s19  ;;  %v9206_v49 = vld [vmem:[#allocation92_spill] sm:$0xff]  ;;  %v9207_v26 = vld [vmem:[#allocation93_spill] sm:$0xff]  ;;  %v1288_v60 = vrot.slane %v9208_v19, 4 }
 0x296   :  { %9200 = vst [vmem:[#allocation142_spill] sm:$0xff] %v6524_v12  ;;  %v733_v11 = vsel %vm403_vm12, %v700_v32, %v701_v23  ;;  %v749_v5 = vsel %vm403_vm12, %v716_v62, %v717_v59  ;;  %v1029_v18 = vsel %vm403_vm12, %v996_v8, %v997_v22  ;;  %v1013_v50 = vrot.slane %v9206_v49, 4  ;;  %v9212_v23 = vld [vmem:[#allocation97_spill] sm:$0xff]  ;;  %v9213_v59 = vld [vmem:[#allocation98_spill] sm:$0xff]  ;;  %v9214_v22 = vld [vmem:[#allocation99_spill] sm:$0xff] }
 0x297   :  { %v6508_v14 = vpop.permute.xlu1 %1581  ;;  %9203 = vst [vmem:[#allocation57_spill] sm:$0xff] %v6533_v16  ;;  %v1012_v2 = vrot.slane %v9207_v26, 4  ;;  %v1287_v36 = vrot.slane %v9209_v27, 4  ;;  %v1290_v3 = vrot.slane %v9211_v43, 4  ;;  %v1289_v32 = vrot.slane %v9212_v23, 4  ;;  %v9217_v12 = vld [vmem:[#allocation218_spill] sm:$0xff] }
 0x298   :  { %9197 = vst [vmem:[#allocation55_spill] sm:$0xff] %v6508_v14  ;;  %v1304_v62 = vrot.slane %v9213_v59, 4  ;;  %v1303_v8 = vrot.slane %v9214_v22, 4  ;;  %v6562_v14 = vadd.f32 %v420_v4, %v9217_v12  ;;  %v6566_v17 = vadd.f32 %v9184_v45, %v9219_v6  ;;  %v9223_v16 = vld [vmem:[#allocation220_spill] sm:$0xff]  ;;  %v9226_v4 = vld [vmem:[#allocation101_spill] sm:$0xff]  ;;  %v9227_v6 = vld [vmem:[#allocation34_spill] sm:$0xff] }
 0x299   :  { %1855 = vrot.lane.b32.xlu0 %v9205_v61, %s4467_s19  ;;  %v6556_v63 = vpop.permute.xlu0 %1839  ;;  %v6559_v61 = vadd.f32 %v1044_v39, %v6348_v58  ;;  %1889 = vrot.lane.b32.xlu1 %v9222_v24, %s4467_s19  ;;  %v6575_v46 = vadd.f32 %v436_v47, %v9223_v16  ;;  %v734_v58 = vsel %vm723_vm14, %v9189_v10, %v733_v11  ;;  %v9225_v39 = vld [vmem:[#allocation100_spill] sm:$0xff]  ;;  %v9229_v11 = vld [vmem:[#allocation102_spill] sm:$0xff] }
 0x29a   :  { %9215 = vst [vmem:[#allocation59_spill] sm:$0xff] %v6556_v63  ;;  %9218 = vst [vmem:[#allocation61_spill] sm:$0xff] %v6562_v14  ;;  %v1306_v12 = vrot.slane %v9225_v39, 4  ;;  %v1305_v63 = vrot.slane %v9226_v4, 4  ;;  %v1030_v45 = vsel %vm1023_vm15, %v9194_v9, %v1029_v18  ;;  %v1045_v24 = vsel %vm403_vm12, %v1012_v2, %v1013_v50  ;;  %v9234_v18 = vld [vmem:[#allocation106_spill] sm:$0xff]  ;;  %v9235_v2 = vld [vmem:[#allocation107_spill] sm:$0xff] }
 0x29b   :  { %v6550_v40 = vpop.permute.xlu1 %1841  ;;  %9216 = vst [vmem:[#allocation60_spill] sm:$0xff] %v6559_v61  ;;  %9220 = vst [vmem:[#allocation62_spill] sm:$0xff] %v6566_v17  ;;  %v1322_v10 = vsel %vm403_vm12, %v1289_v32, %v1290_v3  ;;  %v1336_v47 = vsel %vm403_vm12, %v1303_v8, %v1304_v62  ;;  %v9233_v17 = vld [vmem:[#allocation105_spill] sm:$0xff]  ;;  %v999_v50 = vrot.slane %v9234_v18, 4  ;;  %v6604_v3 = vadd.f32 %v734_v58, %v6351_v44  ;;  %v9237_v32 = vld [vmem:[#allocation48_spill] sm:$0xff] }
 0x29c   :  { %9210 = vst [vmem:[#allocation58_spill] sm:$0xff] %v6550_v40  ;;  %v6570_v40 = vadd.f32 %v9188_v29, %v6342_v30  ;;  %9224 = vst [vmem:[#allocation147_spill] sm:$0xff] %v6575_v46  ;;  %v750_v30 = vsel %vm723_vm14, %v9192_v55, %v749_v5  ;;  %v1319_v29 = vsel %vm403_vm12, %v1287_v36, %v1288_v60  ;;  %v703_v46 = vrot.slane %v9229_v11, 4  ;;  %v9232_v55 = vld [vmem:[#allocation104_spill] sm:$0xff]  ;;  %v9236_v36 = vld [vmem:[#allocation151_spill] sm:$0xff] }
 0x29d   :  { %1887 = vrot.lane.b32.xlu0 %v9227_v6, %s4467_s19  ;;  %v6595_v14 = vpop.permute.xlu0 %1871  ;;  %v719_v5 = vrot.slane %v9232_v55, 4  ;;  %v718_v9 = vrot.slane %v9233_v17, 4  ;;  %v998_v60 = vrot.slane %v9235_v2, 4  ;;  %2146 = vrot.lane.b32.xlu1 %v9236_v36, %s4468_s10  ;;  %v6608_v62 = vadd.f32 %v9191_v28, %v9237_v32  ;;  %v9238_v8 = vld [vmem:[#allocation141_spill] sm:$0xff]  ;;  %v9239_v61 = vld [vmem:[#allocation150_spill] sm:$0xff] }
 0x29e   :  { %9221 = vst [vmem:[#allocation63_spill] sm:$0xff] %v6570_v40  ;;  %v9230_v40 = vld [vmem:[#allocation103_spill] sm:$0xff]  ;;  %9231 = vst [vmem:[#allocation64_spill] sm:$0xff] %v6595_v14  ;;  %v6612_v14 = vadd.f32 %v9193_v53, %v9238_v8  ;;  %v6618_v51 = vadd.f32 %v750_v30, %v6393_v34  ;;  %v6621_v36 = vadd.f32 %v1030_v45, %v6396_v25  ;;  %v9245_v45 = vld [vmem:[#allocation110_spill] sm:$0xff] }
 0x29f   :  { %v6589_v16 = vpop.permute.xlu1 %1873  ;;  %v702_v6 = vrot.slane %v9230_v40, 4  ;;  %v6625_v44 = vadd.f32 %v9206_v49, %v6400_v56  ;;  %v1046_v28 = vsel %vm1023_vm15, %v9207_v26, %v1045_v24  ;;  %v1321_v34 = vsel %vm1320_vm0, %v9209_v27, %v1319_v29  ;;  %v9243_v27 = vld [vmem:[#allocation108_spill] sm:$0xff]  ;;  %v9246_v24 = vld [vmem:[#allocation111_spill] sm:$0xff] }
 0x2a0   :  { %9228 = vst [vmem:[#allocation146_spill] sm:$0xff] %v6589_v16  ;;  %v1338_v16 = vsel %vm403_vm12, %v1305_v63, %v1306_v12  ;;  %v6633_v63 = vadd.f32 %v9208_v19, %v6404_v13  ;;  %v1323_v25 = vsel %vm1320_vm0, %v9212_v23, %v1322_v10  ;;  %v751_v58 = vsel %vm403_vm12, %v718_v9, %v719_v5  ;;  %v9242_v19 = vld [vmem:[#allocation154_spill] sm:$0xff]  ;;  %v9244_v23 = vld [vmem:[#allocation109_spill] sm:$0xff]  ;;  %v9247_v10 = vld [vmem:[#allocation152_spill] sm:$0xff] }
 0x2a1   :  { %2144 = vrot.lane.b32.xlu0 %v9239_v61, %s4468_s10  ;;  %v1337_v61 = vsel %vm1320_vm0, %v9214_v22, %v1336_v47  ;;  %v6641_v56 = vpop.permute.xlu0 %1251  ;;  %v1339_v49 = vsel %vm1320_vm0, %v9226_v4, %v1338_v16  ;;  %v735_v26 = vsel %vm403_vm12, %v702_v6, %v703_v46  ;;  %v1031_v13 = vsel %vm403_vm12, %v998_v60, %v999_v50  ;;  %v9248_v4 = vld [vmem:[#allocation112_spill] sm:$0xff]  ;;  %v9249_v16 = vld [vmem:[#allocation113_spill] sm:$0xff]  ;;  %v9250_v6 = vld [vmem:[#allocation114_spill] sm:$0xff] }
 0x2a2   :  { %9241 = vst [vmem:[#allocation66_spill] sm:$0xff] %v6641_v56  ;;  %2178 = vrot.lane.b32.xlu1 %v9242_v19, %s4468_s10  ;;  %v1015_v12 = vrot.slane %v9243_v27, 4  ;;  %v1014_v30 = vrot.slane %v9244_v23, 4  ;;  %v1292_v22 = vrot.slane %v9245_v45, 4  ;;  %v1291_v29 = vrot.slane %v9246_v24, 4  ;;  %v9251_v9 = vld [vmem:[#allocation115_spill] sm:$0xff] }
 0x2a3   :  { %v6629_v53 = vpop.permute.xlu1 %1253  ;;  %v1308_v46 = vrot.slane %v9248_v4, 4  ;;  %v1307_v47 = vrot.slane %v9249_v16, 4  ;;  %v705_v5 = vrot.slane %v9250_v6, 4  ;;  %v704_v50 = vrot.slane %v9251_v9, 4 }
 0x2a4   :  { %9240 = vst [vmem:[#allocation65_spill] sm:$0xff] %v6629_v53  ;;  %v6663_v32 = vadd.f32 %v1046_v28, %v6409_v15  ;;  %v6666_v8 = vadd.f32 %v1321_v34, %v6412_v0  ;;  %v6670_v19 = vadd.f32 %v9211_v43, %v6416_v7  ;;  %v6679_v53 = vadd.f32 %v1323_v25, %v6425_v38  ;;  %v9254_v7 = vld [vmem:[#allocation179_spill] sm:$0xff]  ;;  %v9255_v43 = vld [vmem:[#allocation178_spill] sm:$0xff]  ;;  %v9258_v34 = vld [vmem:[#allocation117_spill] sm:$0xff] }
 0x2a5   :  { %2176 = vrot.lane.b32.xlu0 %v9247_v10, %s4468_s10  ;;  %v6674_v10 = vadd.f32 %v9213_v59, %v6420_v52  ;;  %v6676_v56 = vpop.permute.xlu0 %1283  ;;  %v6686_v15 = vadd.f32 %v9225_v39, %v6452_v42  ;;  %v6690_v0 = vadd.f32 %v9229_v11, %v6459_v37  ;;  %v6695_v52 = vadd.f32 %v1339_v49, %v6455_v31  ;;  %v9259_v25 = vld [vmem:[#allocation118_spill] sm:$0xff] }
 0x2a6   :  { %9253 = vst [vmem:[#allocation149_spill] sm:$0xff] %v6676_v56  ;;  %2446 = vrot.lane.b32.xlu1 %v9254_v7, %s4469_s15  ;;  %v736_v38 = vsel %vm723_vm14, %v9230_v40, %v735_v26  ;;  %v1032_v42 = vsel %vm1023_vm15, %v9235_v2, %v1031_v13  ;;  %v1047_v37 = vsel %vm403_vm12, %v1014_v30, %v1015_v12  ;;  %v9257_v40 = vld [vmem:[#allocation116_spill] sm:$0xff]  ;;  %v9260_v2 = vld [vmem:[#allocation119_spill] sm:$0xff]  ;;  %v9267_v7 = vld [vmem:[#allocation122_spill] sm:$0xff] }
 0x2a7   :  { %v6660_v60 = vpop.permute.xlu1 %1285  ;;  %v1324_v59 = vsel %vm403_vm12, %v1291_v29, %v1292_v22  ;;  %v1340_v39 = vsel %vm403_vm12, %v1307_v47, %v1308_v46  ;;  %v737_v31 = vsel %vm403_vm12, %v704_v50, %v705_v5  ;;  %v721_v28 = vrot.slane %v9257_v40, 4  ;;  %v9262_v22 = vld [vmem:[#allocation181_spill] sm:$0xff]  ;;  %v9263_v46 = vld [vmem:[#allocation120_spill] sm:$0xff] }
 0x2a8   :  { %9252 = vst [vmem:[#allocation67_spill] sm:$0xff] %v6660_v60  ;;  %v6682_v60 = vadd.f32 %v1337_v61, %v6448_v35  ;;  %v752_v35 = vsel %vm723_vm14, %v9233_v17, %v751_v58  ;;  %v720_v17 = vrot.slane %v9258_v34, 4  ;;  %v1001_v61 = vrot.slane %v9259_v25, 4 }
 0x2a9   :  { %2444 = vrot.lane.b32.xlu0 %v9255_v43, %s4469_s15  ;;  %v1000_v49 = vrot.slane %v9260_v2, 4  ;;  %v6715_v26 = vpop.permute.xlu0 %1551  ;;  %v6718_v58 = vadd.f32 %v736_v38, %v6464_v41  ;;  %v6722_v13 = vadd.f32 %v9232_v55, %v6468_v57  ;;  %v6725_v12 = vadd.f32 %v752_v35, %v6497_v1  ;;  %v9264_v55 = vld [vmem:[#allocation121_spill] sm:$0xff]  ;;  %v9265_v1 = vld [vmem:[#allocation180_spill] sm:$0xff]  ;;  %v9268_v35 = vld [vmem:[#allocation123_spill] sm:$0xff] }
 0x2aa   :  { %9261 = vst [vmem:[#allocation69_spill] sm:$0xff] %v6715_v26  ;;  %v6729_v30 = vadd.f32 %v9234_v18, %v6501_v33  ;;  %2478 = vrot.lane.b32.xlu1 %v9262_v22, %s4469_s15  ;;  %v6734_v29 = vadd.f32 %v1032_v42, %v6511_v54  ;;  %v6738_v41 = vadd.f32 %v9243_v27, %v6505_v20  ;;  %v1017_v57 = vrot.slane %v9263_v46, 4  ;;  %v9274_v22 = vld [vmem:[#allocation37_spill] sm:$0xff] }
 0x2ab   :  { %v6709_v11 = vpop.permute.xlu1 %1553  ;;  %v1016_v47 = vrot.slane %v9264_v55, 4  ;;  %v1048_v33 = vsel %vm1023_vm15, %v9244_v23, %v1047_v37  ;;  %v1325_v18 = vsel %vm1320_vm0, %v9246_v24, %v1324_v59  ;;  %v1341_v54 = vsel %vm1320_vm0, %v9249_v16, %v1340_v39  ;;  %v9270_v24 = vld [vmem:[#allocation124_spill] sm:$0xff]  ;;  %v9271_v37 = vld [vmem:[#allocation125_spill] sm:$0xff]  ;;  %v9272_v59 = vld [vmem:[#allocation126_spill] sm:$0xff] }
 0x2ac   :  { %9256 = vst [vmem:[#allocation68_spill] sm:$0xff] %v6709_v11  ;;  %v738_v20 = vsel %vm723_vm14, %v9251_v9, %v737_v31  ;;  %v753_v5 = vsel %vm403_vm12, %v720_v17, %v721_v28  ;;  %v1033_v50 = vsel %vm403_vm12, %v1000_v49, %v1001_v61  ;;  %v1294_v38 = vrot.slane %v9267_v7, 4  ;;  %v9273_v9 = vld [vmem:[#allocation127_spill] sm:$0xff] }
 0x2ad   :  { %2476 = vrot.lane.b32.xlu0 %v9265_v1, %s4469_s15  ;;  %v1293_v23 = vrot.slane %v9268_v35, 4  ;;  %v6758_v42 = vpop.permute.xlu0 %1583  ;;  %v1310_v43 = vrot.slane %v9270_v24, 4  ;;  %v1309_v16 = vrot.slane %v9271_v37, 4  ;;  %v1596_v39 = vrot.slane %v9272_v59, 4  ;;  %v9275_v61 = vld [vmem:[#allocation143_spill] sm:$0xff] }
 0x2ae   :  { %9269 = vst [vmem:[#allocation71_spill] sm:$0xff] %v6758_v42  ;;  %v1595_v31 = vrot.slane %v9273_v9, 4  ;;  %1861 = vrot.lane.b32.xlu1 %v9274_v22, %s4467_s19  ;;  %v6767_v28 = vadd.f32 %v1048_v33, %v6514_v48  ;;  %v6771_v17 = vadd.f32 %v9245_v45, %v6518_v21  ;;  %v6775_v49 = vadd.f32 %v9248_v4, %v9275_v61  ;;  %v9276_v42 = vld [vmem:[#allocation36_spill] sm:$0xff]  ;;  %v9279_v48 = vld [vmem:[#allocation57_spill] sm:$0xff]  ;;  %v9281_v21 = vld [vmem:[#allocation62_spill] sm:$0xff] }
 0x2af   :  { %v6752_v27 = vpop.permute.xlu1 %1585  ;;  %v1049_v1 = vsel %vm403_vm12, %v1016_v47, %v1017_v57  ;;  %v9278_v22 = vld [vmem:[#allocation60_spill] sm:$0xff]  ;;  %v6788_v33 = vadd.f32 %v9250_v6, %v9279_v48  ;;  %v6792_v45 = vadd.f32 %v9257_v40, %v9281_v21  ;;  %v9284_v57 = vld [vmem:[#allocation61_spill] sm:$0xff]  ;;  %v1034_v6 = vsel %vm1023_vm15, %v9260_v2, %v1033_v50  ;;  %v9293_v50 = vld [vmem:[#allocation131_spill] sm:$0xff] }
 0x2b0   :  { %9266 = vst [vmem:[#allocation70_spill] sm:$0xff] %v6752_v27  ;;  %v9277_v27 = vld [vmem:[#allocation56_spill] sm:$0xff]  ;;  %v6784_v11 = vadd.f32 %v1341_v54, %v9278_v22  ;;  %v6797_v47 = vadd.f32 %v738_v20, %v9284_v57  ;;  %v1050_v40 = vsel %vm1023_vm15, %v9264_v55, %v1049_v1  ;;  %v1326_v61 = vsel %vm403_vm12, %v1293_v23, %v1294_v38  ;;  %v9291_v48 = vld [vmem:[#allocation129_spill] sm:$0xff]  ;;  %v9292_v57 = vld [vmem:[#allocation130_spill] sm:$0xff] }
 0x2b1   :  { %1859 = vrot.lane.b32.xlu0 %v9276_v42, %s4467_s19  ;;  %v6781_v26 = vadd.f32 %v1325_v18, %v9277_v27  ;;  %9280 = vst [vmem:[#allocation148_spill] sm:$0xff] %v6788_v33  ;;  %9282 = vst [vmem:[#allocation209_spill] sm:$0xff] %v6792_v45  ;;  %v754_v18 = vsel %vm723_vm14, %v9258_v34, %v753_v5  ;;  %v9286_v27 = vld [vmem:[#allocation63_spill] sm:$0xff]  ;;  %v6807_v42 = vpop.permute.xlu0 %1843  ;;  %v1342_v20 = vsel %vm403_vm12, %v1309_v16, %v1310_v43  ;;  %v9290_v5 = vld [vmem:[#allocation128_spill] sm:$0xff] }
 0x2b2   :  { %9285 = vst [vmem:[#allocation212_spill] sm:$0xff] %v6797_v47  ;;  %v6803_v54 = vadd.f32 %v9259_v25, %v9286_v27  ;;  %9288 = vst [vmem:[#allocation169_spill] sm:$0xff] %v6807_v42  ;;  %v1627_v22 = vsel %vm403_vm12, %v1595_v31, %v1596_v39  ;;  %v9289_v34 = vld [vmem:[#allocation39_spill] sm:$0xff]  ;;  %v1598_v25 = vrot.slane %v9290_v5, 4  ;;  %v1597_v21 = vrot.slane %v9291_v48, 4  ;;  %v9294_v42 = vld [vmem:[#allocation38_spill] sm:$0xff] }
 0x2b3   :  { %v6794_v4 = vpop.permute.xlu1 %1845  ;;  %1893 = vrot.lane.b32.xlu1 %v9289_v34, %s4467_s19  ;;  %v1612_v2 = vrot.slane %v9292_v57, 4  ;;  %v1611_v27 = vrot.slane %v9293_v50, 4  ;;  %v9295_v55 = vld [vmem:[#allocation132_spill] sm:$0xff]  ;;  %v9296_v23 = vld [vmem:[#allocation133_spill] sm:$0xff]  ;;  %v9297_v16 = vld [vmem:[#allocation135_spill] sm:$0xff]  ;;  %v6836_v47 = vadd.f32 %v9263_v46, %v6608_v62  ;;  %v6845_v33 = vadd.f32 %v1050_v40, %v6618_v51 }
 0x2b4   :  { %9283 = vst [vmem:[#allocation211_spill] sm:$0xff] %v6794_v4  ;;  %9287 = vst [vmem:[#allocation170_spill] sm:$0xff] %v6803_v54  ;;  %v1614_v38 = vrot.slane %v9295_v55, 4  ;;  %v1613_v43 = vrot.slane %v9296_v23, 4  ;;  %v1003_v39 = vrot.slane %v9297_v16, 4  ;;  %v9298_v31 = vld [vmem:[#allocation139_spill] sm:$0xff]  ;;  %v6832_v54 = vadd.f32 %v1034_v6, %v6604_v3 }
 0x2b5   :  { %1891 = vrot.lane.b32.xlu0 %v9294_v42, %s4467_s19  ;;  %v1002_v1 = vrot.slane %v9298_v31, 4  ;;  %v9300_v4 = vld [vmem:[#allocation147_spill] sm:$0xff]  ;;  %9302 = vst [vmem:[#allocation74_spill] sm:$0xff] %v6836_v47  ;;  %v6840_v42 = vadd.f32 %v9267_v7, %v6612_v14  ;;  %v6842_v45 = vpop.permute.xlu0 %1875  ;;  %9305 = vst [vmem:[#allocation77_spill] sm:$0xff] %v6845_v33  ;;  %v9307_v3 = vld [vmem:[#allocation145_spill] sm:$0xff]  ;;  %v1343_v62 = vsel %vm1320_vm0, %v9271_v37, %v1342_v20  ;;  %s4470_s19 = smov 113  }
 0x2b6   :  { %v6829_v56 = vadd.f32 %v754_v18, %v9300_v4  ;;  %9301 = vst [vmem:[#allocation73_spill] sm:$0xff] %v6832_v54  ;;  %9304 = vst [vmem:[#allocation76_spill] sm:$0xff] %v6842_v45  ;;  %v1327_v4 = vsel %vm1320_vm0, %v9268_v35, %v1326_v61  ;;  %v9306_v18 = vld [vmem:[#allocation144_spill] sm:$0xff]  ;;  %v1018_v6 = vrot.slane %v9307_v3, 4  ;;  %v1629_v14 = vsel %vm1628_vm1, %v9273_v9, %v1627_v22  ;;  %v9309_v7 = vld [vmem:[#allocation155_spill] sm:$0xff] }
 0x2b7   :  { %v6826_v34 = vpop.permute.xlu1 %1877  ;;  %9303 = vst [vmem:[#allocation75_spill] sm:$0xff] %v6840_v42  ;;  %v9308_v54 = vld [vmem:[#allocation156_spill] sm:$0xff]  ;;  %v1630_v46 = vsel %vm403_vm12, %v1597_v21, %v1598_v25  ;;  %v1644_v51 = vsel %vm403_vm12, %v1611_v27, %v1612_v2  ;;  %v1646_v35 = vsel %vm403_vm12, %v1613_v43, %v1614_v38  ;;  %v1035_v40 = vsel %vm403_vm12, %v1002_v1, %v1003_v39  ;;  %v9310_v61 = vld [vmem:[#allocation153_spill] sm:$0xff]  ;;  %v9313_v37 = vld [vmem:[#allocation167_spill] sm:$0xff] }
 0x2b8   :  { %9299 = vst [vmem:[#allocation72_spill] sm:$0xff] %v6826_v34  ;;  %v1019_v34 = vrot.slane %v9306_v18, 4  ;;  %2150 = vrot.lane.b32.xlu1 %v9308_v54, %s4468_s10  ;;  %v1296_v45 = vrot.slane %v9310_v61, 4  ;;  %v9311_v54 = vld [vmem:[#allocation157_spill] sm:$0xff]  ;;  %v1312_v20 = vrot.slane %v9313_v37, 4  ;;  %v9314_v9 = vld [vmem:[#allocation172_spill] sm:$0xff]  ;;  %v6874_v38 = vadd.f32 %v1327_v4, %v6621_v36 }
 0x2b9   :  { %2148 = vrot.lane.b32.xlu0 %v9309_v7, %s4468_s10  ;;  %v1295_v33 = vrot.slane %v9311_v54, 4  ;;  %v1311_v22 = vrot.slane %v9314_v9, 4  ;;  %v9315_v25 = vld [vmem:[#allocation182_spill] sm:$0xff]  ;;  %v6871_v47 = vpop.permute.xlu0 %2128  ;;  %v6878_v43 = vadd.f32 %v9270_v24, %v6625_v44  ;;  %v6882_v39 = vadd.f32 %v9272_v59, %v6633_v63  ;;  %v9318_v7 = vld [vmem:[#allocation159_spill] sm:$0xff] }
 0x2ba   :  { %v1600_v21 = vrot.slane %v9315_v25, 4  ;;  %v9316_v2 = vld [vmem:[#allocation186_spill] sm:$0xff]  ;;  %9317 = vst [vmem:[#allocation79_spill] sm:$0xff] %v6871_v47  ;;  %v1051_v1 = vsel %vm403_vm12, %v1018_v6, %v1019_v34  ;;  %v6891_v47 = vadd.f32 %v1629_v14, %v6666_v8  ;;  %v6895_v36 = vadd.f32 %v9290_v5, %v6670_v19  ;;  %v9323_v6 = vld [vmem:[#allocation203_spill] sm:$0xff] }
 0x2bb   :  { %v6865_v42 = vpop.permute.xlu1 %2130  ;;  %v1599_v27 = vrot.slane %v9316_v2, 4  ;;  %v1631_v44 = vsel %vm1628_vm1, %v9291_v48, %v1630_v46  ;;  %v9319_v63 = vld [vmem:[#allocation158_spill] sm:$0xff]  ;;  %v6903_v24 = vadd.f32 %v9292_v57, %v6674_v10  ;;  %v1647_v8 = vsel %vm1628_vm1, %v9296_v23, %v1646_v35 }
 0x2bc   :  { %9312 = vst [vmem:[#allocation78_spill] sm:$0xff] %v6865_v42  ;;  %2182 = vrot.lane.b32.xlu1 %v9318_v7, %s4468_s10  ;;  %v6888_v42 = vadd.f32 %v1343_v62, %v6663_v32  ;;  %v1645_v32 = vsel %vm1628_vm1, %v9293_v50, %v1644_v51  ;;  %v1036_v19 = vsel %vm1023_vm15, %v9298_v31, %v1035_v40  ;;  %v9322_v50 = vld [vmem:[#allocation198_spill] sm:$0xff]  ;;  %v1615_v23 = vrot.slane %v9323_v6, 4  ;;  %v9325_v31 = vld [vmem:[#allocation207_spill] sm:$0xff]  ;;  %v9326_v51 = vld [vmem:[#allocation184_spill] sm:$0xff] }
 0x2bd   :  { %2180 = vrot.lane.b32.xlu0 %v9319_v63, %s4468_s10  ;;  %v1052_v5 = vsel %vm1023_vm15, %v9307_v3, %v1051_v1  ;;  %v1328_v48 = vsel %vm403_vm12, %v1295_v33, %v1296_v45  ;;  %v1344_v34 = vsel %vm403_vm12, %v1311_v22, %v1312_v20  ;;  %v1632_v10 = vsel %vm403_vm12, %v1599_v27, %v1600_v21  ;;  %v6918_v57 = vpop.permute.xlu0 %2132  ;;  %v9324_v62 = vld [vmem:[#allocation206_spill] sm:$0xff]  ;;  %v9327_v3 = vld [vmem:[#allocation208_spill] sm:$0xff]  ;;  %v9330_v22 = vld [vmem:[#allocation215_spill] sm:$0xff] }
 0x2be   :  { %9321 = vst [vmem:[#allocation175_spill] sm:$0xff] %v6918_v57  ;;  %v1616_v4 = vrot.slane %v9322_v50, 4  ;;  %v1005_v14 = vrot.slane %v9324_v62, 4  ;;  %v1004_v46 = vrot.slane %v9325_v31, 4  ;;  %v1021_v35 = vrot.slane %v9327_v3, 4  ;;  %v9328_v33 = vld [vmem:[#allocation210_spill] sm:$0xff] }
 0x2bf   :  { %v6911_v59 = vpop.permute.xlu1 %2134  ;;  %v1020_v45 = vrot.slane %v9328_v33, 4  ;;  %v9329_v40 = vld [vmem:[#allocation214_spill] sm:$0xff]  ;;  %v1297_v21 = vrot.slane %v9330_v22, 4  ;;  %v9331_v27 = vld [vmem:[#allocation183_spill] sm:$0xff]  ;;  %v6933_v1 = vadd.f32 %v1631_v44, %v6679_v53  ;;  %v6936_v7 = vadd.f32 %v1645_v32, %v6682_v60 }
 0x2c0   :  { %9320 = vst [vmem:[#allocation213_spill] sm:$0xff] %v6911_v59  ;;  %2450 = vrot.lane.b32.xlu1 %v9326_v51, %s4469_s15  ;;  %v1298_v20 = vrot.slane %v9329_v40, 4  ;;  %v6940_v63 = vadd.f32 %v9295_v55, %v6686_v15  ;;  %v6944_v51 = vadd.f32 %v9297_v16, %v6690_v0  ;;  %v6949_v59 = vadd.f32 %v1647_v8, %v6695_v52  ;;  %v9337_v8 = vld [vmem:[#allocation40_spill] sm:$0xff] }
 0x2c1   :  { %2448 = vrot.lane.b32.xlu0 %v9331_v27, %s4469_s15  ;;  %v6952_v27 = vadd.f32 %v1036_v19, %v6718_v58  ;;  %v6956_v53 = vadd.f32 %v9306_v18, %v6722_v13  ;;  %v6960_v60 = vadd.f32 %v9310_v61, %v6729_v30  ;;  %v6962_v15 = vpop.permute.xlu0 %2160  ;;  %v6965_v0 = vadd.f32 %v1052_v5, %v6725_v12  ;;  %v9333_v13 = vld [vmem:[#allocation187_spill] sm:$0xff]  ;;  %v9334_v61 = vld [vmem:[#allocation185_spill] sm:$0xff] }
 0x2c2   :  { %9332 = vst [vmem:[#allocation174_spill] sm:$0xff] %v6962_v15  ;;  %v1329_v52 = vsel %vm1320_vm0, %v9311_v54, %v1328_v48  ;;  %v1345_v58 = vsel %vm1320_vm0, %v9314_v9, %v1344_v34  ;;  %v1633_v55 = vsel %vm1628_vm1, %v9316_v2, %v1632_v10  ;;  %v1648_v30 = vsel %vm403_vm12, %v1615_v23, %v1616_v4  ;;  %v9335_v54 = vld [vmem:[#allocation221_spill] sm:$0xff]  ;;  %v9336_v9 = vld [vmem:[#allocation222_spill] sm:$0xff] }
 0x2c3   :  { %v6946_v57 = vpop.permute.xlu1 %2162  ;;  %v1037_v16 = vsel %vm403_vm12, %v1004_v46, %v1005_v14  ;;  %v1053_v18 = vsel %vm403_vm12, %v1020_v45, %v1021_v35  ;;  %v1330_v12 = vsel %vm403_vm12, %v1297_v21, %v1298_v20  ;;  %v1314_v44 = vrot.slane %v9335_v54, 4  ;;  %v9338_v19 = vld [vmem:[#allocation41_spill] sm:$0xff]  ;;  %v9341_v35 = vld [vmem:[#allocation42_spill] sm:$0xff] }
 0x2c4   :  { %2482 = vrot.lane.b32.xlu1 %v9333_v13, %s4469_s15  ;;  %v1313_v32 = vrot.slane %v9336_v9, 4  ;;  %v1602_v2 = vrot.slane %v9337_v8, 4  ;;  %v1601_v5 = vrot.slane %v9338_v19, 4  ;;  %v6988_v34 = vadd.f32 %v1329_v52, %v6734_v29  ;;  %v9345_v52 = vld [vmem:[#allocation136_spill] sm:$0xff] }
 0x2c5   :  { %2480 = vrot.lane.b32.xlu0 %v9334_v61, %s4469_s15  ;;  %v6992_v10 = vadd.f32 %v9313_v37, %v6738_v41  ;;  %v6995_v4 = vadd.f32 %v1345_v58, %v6767_v28  ;;  %v6999_v23 = vadd.f32 %v9315_v25, %v6771_v17  ;;  %v7001_v14 = vpop.permute.xlu0 %2164  ;;  %v7004_v46 = vadd.f32 %v1633_v55, %v6781_v26  ;;  %v9342_v37 = vld [vmem:[#allocation43_spill] sm:$0xff]  ;;  %v9343_v28 = vld [vmem:[#allocation161_spill] sm:$0xff]  ;;  %v9346_v55 = vld [vmem:[#allocation134_spill] sm:$0xff] }
 0x2c6   :  { %9340 = vst [vmem:[#allocation81_spill] sm:$0xff] %v7001_v14  ;;  %v7008_v29 = vadd.f32 %v9322_v50, %v6775_v49  ;;  %v1618_v41 = vrot.slane %v9341_v35, 4  ;;  %v1617_v45 = vrot.slane %v9342_v37, 4  ;;  %v1649_v17 = vsel %vm1628_vm1, %v9323_v6, %v1648_v30  ;;  %v9344_v50 = vld [vmem:[#allocation160_spill] sm:$0xff]  ;;  %v9355_v14 = vld [vmem:[#allocation163_spill] sm:$0xff] }
 0x2c7   :  { %v6985_v48 = vpop.permute.xlu1 %2166  ;;  %v1038_v25 = vsel %vm1023_vm15, %v9325_v31, %v1037_v16  ;;  %v1054_v26 = vsel %vm1023_vm15, %v9328_v33, %v1053_v18  ;;  %v1331_v49 = vsel %vm1320_vm0, %v9330_v22, %v1330_v12  ;;  %v1346_v20 = vsel %vm403_vm12, %v1313_v32, %v1314_v44  ;;  %v9348_v31 = vld [vmem:[#allocation138_spill] sm:$0xff]  ;;  %v9349_v16 = vld [vmem:[#allocation44_spill] sm:$0xff]  ;;  %v9351_v22 = vld [vmem:[#allocation47_spill] sm:$0xff] }
 0x2c8   :  { %9339 = vst [vmem:[#allocation80_spill] sm:$0xff] %v6985_v48  ;;  %2154 = vrot.lane.b32.xlu1 %v9343_v28, %s4468_s10  ;;  %v1634_v21 = vsel %vm403_vm12, %v1601_v5, %v1602_v2  ;;  %v1896_v58 = vrot.slane %v9345_v52, 4  ;;  %v1895_v6 = vrot.slane %v9346_v55, 4  ;;  %v1898_v30 = vrot.slane %v9348_v31, 4  ;;  %v9350_v18 = vld [vmem:[#allocation46_spill] sm:$0xff]  ;;  %v9353_v32 = vld [vmem:[#allocation148_spill] sm:$0xff] }
 0x2c9   :  { %2152 = vrot.lane.b32.xlu0 %v9344_v50, %s4468_s10  ;;  %v1897_v33 = vrot.slane %v9349_v16, 4  ;;  %v1912_v61 = vrot.slane %v9350_v18, 4  ;;  %v1911_v12 = vrot.slane %v9351_v22, 4  ;;  %v7034_v28 = vpop.permute.xlu0 %1555  ;;  %v7037_v44 = vadd.f32 %v1649_v17, %v6784_v11  ;;  %v9354_v5 = vld [vmem:[#allocation209_spill] sm:$0xff]  ;;  %v9356_v48 = vld [vmem:[#allocation212_spill] sm:$0xff]  ;;  %v9357_v11 = vld [vmem:[#allocation170_spill] sm:$0xff] }
 0x2ca   :  { %9352 = vst [vmem:[#allocation83_spill] sm:$0xff] %v7034_v28  ;;  %v7041_v2 = vadd.f32 %v9324_v62, %v9353_v32  ;;  %v7045_v50 = vadd.f32 %v9327_v3, %v9354_v5  ;;  %v7051_v15 = vadd.f32 %v1038_v25, %v9356_v48  ;;  %v7054_v28 = vadd.f32 %v1054_v26, %v6829_v56  ;;  %v9358_v62 = vld [vmem:[#allocation74_spill] sm:$0xff] }
 0x2cb   :  { %v7028_v13 = vpop.permute.xlu1 %1557  ;;  %v7058_v17 = vadd.f32 %v9329_v40, %v9357_v11  ;;  %v7062_v32 = vadd.f32 %v9335_v54, %v9358_v62  ;;  %v9359_v3 = vld [vmem:[#allocation162_spill] sm:$0xff]  ;;  %v1347_v48 = vsel %vm1320_vm0, %v9336_v9, %v1346_v20  ;;  %v1635_v40 = vsel %vm1628_vm1, %v9338_v19, %v1634_v21  ;;  %v9365_v9 = vld [vmem:[#allocation137_spill] sm:$0xff]  ;;  %v9368_v19 = vld [vmem:[#allocation51_spill] sm:$0xff] }
 0x2cc   :  { %9347 = vst [vmem:[#allocation82_spill] sm:$0xff] %v7028_v13  ;;  %v1650_v13 = vsel %vm403_vm12, %v1617_v45, %v1618_v41  ;;  %2186 = vrot.lane.b32.xlu1 %v9355_v14, %s4468_s10  ;;  %v9360_v41 = vld [vmem:[#allocation73_spill] sm:$0xff]  ;;  %v9361_v14 = vld [vmem:[#allocation75_spill] sm:$0xff]  ;;  %v1927_v26 = vsel %vm403_vm12, %v1895_v6, %v1896_v58  ;;  %v1944_v5 = vsel %vm403_vm12, %v1911_v12, %v1912_v61  ;;  %v1914_v20 = vrot.slane %v9365_v9, 4  ;;  %v9372_v6 = vld [vmem:[#allocation140_spill] sm:$0xff] }
 0x2cd   :  { %2184 = vrot.lane.b32.xlu0 %v9359_v3, %s4468_s10  ;;  %v7067_v45 = vadd.f32 %v1331_v49, %v9360_v41  ;;  %v7073_v56 = vadd.f32 %v9337_v8, %v9361_v14  ;;  %v1651_v54 = vsel %vm1628_vm1, %v9342_v37, %v1650_v13  ;;  %v1930_v49 = vsel %vm403_vm12, %v1897_v33, %v1898_v30  ;;  %v7084_v11 = vpop.permute.xlu0 %1587  ;;  %v9366_v8 = vld [vmem:[#allocation49_spill] sm:$0xff]  ;;  %v9367_v3 = vld [vmem:[#allocation50_spill] sm:$0xff]  ;;  %v9373_v33 = vld [vmem:[#allocation52_spill] sm:$0xff] }
 0x2ce   :  { %9364 = vst [vmem:[#allocation84_spill] sm:$0xff] %v7084_v11  ;;  %v1913_v62 = vrot.slane %v9366_v8, 4  ;;  %v1300_v41 = vrot.slane %v9367_v3, 4  ;;  %v1299_v21 = vrot.slane %v9368_v19, 4  ;;  %v9369_v14 = vld [vmem:[#allocation189_spill] sm:$0xff]  ;;  %v7097_v58 = vadd.f32 %v9341_v35, %v6878_v43  ;;  %v9374_v12 = vld [vmem:[#allocation188_spill] sm:$0xff] }
 0x2cf   :  { %9362 = vst [vmem:[#allocation173_spill] sm:$0xff] %v7073_v56  ;;  %v7077_v25 = vpop.permute.xlu1 %1589  ;;  %v9370_v37 = vld [vmem:[#allocation77_spill] sm:$0xff]  ;;  %v1316_v30 = vrot.slane %v9372_v6, 4  ;;  %v1315_v61 = vrot.slane %v9373_v33, 4  ;;  %v7104_v11 = vadd.f32 %v1635_v40, %v6874_v38  ;;  %v7113_v43 = vadd.f32 %v1651_v54, %v6888_v42  ;;  %v9381_v42 = vld [vmem:[#allocation142_spill] sm:$0xff] }
 0x2d0   :  { %9363 = vst [vmem:[#allocation171_spill] sm:$0xff] %v7077_v25  ;;  %2454 = vrot.lane.b32.xlu1 %v9369_v14, %s4469_s15  ;;  %v7093_v13 = vadd.f32 %v1347_v48, %v9370_v37  ;;  %v1929_v14 = vsel %vm1928_vm2, %v9346_v55, %v1927_v26  ;;  %v9376_v25 = vld [vmem:[#allocation53_spill] sm:$0xff]  ;;  %v9377_v37 = vld [vmem:[#allocation54_spill] sm:$0xff]  ;;  %v7117_v35 = vadd.f32 %v9345_v52, %v6882_v39  ;;  %v1619_v54 = vrot.slane %v9381_v42, 4 }
 0x2d1   :  { %2452 = vrot.lane.b32.xlu0 %v9374_v12, %s4469_s15  ;;  %9375 = vst [vmem:[#allocation86_spill] sm:$0xff] %v7104_v11  ;;  %v1604_v48 = vrot.slane %v9376_v25, 4  ;;  %9379 = vst [vmem:[#allocation177_spill] sm:$0xff] %v7113_v43  ;;  %v1931_v38 = vsel %vm1928_vm2, %v9349_v16, %v1930_v49  ;;  %v1945_v40 = vsel %vm1928_vm2, %v9351_v22, %v1944_v5  ;;  %v7123_v55 = vpop.permute.xlu0 %1847  ;;  %v9382_v43 = vld [vmem:[#allocation191_spill] sm:$0xff]  ;;  %v9383_v49 = vld [vmem:[#allocation190_spill] sm:$0xff] }
 0x2d2   :  { %9371 = vst [vmem:[#allocation85_spill] sm:$0xff] %v7093_v13  ;;  %v1603_v13 = vrot.slane %v9377_v37, 4  ;;  %v1946_v26 = vsel %vm403_vm12, %v1913_v62, %v1914_v20  ;;  %v1332_v12 = vsel %vm403_vm12, %v1299_v21, %v1300_v41  ;;  %v7132_v39 = vadd.f32 %v1929_v14, %v6891_v47  ;;  %v9384_v62 = vld [vmem:[#allocation58_spill] sm:$0xff]  ;;  %v9385_v41 = vld [vmem:[#allocation59_spill] sm:$0xff] }
 0x2d3   :  { %v7110_v56 = vpop.permute.xlu1 %1849  ;;  %v7136_v52 = vadd.f32 %v9348_v31, %v6895_v36  ;;  %v7140_v16 = vadd.f32 %v9350_v18, %v6903_v24  ;;  %v1348_v22 = vsel %vm403_vm12, %v1315_v61, %v1316_v30  ;;  %v7146_v5 = vadd.f32 %v1931_v38, %v6933_v1  ;;  %v9387_v61 = vld [vmem:[#allocation64_spill] sm:$0xff] }
 0x2d4   :  { %9378 = vst [vmem:[#allocation87_spill] sm:$0xff] %v7110_v56  ;;  %v9380_v56 = vld [vmem:[#allocation55_spill] sm:$0xff]  ;;  %2486 = vrot.lane.b32.xlu1 %v9382_v43, %s4469_s15  ;;  %v7149_v20 = vadd.f32 %v1945_v40, %v6936_v7  ;;  %v7153_v47 = vadd.f32 %v9365_v9, %v6940_v63  ;;  %v1636_v36 = vsel %vm403_vm12, %v1603_v13, %v1604_v48  ;;  %v1900_v1 = vrot.slane %v9384_v62, 4  ;;  %v9386_v13 = vld [vmem:[#allocation146_spill] sm:$0xff]  ;;  %v9389_v43 = vld [vmem:[#allocation65_spill] sm:$0xff] }
 0x2d5   :  { %v1620_v11 = vrot.slane %v9380_v56, 4  ;;  %2484 = vrot.lane.b32.xlu0 %v9383_v49, %s4469_s15  ;;  %v1947_v24 = vsel %vm1928_vm2, %v9366_v8, %v1946_v26  ;;  %v1333_v18 = vsel %vm1320_vm0, %v9368_v19, %v1332_v12  ;;  %v1899_v21 = vrot.slane %v9385_v41, 4  ;;  %v7164_v7 = vpop.permute.xlu0 %1879  ;;  %v9388_v8 = vld [vmem:[#allocation165_spill] sm:$0xff]  ;;  %v9390_v40 = vld [vmem:[#allocation66_spill] sm:$0xff] }
 0x2d6   :  { %v1349_v63 = vsel %vm1320_vm0, %v9373_v33, %v1348_v22  ;;  %v1916_v30 = vrot.slane %v9386_v13, 4  ;;  %v1915_v14 = vrot.slane %v9387_v61, 4  ;;  %v7175_v19 = vadd.f32 %v9367_v3, %v6944_v51 }
 0x2d7   :  { %v7156_v31 = vpop.permute.xlu1 %1881  ;;  %v1652_v9 = vsel %vm403_vm12, %v1619_v54, %v1620_v11  ;;  %v1637_v48 = vsel %vm1628_vm1, %v9377_v37, %v1636_v36  ;;  %v1302_v38 = vrot.slane %v9389_v43, 4  ;;  %v1301_v33 = vrot.slane %v9390_v40, 4  ;;  %v9391_v11 = vld [vmem:[#allocation164_spill] sm:$0xff] }
 0x2d8   :  { %2158 = vrot.lane.b32.xlu1 %v9388_v8, %s4468_s10  ;;  %v7184_v26 = vadd.f32 %v1947_v24, %v6949_v59  ;;  %v7187_v12 = vadd.f32 %v1333_v18, %v6952_v27  ;;  %v7191_v51 = vadd.f32 %v9372_v6, %v6956_v53  ;;  %v7195_v3 = vadd.f32 %v9376_v25, %v6960_v60  ;;  %v9395_v25 = vld [vmem:[#allocation67_spill] sm:$0xff]  ;;  %v9397_v24 = vld [vmem:[#allocation168_spill] sm:$0xff] }
 0x2d9   :  { %2156 = vrot.lane.b32.xlu0 %v9391_v11, %s4468_s10  ;;  %v7200_v54 = vadd.f32 %v1349_v63, %v6965_v0  ;;  %v7204_v59 = vadd.f32 %v9380_v56, %v6992_v10  ;;  %v1653_v27 = vsel %vm1628_vm1, %v9381_v42, %v1652_v9  ;;  %v1932_v22 = vsel %vm403_vm12, %v1899_v21, %v1900_v1  ;;  %v7209_v53 = vpop.permute.xlu0 %2136  ;;  %v9396_v0 = vld [vmem:[#allocation149_spill] sm:$0xff]  ;;  %v9399_v42 = vld [vmem:[#allocation68_spill] sm:$0xff]  ;;  %v9401_v21 = vld [vmem:[#allocation166_spill] sm:$0xff] }
 0x2da   :  { %9392 = vst [vmem:[#allocation88_spill] sm:$0xff] %v7195_v3  ;;  %v7212_v6 = vadd.f32 %v1637_v48, %v6988_v34  ;;  %v1948_v60 = vsel %vm403_vm12, %v1915_v14, %v1916_v30  ;;  %v1318_v49 = vrot.slane %v9395_v25, 4  ;;  %v1317_v36 = vrot.slane %v9396_v0, 4  ;;  %v9400_v1 = vld [vmem:[#allocation69_spill] sm:$0xff]  ;;  %v9403_v30 = vld [vmem:[#allocation70_spill] sm:$0xff] }
 0x2db   :  { %v7197_v37 = vpop.permute.xlu1 %2138  ;;  %9393 = vst [vmem:[#allocation89_spill] sm:$0xff] %v7204_v59  ;;  %v7221_v10 = vadd.f32 %v9384_v62, %v6999_v23  ;;  %v1334_v56 = vsel %vm403_vm12, %v1301_v33, %v1302_v38  ;;  %v1606_v18 = vrot.slane %v9399_v42, 4  ;;  %v1605_v34 = vrot.slane %v9400_v1, 4  ;;  %v9404_v23 = vld [vmem:[#allocation71_spill] sm:$0xff] }
 0x2dc   :  { %9394 = vst [vmem:[#allocation90_spill] sm:$0xff] %v7212_v6  ;;  %2190 = vrot.lane.b32.xlu1 %v9397_v24, %s4468_s10  ;;  %v7229_v63 = vadd.f32 %v1653_v27, %v6995_v4  ;;  %v1933_v9 = vsel %vm1928_vm2, %v9385_v41, %v1932_v22  ;;  %v1622_v14 = vrot.slane %v9403_v30, 4  ;;  %v1621_v62 = vrot.slane %v9404_v23, 4  ;;  %v9406_v33 = vld [vmem:[#allocation211_spill] sm:$0xff]  ;;  %v9407_v4 = vld [vmem:[#allocation169_spill] sm:$0xff] }
 0x2dd   :  { %9398 = vst [vmem:[#allocation91_spill] sm:$0xff] %v7221_v10  ;;  %2188 = vrot.lane.b32.xlu0 %v9401_v21, %s4468_s10  ;;  %v7239_v48 = vadd.f32 %v9386_v13, %v7008_v29  ;;  %v1949_v38 = vsel %vm1928_vm2, %v9387_v61, %v1948_v60  ;;  %v1902_v11 = vrot.slane %v9406_v33, 4  ;;  %v1901_v27 = vrot.slane %v9407_v4, 4  ;;  %v7245_v24 = vpop.permute.xlu0 %2168  ;;  %v9408_v21 = vld [vmem:[#allocation72_spill] sm:$0xff]  ;;  %v9410_v29 = vld [vmem:[#allocation193_spill] sm:$0xff]  ;;  %v9411_v60 = vld [vmem:[#allocation78_spill] sm:$0xff] }
 0x2de   :  { %9402 = vst [vmem:[#allocation176_spill] sm:$0xff] %v7229_v63  ;;  %v1335_v41 = vsel %vm1320_vm0, %v9390_v40, %v1334_v56  ;;  %v1350_v22 = vsel %vm403_vm12, %v1317_v36, %v1318_v49  ;;  %v1918_v10 = vrot.slane %v9408_v21, 4  ;;  %v9409_v63 = vld [vmem:[#allocation76_spill] sm:$0xff]  ;;  %v7255_v13 = vadd.f32 %v1933_v9, %v7004_v46  ;;  %v9412_v6 = vld [vmem:[#allocation79_spill] sm:$0xff] }
 0x2df   :  { %v7235_v8 = vpop.permute.xlu1 %2170  ;;  %9405 = vst [vmem:[#allocation216_spill] sm:$0xff] %v7239_v48  ;;  %v1917_v59 = vrot.slane %v9409_v63, 4  ;;  %v1638_v61 = vsel %vm403_vm12, %v1605_v34, %v1606_v18  ;;  %v2193_v48 = vrot.slane %v9411_v60, 4  ;;  %v2192_v3 = vrot.slane %v9412_v6, 4  ;;  %v9413_v40 = vld [vmem:[#allocation192_spill] sm:$0xff] }
 0x2e0   :  { %2458 = vrot.lane.b32.xlu1 %v9410_v29, %s4469_s15  ;;  %v7263_v49 = vadd.f32 %v1949_v38, %v7037_v44  ;;  %v7267_v36 = vadd.f32 %v9389_v43, %v7041_v2  ;;  %v7271_v46 = vadd.f32 %v9395_v25, %v7045_v50  ;;  %v1654_v56 = vsel %vm403_vm12, %v1621_v62, %v1622_v14  ;;  %v9414_v14 = vld [vmem:[#allocation213_spill] sm:$0xff] }
 0x2e1   :  { %2456 = vrot.lane.b32.xlu0 %v9413_v40, %s4469_s15  ;;  %v7277_v34 = vadd.f32 %v1335_v41, %v7051_v15  ;;  %v1351_v9 = vsel %vm1320_vm0, %v9396_v0, %v1350_v22  ;;  %v7283_v44 = vadd.f32 %v9399_v42, %v7058_v17  ;;  %v1934_v2 = vsel %vm403_vm12, %v1901_v27, %v1902_v11  ;;  %v7286_v43 = vpop.permute.xlu0 %1559  ;;  %v9415_v15 = vld [vmem:[#allocation175_spill] sm:$0xff]  ;;  %v9417_v11 = vld [vmem:[#allocation174_spill] sm:$0xff]  ;;  %v9419_v22 = vld [vmem:[#allocation80_spill] sm:$0xff] }
 0x2e2   :  { %v1639_v50 = vsel %vm1628_vm1, %v9400_v1, %v1638_v61  ;;  %v1950_v25 = vsel %vm403_vm12, %v1917_v59, %v1918_v10  ;;  %v2195_v62 = vrot.slane %v9414_v14, 4  ;;  %v2194_v38 = vrot.slane %v9415_v15, 4  ;;  %v9416_v41 = vld [vmem:[#allocation195_spill] sm:$0xff]  ;;  %v9418_v1 = vld [vmem:[#allocation194_spill] sm:$0xff]  ;;  %v9420_v61 = vld [vmem:[#allocation81_spill] sm:$0xff] }
 0x2e3   :  { %v7274_v18 = vpop.permute.xlu1 %1561  ;;  %v1655_v17 = vsel %vm1628_vm1, %v9404_v23, %v1654_v56  ;;  %v2224_v0 = vsel %vm403_vm12, %v2192_v3, %v2193_v48  ;;  %v2209_v42 = vrot.slane %v6946_v57, 4  ;;  %v2208_v27 = vrot.slane %v9417_v11, 4  ;;  %v9421_v56 = vld [vmem:[#allocation173_spill] sm:$0xff] }
 0x2e4   :  { %2490 = vrot.lane.b32.xlu1 %v9416_v41, %s4469_s15  ;;  %v7303_v59 = vadd.f32 %v1351_v9, %v7054_v28  ;;  %v1935_v10 = vsel %vm1928_vm2, %v9407_v4, %v1934_v2  ;;  %v2211_v29 = vrot.slane %v9419_v22, 4  ;;  %v2210_v40 = vrot.slane %v9420_v61, 4  ;;  %v9422_v2 = vld [vmem:[#allocation85_spill] sm:$0xff] }
 0x2e5   :  { %2488 = vrot.lane.b32.xlu0 %v9418_v1, %s4469_s15  ;;  %v7312_v3 = vadd.f32 %v1639_v50, %v7067_v45  ;;  %v7316_v48 = vadd.f32 %v9403_v30, %v7062_v32  ;;  %v7320_v28 = vadd.f32 %v9406_v33, %v9421_v56  ;;  %v1951_v4 = vsel %vm1928_vm2, %v9409_v63, %v1950_v25  ;;  %v7324_v9 = vpop.permute.xlu0 %1591  ;;  %v9424_v33 = vld [vmem:[#allocation197_spill] sm:$0xff]  ;;  %v9425_v50 = vld [vmem:[#allocation86_spill] sm:$0xff]  ;;  %v9427_v56 = vld [vmem:[#allocation83_spill] sm:$0xff] }
 0x2e6   :  { %v7327_v41 = vadd.f32 %v1655_v17, %v9422_v2  ;;  %v7331_v45 = vadd.f32 %v9408_v21, %v7097_v58  ;;  %v2226_v32 = vsel %vm2225_vm3, %v9412_v6, %v2224_v0  ;;  %v2227_v30 = vsel %vm403_vm12, %v2194_v38, %v2195_v62  ;;  %v9426_v25 = vld [vmem:[#allocation82_spill] sm:$0xff]  ;;  %v9428_v58 = vld [vmem:[#allocation196_spill] sm:$0xff]  ;;  %v9429_v21 = vld [vmem:[#allocation177_spill] sm:$0xff] }
 0x2e7   :  { %v7309_v23 = vpop.permute.xlu1 %1593  ;;  %v7339_v1 = vadd.f32 %v1935_v10, %v9425_v50  ;;  %v2241_v63 = vsel %vm403_vm12, %v2208_v27, %v2209_v42  ;;  %v1608_v17 = vrot.slane %v9426_v25, 4  ;;  %v1607_v2 = vrot.slane %v9427_v56, 4  ;;  %v9430_v10 = vld [vmem:[#allocation171_spill] sm:$0xff] }
 0x2e8   :  { %9423 = vst [vmem:[#allocation45_spill] sm:$0xff] %v7331_v45  ;;  %2462 = vrot.lane.b32.xlu1 %v9424_v33, %s4469_s15  ;;  %v7347_v45 = vadd.f32 %v1951_v4, %v9429_v21  ;;  %v7351_v6 = vadd.f32 %v9411_v60, %v7117_v35  ;;  %v7355_v62 = vadd.f32 %v9414_v14, %v7136_v52  ;;  %v1624_v4 = vrot.slane %v9430_v10, 4  ;;  %v9431_v33 = vld [vmem:[#allocation84_spill] sm:$0xff]  ;;  %v9432_v14 = vld [vmem:[#allocation87_spill] sm:$0xff] }
 0x2e9   :  { %2460 = vrot.lane.b32.xlu0 %v9428_v58, %s4469_s15  ;;  %v2243_v38 = vsel %vm403_vm12, %v2210_v40, %v2211_v29  ;;  %v7361_v42 = vadd.f32 %v2226_v32, %v7132_v39  ;;  %v2228_v27 = vsel %vm2225_vm3, %v9415_v15, %v2227_v30  ;;  %v1623_v50 = vrot.slane %v9431_v33, 4  ;;  %v7367_v35 = vpop.permute.xlu0 %1851  ;;  %v9433_v40 = vld [vmem:[#allocation200_spill] sm:$0xff] }
 0x2ea   :  { %v7371_v52 = vadd.f32 %v6946_v57, %v7140_v16  ;;  %v2242_v60 = vsel %vm2225_vm3, %v9417_v11, %v2241_v63  ;;  %v1904_v29 = vrot.slane %v9432_v14, 4  ;;  %v1903_v39 = vrot.slane %v7123_v55, 4  ;;  %v9434_v16 = vld [vmem:[#allocation199_spill] sm:$0xff] }
 0x2eb   :  { %v7358_v0 = vpop.permute.xlu1 %1853  ;;  %v2244_v15 = vsel %vm2225_vm3, %v9420_v61, %v2243_v38  ;;  %v1640_v32 = vsel %vm403_vm12, %v1607_v2, %v1608_v17  ;;  %v1920_v30 = vrot.slane %v7156_v31, 4  ;;  %v1919_v57 = vrot.slane %v7164_v7, 4 }
 0x2ec   :  { %2494 = vrot.lane.b32.xlu1 %v9433_v40, %s4469_s15  ;;  %v7387_v11 = vadd.f32 %v2228_v27, %v7146_v5  ;;  %v7391_v63 = vadd.f32 %v9419_v22, %v7153_v47  ;;  %v2197_v58 = vrot.slane %v7197_v37, 4  ;;  %v2196_v61 = vrot.slane %v7209_v53, 4 }
 0x2ed   :  { %2492 = vrot.lane.b32.xlu0 %v9434_v16, %s4469_s15  ;;  %v7398_v17 = vadd.f32 %v2242_v60, %v7149_v20  ;;  %v1656_v2 = vsel %vm403_vm12, %v1623_v50, %v1624_v4  ;;  %v2213_v38 = vrot.slane %v7235_v8, 4  ;;  %v2212_v5 = vrot.slane %v7245_v24, 4  ;;  %v1884_v27 = vpop.permute.xlu0 %1883  ;;  %v9435_v60 = vld [vmem:[#allocation202_spill] sm:$0xff] }
 0x2ee   :  { %v7404_v40 = vadd.f32 %v2244_v15, %v7184_v26  ;;  %v7408_v47 = vadd.f32 %v9426_v25, %v7175_v19  ;;  %v1641_v22 = vsel %vm1628_vm1, %v9427_v56, %v1640_v32  ;;  %v1936_v20 = vsel %vm403_vm12, %v1903_v39, %v1904_v29  ;;  %v9436_v19 = vld [vmem:[#allocation201_spill] sm:$0xff] }
 0x2ef   :  { %v7395_v21 = vpop.permute.xlu1 %1885  ;;  %v7417_v4 = vadd.f32 %v9430_v10, %v7191_v51  ;;  %v1952_v50 = vsel %vm403_vm12, %v1919_v57, %v1920_v30  ;;  %v1610_v26 = vrot.slane %v7274_v18, 4  ;;  %v1609_v15 = vrot.slane %v7286_v43, 4 }
 0x2f0   :  { %2466 = vrot.lane.b32.xlu1 %v9435_v60, %s4469_s15  ;;  %v1657_v25 = vsel %vm1628_vm1, %v9431_v33, %v1656_v2  ;;  %v2229_v56 = vsel %vm403_vm12, %v2196_v61, %v2197_v58  ;;  %v1626_v29 = vrot.slane %v7309_v23, 4  ;;  %v1625_v39 = vrot.slane %v7324_v9, 4  ;;  %v9437_v2 = vld [vmem:[#allocation205_spill] sm:$0xff] }
 0x2f1   :  { %2464 = vrot.lane.b32.xlu0 %v9436_v19, %s4469_s15  ;;  %v1937_v10 = vsel %vm1928_vm2, %v7123_v55, %v1936_v20  ;;  %v2245_v32 = vsel %vm403_vm12, %v2212_v5, %v2213_v38  ;;  %v1906_v30 = vrot.slane %v7358_v0, 4  ;;  %v1905_v57 = vrot.slane %v7367_v35, 4  ;;  %v2141_v16 = vpop.permute.xlu0 %2140  ;;  %v9438_v38 = vld [vmem:[#allocation88_spill] sm:$0xff]  ;;  %v9440_v20 = vld [vmem:[#allocation90_spill] sm:$0xff]  ;;  %v9441_v19 = vld [vmem:[#allocation89_spill] sm:$0xff] }
 0x2f2   :  { %v7435_v60 = vadd.f32 %v1641_v22, %v7187_v12  ;;  %v1953_v33 = vsel %vm1928_vm2, %v7164_v7, %v1952_v50  ;;  %v1922_v58 = vrot.slane %v7395_v21, 4  ;;  %v1921_v61 = vrot.slane %v1884_v27, 4  ;;  %v9439_v7 = vld [vmem:[#allocation204_spill] sm:$0xff] }
 0x2f3   :  { %v2143_v51 = vpop.permute.xlu1 %2142  ;;  %v7443_v55 = vadd.f32 %v1657_v25, %v7200_v54  ;;  %v7447_v5 = vadd.f32 %v9432_v14, %v9438_v38  ;;  %v2230_v12 = vsel %vm2225_vm3, %v7209_v53, %v2229_v56  ;;  %v1642_v22 = vsel %vm403_vm12, %v1609_v15, %v1610_v26  ;;  %v9442_v53 = vld [vmem:[#allocation176_spill] sm:$0xff]  ;;  %v9443_v26 = vld [vmem:[#allocation91_spill] sm:$0xff] }
 0x2f4   :  { %2498 = vrot.lane.b32.xlu1 %v9437_v2, %s4469_s15  ;;  %v7455_v50 = vadd.f32 %v1937_v10, %v9440_v20  ;;  %v7459_v54 = vadd.f32 %v7156_v31, %v9441_v19  ;;  %v2246_v14 = vsel %vm2225_vm3, %v7245_v24, %v2245_v32  ;;  %v1658_v25 = vsel %vm403_vm12, %v1625_v39, %v1626_v29  ;;  %v9444_v38 = vld [vmem:[#allocation216_spill] sm:$0xff] }
 0x2f5   :  { %2496 = vrot.lane.b32.xlu0 %v9439_v7, %s4469_s15  ;;  %v7465_v56 = vadd.f32 %v1953_v33, %v9442_v53  ;;  %v7469_v15 = vadd.f32 %v7197_v37, %v9443_v26  ;;  %v7473_v10 = vadd.f32 %v7235_v8, %v9444_v38  ;;  %v1938_v31 = vsel %vm403_vm12, %v1905_v57, %v1906_v30  ;;  %v2173_v7 = vpop.permute.xlu0 %2172  ;;  %v9446_v26 = vld [vmem:[#allocation45_spill] sm:$0xff] }
 0x2f6   :  { %v7477_v20 = vadd.f32 %v2230_v12, %v7255_v13  ;;  %v7481_v24 = vadd.f32 %v7274_v18, %v7267_v36  ;;  %v1643_v29 = vsel %vm1628_vm1, %v7286_v43, %v1642_v22  ;;  %v1954_v37 = vsel %vm403_vm12, %v1921_v61, %v1922_v58 }
 0x2f7   :  { %v2175_v2 = vpop.permute.xlu1 %2174  ;;  %v7487_v39 = vadd.f32 %v2246_v14, %v7263_v49  ;;  %v1659_v8 = vsel %vm1628_vm1, %v7324_v9, %v1658_v25  ;;  %v2199_v32 = vrot.slane %v2143_v51, 4  ;;  %v2198_v30 = vrot.slane %v2141_v16, 4 }
 0x2f8   :  { %v7493_v13 = vadd.f32 %v7309_v23, %v7271_v46  ;;  %v1939_v36 = vsel %vm1928_vm2, %v7367_v35, %v1938_v31  ;;  %v2215_v18 = vrot.slane %v2175_v2, 4  ;;  %v2214_v57 = vrot.slane %v2173_v7, 4 }
 0x2f9   :  { %v7498_v33 = vadd.f32 %v1643_v29, %v7277_v34  ;;  %v1955_v49 = vsel %vm1928_vm2, %v1884_v27, %v1954_v37  ;;  %v2437_v61 = vpop.permute.xlu0 %2436  ;;  %v7503_v12 = vadd.f32 %v1659_v8, %v7303_v59  ;;  %v7507_v46 = vadd.f32 %v7358_v0, %v7283_v44 }
 0x2fa   :  { %v7511_v23 = vadd.f32 %v7395_v21, %v7316_v48  ;;  %v2500_v35 = vrot.slane %v2437_v61, 4  ;;  %v7514_v34 = vadd.f32 %v1939_v36, %v7312_v3  ;;  %v2231_v27 = vsel %vm403_vm12, %v2198_v30, %v2199_v32 }
 0x2fb   :  { %v2439_v43 = vpop.permute.xlu1 %2438  ;;  %v7518_v22 = vadd.f32 %v1955_v49, %v7327_v41  ;;  %v7521_v59 = vadd.f32 %v2143_v51, %v7320_v28  ;;  %v2247_v44 = vsel %vm403_vm12, %v2214_v57, %v2215_v18  ;;  %v2232_v53 = vsel %vm2225_vm3, %v2141_v16, %v2231_v27 }
 0x2fc   :  { %v2501_v58 = vrot.slane %v2439_v43, 4  ;;  %v2598_v9 = vadd.f32 %v2439_v43, %v7351_v6  ;;  %v7534_v38 = vadd.f32 %v2175_v2, %v9446_v26  ;;  %v2248_v37 = vsel %vm2225_vm3, %v2173_v7, %v2247_v44 }
 0x2fd   :  { %vm3336_vm0 = vcmask 1041409  }
 0x2fe   :  { %vm2630_vm7 = vcmp.gt.f32.partialorder %v2598_v9, 0.0  ;;  %v2662_v6 = vmul.f32 0.01, %v2598_v9  ;;  %v2532_v0 = vsel %vm403_vm12, %v2500_v35, %v2501_v58 }
 0x2ff   :  { %v2443_v48 = vpop.permute.xlu1 %2442  ;;  %v2534_v3 = vsel %vm2533_vm4, %v2437_v61, %v2532_v0  ;;  %v2441_v25 = vpop.permute.xlu0 %2440 }
 0x300   :  { %v7525_v21 = vsel %vm2630_vm7, %v2598_v9, %v2662_v6  ;;  %v2503_v19 = vrot.slane %v2443_v48, 4  ;;  %v2600_v14 = vadd.f32 %v2443_v48, %v7355_v62  ;;  %v2597_v28 = vadd.f32 %v2534_v3, %v7361_v42 }
 0x301   :  { %9445 = vst [vmem:[#allocation217_spill] sm:$0xff] %v7525_v21  ;;  %v2966_v41 = vsel %vm2965_vm5, %v7525_v21, -inf  ;;  %v2502_v51 = vrot.slane %v2441_v25, 4 }
 0x302   :  { %v2967_v31 = vrot.slane %v2966_v41, 4  ;;  %vm2632_vm8 = vcmp.gt.f32.partialorder %v2600_v14, 0.0  ;;  %v2664_v29 = vmul.f32 0.01, %v2600_v14  ;;  %vm2629_vm9 = vcmp.gt.f32.partialorder %v2597_v28, 0.0 }
 0x303   :  { %v2661_v8 = vmul.f32 0.01, %v2597_v28  ;;  %v2535_v62 = vsel %vm403_vm12, %v2502_v51, %v2503_v19  ;;  %v2471_v32 = vpop.permute.xlu1 %2470  ;;  %v2469_v18 = vpop.permute.xlu0 %2468 }
 0x304   :  { %v2968_v16 = vmax.f32 %v2966_v41, %v2967_v31  ;;  %v7538_v30 = vsel %vm2632_vm8, %v2600_v14, %v2664_v29  ;;  %v2536_v36 = vsel %vm2533_vm4, %v2441_v25, %v2535_v62  ;;  %v2517_v42 = vrot.slane %v2471_v32, 4 }
 0x305   :  { %9447 = vst [vmem:[#allocation33_spill] sm:$0xff] %v7538_v30  ;;  %v7541_v57 = vsel %vm2629_vm9, %v2597_v28, %v2661_v8  ;;  %v2987_v2 = vsel %vm2965_vm5, %v7538_v30, -inf  ;;  %v2599_v43 = vadd.f32 %v2536_v36, %v7387_v11  ;;  %v2614_v7 = vadd.f32 %v2471_v32, %v7371_v52 }
 0x306   :  { %9448 = vst [vmem:[#allocation32_spill] sm:$0xff] %v7541_v57  ;;  %v2969_v49 = vrot.slane %v2968_v16, 2  ;;  %v2918_v58 = vcombine.high %v7541_v57, %v7541_v57  ;;  %v2951_v9 = vsel %vm2950_vm6, %v7541_v57, -inf  ;;  %v2988_v61 = vrot.slane %v2987_v2, 4 }
 0x307   :  { %v2952_v35 = vrot.slane %v2951_v9, 4  ;;  %vm2631_vm13 = vcmp.gt.f32.partialorder %v2599_v43, 0.0  ;;  %v2663_v27 = vmul.f32 0.01, %v2599_v43  ;;  %vm2646_vm14 = vcmp.gt.f32.partialorder %v2614_v7, 0.0  ;;  %v7551_v6 = vpop.permute.xlu1 %2474  ;;  %v7554_v52 = vpop.permute.xlu0 %2472 }
 0x308   :  { %v2970_v44 = vmax.f32 %v2968_v16, %v2969_v49  ;;  %v2958_v0 = vsel %vm403_vm12, %v2918_v58, -inf  ;;  %v2989_v11 = vmax.f32 %v2987_v2, %v2988_v61  ;;  %v2678_v48 = vmul.f32 0.01, %v2614_v7 }
 0x309   :  { %v2953_v3 = vmax.f32 %v2951_v9, %v2952_v35  ;;  %v2959_v19 = vrot.slane %v2958_v0, 4  ;;  %v7556_v14 = vsel %vm2631_vm13, %v2599_v43, %v2663_v27  ;;  %v2516_v25 = vrot.slane %v2469_v18, 4 }
 0x30a   :  { %9449 = vst [vmem:[#allocation92_spill] sm:$0xff] %v7556_v14  ;;  %v2971_v41 = vrot.slane %v2970_v44, 1  ;;  %v2990_v28 = vrot.slane %v2989_v11, 2  ;;  %v2919_v51 = vcombine.high %v7556_v14, %v7556_v14  ;;  %v2973_v26 = vsel %vm2950_vm6, %v7556_v14, -inf }
 0x30b   :  { %v2954_v31 = vrot.slane %v2953_v3, 2  ;;  %v2960_v29 = vmax.f32 %v2958_v0, %v2959_v19  ;;  %v2974_v8 = vrot.slane %v2973_v26, 4  ;;  %v7563_v62 = vsel %vm2646_vm14, %v2614_v7, %v2678_v48  ;;  %v7565_v32 = vpop.permute.xlu1 %1857  ;;  %v7573_v49 = vpop.permute.xlu0 %1855 }
 0x30c   :  { %9450 = vst [vmem:[#allocation93_spill] sm:$0xff] %v7563_v62  ;;  %v7568_v16 = vadd.f32 %v2232_v53, %v7339_v1  ;;  %v2991_v36 = vmax.f32 %v2989_v11, %v2990_v28  ;;  %v2980_v2 = vsel %vm403_vm12, %v2919_v51, -inf  ;;  %v3134_v43 = vsel %vm2965_vm5, %v7563_v62, -inf }
 0x30d   :  { %v2955_v58 = vmax.f32 %v2953_v3, %v2954_v31  ;;  %v2961_v9 = vrot.slane %v2960_v29, 2  ;;  %v2975_v61 = vmax.f32 %v2973_v26, %v2974_v8  ;;  %v2981_v35 = vrot.slane %v2980_v2, 4 }
 0x30e   :  { %v7576_v7 = vadd.f32 %v2248_v37, %v7347_v45  ;;  %v2992_v27 = vrot.slane %v2991_v36, 1  ;;  %v3135_v0 = vrot.slane %v3134_v43, 4  ;;  %v2549_v1 = vsel %vm403_vm12, %v2516_v25, %v2517_v42 }
 0x30f   :  { %v7579_v53 = vmax.f32 %v2970_v44, %v2971_v41  ;;  %v2962_v11 = vmax.f32 %v2960_v29, %v2961_v9  ;;  %v2976_v48 = vrot.slane %v2975_v61, 2  ;;  %v2982_v19 = vmax.f32 %v2980_v2, %v2981_v35  ;;  %v7581_v28 = vpop.permute.xlu1 %1889  ;;  %v7587_v37 = vpop.permute.xlu0 %1887 }
 0x310   :  { %v3136_v51 = vmax.f32 %v3134_v43, %v3135_v0  ;;  %v2550_v3 = vsel %vm2533_vm4, %v2469_v18, %v2549_v1  ;;  %v2519_v26 = vrot.slane %v7551_v6, 4  ;;  %v2616_v45 = vadd.f32 %v7551_v6, %v7391_v63 }
 0x311   :  { %v2956_v31 = vrot.slane %v2955_v58, 1  ;;  %v7589_v8 = vmax.f32 %v2991_v36, %v2992_v27  ;;  %v2977_v42 = vmax.f32 %v2975_v61, %v2976_v48  ;;  %v2983_v44 = vrot.slane %v2982_v19, 2 }
 0x312   :  { %v3137_v25 = vrot.slane %v3136_v51, 2  ;;  %v2613_v41 = vadd.f32 %v2550_v3, %v7398_v17  ;;  %vm2648_vm1 = vcmp.gt.f32.partialorder %v2616_v45, 0.0  ;;  %v2680_v29 = vmul.f32 0.01, %v2616_v45 }
 0x313   :  { %v2963_v2 = vrot.slane %v2962_v11, 1  ;;  %v2978_v18 = vrot.slane %v2977_v42, 1  ;;  %v2984_v43 = vmax.f32 %v2982_v19, %v2983_v44  ;;  %v2518_v9 = vrot.slane %v7554_v52, 4  ;;  %v7593_v35 = vpop.permute.xlu1 %2146  ;;  %v7597_v61 = vpop.permute.xlu0 %2144 }
 0x314   :  { %v3138_v63 = vmax.f32 %v3136_v51, %v3137_v25  ;;  %vm2645_vm7 = vcmp.gt.f32.partialorder %v2613_v41, 0.0  ;;  %v2677_v6 = vmul.f32 0.01, %v2613_v41  ;;  %v7595_v36 = vsel %vm2648_vm1, %v2616_v45, %v2680_v29 }
 0x315   :  { %9451 = vst [vmem:[#allocation94_spill] sm:$0xff] %v7595_v36  ;;  %v7599_v27 = vmax.f32 %v2955_v58, %v2956_v31  ;;  %v2985_v0 = vrot.slane %v2984_v43, 1  ;;  %v3155_v17 = vsel %vm2965_vm5, %v7595_v36, -inf  ;;  %v2551_v1 = vsel %vm403_vm12, %v2518_v9, %v2519_v26 }
 0x316   :  { %v3139_v48 = vrot.slane %v3138_v63, 1  ;;  %v7604_v19 = vsel %vm2645_vm7, %v2613_v41, %v2677_v6  ;;  %v3156_v3 = vrot.slane %v3155_v17, 4  ;;  %v2552_v51 = vsel %vm2533_vm4, %v7554_v52, %v2551_v1 }
 0x317   :  { %9452 = vst [vmem:[#allocation95_spill] sm:$0xff] %v7604_v19  ;;  %v2986_v44 = vmax.f32 %v2984_v43, %v2985_v0  ;;  %v2926_v45 = vcombine.high %v7604_v19, %v7604_v19  ;;  %v3120_v58 = vsel %vm2950_vm6, %v7604_v19, -inf  ;;  %v2615_v31 = vadd.f32 %v2552_v51, %v7404_v40  ;;  %v7613_v25 = vpop.permute.xlu1 %2178  ;;  %v7617_v6 = vpop.permute.xlu0 %2176 }
 0x318   :  { %v2964_v29 = vmax.f32 %v2962_v11, %v2963_v2  ;;  %v7615_v26 = vmax.f32 %v2977_v42, %v2978_v18  ;;  %v3121_v41 = vrot.slane %v3120_v58, 4  ;;  %v3157_v9 = vmax.f32 %v3155_v17, %v3156_v3 }
 0x319   :  { %v3127_v52 = vsel %vm403_vm12, %v2926_v45, -inf  ;;  %vm2647_vm8 = vcmp.gt.f32.partialorder %v2615_v31, 0.0  ;;  %v2679_v43 = vmul.f32 0.01, %v2615_v31  ;;  %v1908_v0 = vrot.slane %v7565_v32, 4 }
 0x31a   :  { %v7621_v1 = vmax.f32 %v3138_v63, %v3139_v48  ;;  %v3122_v19 = vmax.f32 %v3120_v58, %v3121_v41  ;;  %v3128_v36 = vrot.slane %v3127_v52, 4  ;;  %v3158_v40 = vrot.slane %v3157_v9, 2 }
 0x31b   :  { %v7624_v51 = vsel %vm3336_vm0, %v2986_v44, %v2964_v29  ;;  %v7626_v11 = vsel %vm2647_vm8, %v2615_v31, %v2679_v43  ;;  %v1907_v42 = vrot.slane %v7573_v49, 4  ;;  %v1924_v2 = vrot.slane %v7581_v28, 4  ;;  %v2447_v18 = vpop.permute.xlu1 %2446  ;;  %v2445_v48 = vpop.permute.xlu0 %2444 }
 0x31c   :  { %9453 = vst [vmem:[#allocation96_spill] sm:$0xff] %v7626_v11  ;;  %v3123_v17 = vrot.slane %v3122_v19, 2  ;;  %v3129_v3 = vmax.f32 %v3127_v52, %v3128_v36  ;;  %v3159_v45 = vmax.f32 %v3157_v9, %v3158_v40  ;;  %v2927_v63 = vcombine.high %v7626_v11, %v7626_v11 }
 0x31d   :  { %v3141_v58 = vsel %vm2950_vm6, %v7626_v11, -inf  ;;  %v7636_v44 = vadd.f32 %v7565_v32, %v7408_v47  ;;  %v1940_v31 = vsel %vm403_vm12, %v1907_v42, %v1908_v0  ;;  %v1923_v29 = vrot.slane %v7587_v37, 4 }
 0x31e   :  { %v3124_v41 = vmax.f32 %v3122_v19, %v3123_v17  ;;  %v3130_v43 = vrot.slane %v3129_v3, 2  ;;  %v3160_v62 = vrot.slane %v3159_v45, 1  ;;  %v3142_v36 = vrot.slane %v3141_v58, 4 }
 0x31f   :  { %v3148_v9 = vsel %vm403_vm12, %v2927_v63, -inf  ;;  %v1941_v52 = vsel %vm1928_vm2, %v7573_v49, %v1940_v31  ;;  %v1956_v40 = vsel %vm403_vm12, %v1923_v29, %v1924_v2  ;;  %v2201_v11 = vrot.slane %v7593_v35, 4  ;;  %v2479_v21 = vpop.permute.xlu1 %2478  ;;  %v2477_v19 = vpop.permute.xlu0 %2476 }
 0x320   :  { %v3125_v47 = vrot.slane %v3124_v41, 1  ;;  %v3131_v32 = vmax.f32 %v3129_v3, %v3130_v43  ;;  %v3143_v30 = vmax.f32 %v3141_v58, %v3142_v36  ;;  %v7647_v0 = vadd.f32 %v7581_v28, %v7417_v4 }
 0x321   :  { %v3149_v42 = vrot.slane %v3148_v9, 4  ;;  %v1957_v17 = vsel %vm1928_vm2, %v7587_v37, %v1956_v40  ;;  %v7653_v49 = vadd.f32 %v7593_v35, %v7447_v5  ;;  %v2200_v2 = vrot.slane %v7597_v61, 4 }
 0x322   :  { %v3132_v63 = vrot.slane %v3131_v32, 1  ;;  %v7656_v31 = vmax.f32 %v3159_v45, %v3160_v62  ;;  %v3144_v3 = vrot.slane %v3143_v30, 2  ;;  %v7659_v58 = vadd.f32 %v1941_v52, %v7435_v60 }
 0x323   :  { %v7661_v4 = vmax.f32 %v3124_v41, %v3125_v47  ;;  %v3150_v28 = vmax.f32 %v3148_v9, %v3149_v42  ;;  %v2233_v29 = vsel %vm403_vm12, %v2200_v2, %v2201_v11  ;;  %v2217_v37 = vrot.slane %v7613_v25, 4  ;;  %v7665_v43 = vpop.permute.xlu1 %1861  ;;  %v1860_v45 = vpop.permute.xlu0 %1859 }
 0x324   :  { %v3145_v5 = vmax.f32 %v3143_v30, %v3144_v3  ;;  %v7668_v35 = vadd.f32 %v1957_v17, %v7443_v55  ;;  %v7672_v62 = vadd.f32 %v7613_v25, %v7459_v54  ;;  %v2216_v60 = vrot.slane %v7617_v6, 4 }
 0x325   :  { %v3151_v41 = vrot.slane %v3150_v28, 2  ;;  %v2234_v36 = vsel %vm2225_vm3, %v7597_v61, %v2233_v29  ;;  %v2505_v11 = vrot.slane %v2447_v18, 4  ;;  %v2602_v9 = vadd.f32 %v2447_v18, %v7469_v15 }
 0x326   :  { %v3133_v52 = vmax.f32 %v3131_v32, %v3132_v63  ;;  %v3146_v40 = vrot.slane %v3145_v5, 1  ;;  %v2249_v30 = vsel %vm403_vm12, %v2216_v60, %v2217_v37  ;;  %v2504_v55 = vrot.slane %v2445_v48, 4 }
 0x327   :  { %v3152_v47 = vmax.f32 %v3150_v28, %v3151_v41  ;;  %vm2634_vm9 = vcmp.gt.f32.partialorder %v2602_v9, 0.0  ;;  %v2666_v42 = vmul.f32 0.01, %v2602_v9  ;;  %v2521_v54 = vrot.slane %v2479_v21, 4  ;;  %v7679_v25 = vpop.permute.xlu1 %1893  ;;  %v7688_v18 = vpop.permute.xlu0 %1891 }
 0x328   :  { %v7682_v17 = vadd.f32 %v2234_v36, %v7455_v50  ;;  %v2250_v61 = vsel %vm2225_vm3, %v7617_v6, %v2249_v30  ;;  %v2537_v2 = vsel %vm403_vm12, %v2504_v55, %v2505_v11  ;;  %v2618_v15 = vadd.f32 %v2479_v21, %v7473_v10 }
 0x329   :  { %v3153_v32 = vrot.slane %v3152_v47, 1  ;;  %v7690_v63 = vsel %vm2634_vm9, %v2602_v9, %v2666_v42  ;;  %v2538_v3 = vsel %vm2533_vm4, %v2445_v48, %v2537_v2  ;;  %v2520_v28 = vrot.slane %v2477_v19, 4 }
 0x32a   :  { %9454 = vst [vmem:[#allocation97_spill] sm:$0xff] %v7690_v63  ;;  %v3008_v29 = vsel %vm2965_vm5, %v7690_v63, -inf  ;;  %v2601_v50 = vadd.f32 %v2538_v3, %v7477_v20  ;;  %vm2650_vm13 = vcmp.gt.f32.partialorder %v2618_v15, 0.0  ;;  %v2682_v37 = vmul.f32 0.01, %v2618_v15 }
 0x32b   :  { %v7696_v6 = vmax.f32 %v3145_v5, %v3146_v40  ;;  %v3009_v60 = vrot.slane %v3008_v29, 4  ;;  %v2553_v10 = vsel %vm403_vm12, %v2520_v28, %v2521_v54  ;;  %v1910_v21 = vrot.slane %v7665_v43, 4  ;;  %v7700_v41 = vpop.permute.xlu1 %2150  ;;  %v7705_v9 = vpop.permute.xlu0 %2148 }
 0x32c   :  { %vm2633_vm14 = vcmp.gt.f32.partialorder %v2601_v50, 0.0  ;;  %v2665_v36 = vmul.f32 0.01, %v2601_v50  ;;  %v7702_v48 = vsel %vm2650_vm13, %v2618_v15, %v2682_v37  ;;  %v2554_v11 = vsel %vm2533_vm4, %v2477_v19, %v2553_v10 }
 0x32d   :  { %9455 = vst [vmem:[#allocation98_spill] sm:$0xff] %v7702_v48  ;;  %v3154_v20 = vmax.f32 %v3152_v47, %v3153_v32  ;;  %v3010_v30 = vmax.f32 %v3008_v29, %v3009_v60  ;;  %v3176_v5 = vsel %vm2965_vm5, %v7702_v48, -inf  ;;  %v2617_v40 = vadd.f32 %v2554_v11, %v7487_v39 }
 0x32e   :  { %v7711_v55 = vadd.f32 %v2250_v61, %v7465_v56  ;;  %v7713_v42 = vsel %vm2633_vm14, %v2601_v50, %v2665_v36  ;;  %v3177_v54 = vrot.slane %v3176_v5, 4  ;;  %v1909_v2 = vrot.slane %v1860_v45, 4 }
 0x32f   :  { %9456 = vst [vmem:[#allocation99_spill] sm:$0xff] %v7713_v42  ;;  %v3011_v15 = vrot.slane %v3010_v30, 2  ;;  %v2920_v19 = vcombine.high %v7713_v42, %v7713_v42  ;;  %v2994_v47 = vsel %vm2950_vm6, %v7713_v42, -inf  ;;  %vm2649_vm1 = vcmp.gt.f32.partialorder %v2617_v40, 0.0  ;;  %v7719_v32 = vpop.permute.xlu1 %2182  ;;  %v7722_v61 = vpop.permute.xlu0 %2180 }
 0x330   :  { %v2995_v3 = vrot.slane %v2994_v47, 4  ;;  %v3178_v28 = vmax.f32 %v3176_v5, %v3177_v54  ;;  %v2681_v39 = vmul.f32 0.01, %v2617_v40  ;;  %v1942_v56 = vsel %vm403_vm12, %v1909_v2, %v1910_v21 }
 0x331   :  { %v7725_v29 = vsel %vm3336_vm0, %v3154_v20, %v3133_v52  ;;  %v3012_v50 = vmax.f32 %v3010_v30, %v3011_v15  ;;  %v3001_v37 = vsel %vm403_vm12, %v2920_v19, -inf  ;;  %v1943_v60 = vsel %vm1928_vm2, %v1860_v45, %v1942_v56 }
 0x332   :  { %v2996_v10 = vmax.f32 %v2994_v47, %v2995_v3  ;;  %v3002_v36 = vrot.slane %v3001_v37, 4  ;;  %v3179_v11 = vrot.slane %v3178_v28, 2  ;;  %v7729_v48 = vsel %vm2649_vm1, %v2617_v40, %v2681_v39 }
 0x333   :  { %9457 = vst [vmem:[#allocation218_spill] sm:$0xff] %v7729_v48  ;;  %v3013_v42 = vrot.slane %v3012_v50, 1  ;;  %v2928_v5 = vcombine.high %v7729_v48, %v7729_v48  ;;  %v3162_v21 = vsel %vm2950_vm6, %v7729_v48, -inf  ;;  %v1926_v52 = vrot.slane %v7679_v25, 4  ;;  %v2451_v20 = vpop.permute.xlu1 %2450  ;;  %v2449_v45 = vpop.permute.xlu0 %2448 }
 0x334   :  { %v2997_v30 = vrot.slane %v2996_v10, 2  ;;  %v3003_v54 = vmax.f32 %v3001_v37, %v3002_v36  ;;  %v3180_v2 = vmax.f32 %v3178_v28, %v3179_v11  ;;  %v3163_v15 = vrot.slane %v3162_v21, 4 }
 0x335   :  { %vm3338_vm7 = vcmask 1042434   ;;  %v3169_v19 = vsel %vm403_vm12, %v2928_v5, -inf  ;;  %v7739_v40 = vadd.f32 %v7665_v43, %v7481_v24  ;;  %v7742_v47 = vadd.f32 %v1943_v60, %v7498_v33 }
 0x336   :  { %v1925_v3 = vrot.slane %v7688_v18, 4  ;;  %v2998_v39 = vmax.f32 %v2996_v10, %v2997_v30  ;;  %v3004_v56 = vrot.slane %v3003_v54, 2  ;;  %v3181_v48 = vrot.slane %v3180_v2, 1 }
 0x337   :  { %v3164_v63 = vmax.f32 %v3162_v21, %v3163_v15  ;;  %v7745_v37 = vmax.f32 %v3012_v50, %v3013_v42  ;;  %v3170_v28 = vrot.slane %v3169_v19, 4  ;;  %v2203_v11 = vrot.slane %v7700_v41, 4  ;;  %v2483_v5 = vpop.permute.xlu1 %2482  ;;  %v2481_v60 = vpop.permute.xlu0 %2480 }
 0x338   :  { %v1958_v36 = vsel %vm403_vm12, %v1925_v3, %v1926_v52  ;;  %v2999_v14 = vrot.slane %v2998_v39, 1  ;;  %v3005_v24 = vmax.f32 %v3003_v54, %v3004_v56  ;;  %v7751_v33 = vadd.f32 %v7679_v25, %v7493_v13 }
 0x339   :  { %v3165_v43 = vrot.slane %v3164_v63, 2  ;;  %v3171_v10 = vmax.f32 %v3169_v19, %v3170_v28  ;;  %v1959_v21 = vsel %vm1928_vm2, %v7688_v18, %v1958_v36  ;;  %v2202_v42 = vrot.slane %v7705_v9, 4 }
 0x33a   :  { %v2219_v50 = vrot.slane %v7719_v32, 4  ;;  %v3006_v52 = vrot.slane %v3005_v24, 1  ;;  %v7757_v30 = vmax.f32 %v3180_v2, %v3181_v48  ;;  %v7761_v54 = vadd.f32 %v7700_v41, %v7507_v46 }
 0x33b   :  { %v3166_v15 = vmax.f32 %v3164_v63, %v3165_v43  ;;  %v7763_v3 = vmax.f32 %v2998_v39, %v2999_v14  ;;  %v3172_v13 = vrot.slane %v3171_v10, 2  ;;  %v2235_v25 = vsel %vm403_vm12, %v2202_v42, %v2203_v11  ;;  %v2155_v18 = vpop.permute.xlu1 %2154  ;;  %v7772_v2 = vpop.permute.xlu0 %2152 }
 0x33c   :  { %v2218_v19 = vrot.slane %v7722_v61, 4  ;;  %v3007_v56 = vmax.f32 %v3005_v24, %v3006_v52  ;;  %v7768_v28 = vadd.f32 %v1959_v21, %v7503_v12  ;;  %v2236_v48 = vsel %vm2225_vm3, %v7705_v9, %v2235_v25 }
 0x33d   :  { %v2507_v63 = vrot.slane %v2451_v20, 4  ;;  %v3167_v46 = vrot.slane %v3166_v15, 1  ;;  %v3173_v41 = vmax.f32 %v3171_v10, %v3172_v13  ;;  %v2604_v39 = vadd.f32 %v2451_v20, %v7521_v59 }
 0x33e   :  { %v2251_v14 = vsel %vm403_vm12, %v2218_v19, %v2219_v50  ;;  %v7778_v36 = vsel %vm3338_vm7, %v3007_v56, %v7624_v51  ;;  %v7781_v11 = vadd.f32 %v2236_v48, %v7514_v34  ;;  %v7785_v12 = vadd.f32 %v7719_v32, %v7511_v23 }
 0x33f   :  { %v2506_v9 = vrot.slane %v2449_v45, 4  ;;  %v3174_v24 = vrot.slane %v3173_v41, 1  ;;  %v2252_v43 = vsel %vm2225_vm3, %v7722_v61, %v2251_v14  ;;  %vm2636_vm2 = vcmp.gt.f32.partialorder %v2604_v39, 0.0  ;;  %v2187_v21 = vpop.permute.xlu1 %2186  ;;  %v2185_v32 = vpop.permute.xlu0 %2184 }
 0x340   :  { %v2668_v10 = vmul.f32 0.01, %v2604_v39  ;;  %v2523_v20 = vrot.slane %v2483_v5, 4  ;;  %v2620_v51 = vadd.f32 %v2483_v5, %v7534_v38  ;;  %v2522_v42 = vrot.slane %v2481_v60, 4 }
 0x341   :  { %v2539_v59 = vsel %vm403_vm12, %v2506_v9, %v2507_v63  ;;  %v7791_v34 = vmax.f32 %v3166_v15, %v3167_v46  ;;  %v3175_v50 = vmax.f32 %v3173_v41, %v3174_v24  ;;  %v7800_v19 = vadd.f32 %v2252_v43, %v7518_v22 }
 0x342   :  { %v7793_v52 = vsel %vm2636_vm2, %v2604_v39, %v2668_v10  ;;  %v2540_v23 = vsel %vm2533_vm4, %v2449_v45, %v2539_v59  ;;  %vm2652_vm8 = vcmp.gt.f32.partialorder %v2620_v51, 0.0  ;;  %v2684_v25 = vmul.f32 0.01, %v2620_v51 }
 0x343   :  { %9458 = vst [vmem:[#allocation219_spill] sm:$0xff] %v7793_v52  ;;  %v3029_v61 = vsel %vm2965_vm5, %v7793_v52, -inf  ;;  %v2603_v13 = vadd.f32 %v2540_v23, %v7568_v16  ;;  %v2555_v5 = vsel %vm403_vm12, %v2522_v42, %v2523_v20  ;;  %v2205_v15 = vrot.slane %v2155_v18, 4  ;;  %v2455_v22 = vpop.permute.xlu1 %2454  ;;  %v2453_v10 = vpop.permute.xlu0 %2452 }
 0x344   :  { %v3030_v38 = vrot.slane %v3029_v61, 4  ;;  %v7803_v48 = vsel %vm2652_vm8, %v2620_v51, %v2684_v25  ;;  %v2556_v45 = vsel %vm2533_vm4, %v2481_v60, %v2555_v5  ;;  %v2204_v41 = vrot.slane %v7772_v2, 4 }
 0x345   :  { %vm2635_vm9 = vcmp.gt.f32.partialorder %v2603_v13, 0.0  ;;  %v2667_v56 = vmul.f32 0.01, %v2603_v13  ;;  %9459 = vst [vmem:[#allocation35_spill] sm:$0xff] %v7803_v48  ;;  %v3197_v46 = vsel %vm2965_vm5, %v7803_v48, -inf  ;;  %v2619_v16 = vadd.f32 %v2556_v45, %v7576_v7 }
 0x346   :  { %v3031_v63 = vmax.f32 %v3029_v61, %v3030_v38  ;;  %v7812_v14 = vsel %vm3338_vm7, %v3175_v50, %v7725_v29  ;;  %v3198_v9 = vrot.slane %v3197_v46, 4  ;;  %v7817_v24 = vadd.f32 %v2155_v18, %v7636_v44 }
 0x347   :  { %v7814_v39 = vsel %vm2635_vm9, %v2603_v13, %v2667_v56  ;;  %vm2651_vm13 = vcmp.gt.f32.partialorder %v2619_v16, 0.0  ;;  %v2683_v51 = vmul.f32 0.01, %v2619_v16  ;;  %v2221_v29 = vrot.slane %v2187_v21, 4 }
 0x348   :  { %9460 = vst [vmem:[#allocation220_spill] sm:$0xff] %v7814_v39  ;;  %v3032_v60 = vrot.slane %v3031_v63, 2  ;;  %v2921_v43 = vcombine.high %v7814_v39, %v7814_v39  ;;  %v3015_v7 = vsel %vm2950_vm6, %v7814_v39, -inf  ;;  %v3199_v20 = vmax.f32 %v3197_v46, %v3198_v9 }
 0x349   :  { %v3016_v59 = vrot.slane %v3015_v7, 4  ;;  %v2237_v23 = vsel %vm403_vm12, %v2204_v41, %v2205_v15  ;;  %v2220_v44 = vrot.slane %v2185_v32, 4  ;;  %v7825_v25 = vsel %vm2651_vm13, %v2619_v16, %v2683_v51 }
 0x34a   :  { %v3033_v42 = vmax.f32 %v3031_v63, %v3032_v60  ;;  %v3022_v50 = vsel %vm403_vm12, %v2921_v43, -inf  ;;  %v3200_v13 = vrot.slane %v3199_v20, 2  ;;  %9461 = vst [vmem:[#allocation100_spill] sm:$0xff] %v7825_v25  ;;  %v2929_v5 = vcombine.high %v7825_v25, %v7825_v25  ;;  %v2487_v63 = vpop.permute.xlu1 %2486 }
 0x34b   :  { %v3017_v18 = vmax.f32 %v3015_v7, %v3016_v59  ;;  %v3023_v61 = vrot.slane %v3022_v50, 4  ;;  %v3183_v56 = vsel %vm2950_vm6, %v7825_v25, -inf  ;;  %v7832_v45 = vadd.f32 %v2187_v21, %v7647_v0  ;;  %v2485_v59 = vpop.permute.xlu0 %2484 }
 0x34c   :  { %v3034_v38 = vrot.slane %v3033_v42, 1  ;;  %v3201_v15 = vmax.f32 %v3199_v20, %v3200_v13  ;;  %v3184_v41 = vrot.slane %v3183_v56, 4  ;;  %v3190_v60 = vsel %vm403_vm12, %v2929_v5, -inf }
 0x34d   :  { %v3018_v46 = vrot.slane %v3017_v18, 2  ;;  %v3024_v9 = vmax.f32 %v3022_v50, %v3023_v61  ;;  %v2238_v16 = vsel %vm2225_vm3, %v7772_v2, %v2237_v23  ;;  %v2253_v43 = vsel %vm403_vm12, %v2220_v44, %v2221_v29 }
 0x34e   :  { %v2509_v7 = vrot.slane %v2455_v22, 4  ;;  %v3202_v25 = vrot.slane %v3201_v15, 1  ;;  %v3185_v39 = vmax.f32 %v3183_v56, %v3184_v41  ;;  %v3191_v0 = vrot.slane %v3190_v60, 4 }
 0x34f   :  { %v3019_v51 = vmax.f32 %v3017_v18, %v3018_v46  ;;  %v3025_v48 = vrot.slane %v3024_v9, 2  ;;  %v2254_v21 = vsel %vm2225_vm3, %v2185_v32, %v2253_v43  ;;  %v2606_v50 = vadd.f32 %v2455_v22, %v7653_v49  ;;  %v2159_v18 = vpop.permute.xlu1 %2158 }
 0x350   :  { %v2508_v20 = vrot.slane %v2453_v10, 4  ;;  %v7840_v61 = vmax.f32 %v3033_v42, %v3034_v38  ;;  %v3186_v5 = vrot.slane %v3185_v39, 2  ;;  %v7843_v2 = vadd.f32 %v2238_v16, %v7659_v58  ;;  %v2157_v38 = vpop.permute.xlu0 %2156 }
 0x351   :  { %v3026_v13 = vmax.f32 %v3024_v9, %v3025_v48  ;;  %v3020_v29 = vrot.slane %v3019_v51, 1  ;;  %v3192_v23 = vmax.f32 %v3190_v60, %v3191_v0  ;;  %vm2638_vm14 = vcmp.gt.f32.partialorder %v2606_v50, 0.0 }
 0x352   :  { %v2670_v44 = vmul.f32 0.01, %v2606_v50  ;;  %v7845_v46 = vmax.f32 %v3201_v15, %v3202_v25  ;;  %v3187_v56 = vmax.f32 %v3185_v39, %v3186_v5  ;;  %v7848_v32 = vadd.f32 %v2254_v21, %v7668_v35 }
 0x353   :  { %v2541_v49 = vsel %vm403_vm12, %v2508_v20, %v2509_v7  ;;  %v3027_v22 = vrot.slane %v3026_v13, 1  ;;  %v3193_v42 = vrot.slane %v3192_v23, 2  ;;  %v2525_v15 = vrot.slane %v2487_v63, 4  ;;  %v2191_v20 = vpop.permute.xlu1 %2190 }
 0x354   :  { %v7851_v48 = vsel %vm2638_vm14, %v2606_v50, %v2670_v44  ;;  %v2542_v58 = vsel %vm2533_vm4, %v2453_v10, %v2541_v49  ;;  %v3188_v9 = vrot.slane %v3187_v56, 1  ;;  %v2622_v35 = vadd.f32 %v2487_v63, %v7672_v62 }
 0x355   :  { %9462 = vst [vmem:[#allocation101_spill] sm:$0xff] %v7851_v48  ;;  %v3050_v41 = vsel %vm2965_vm5, %v7851_v48, -inf  ;;  %v2605_v25 = vadd.f32 %v2542_v58, %v7682_v17  ;;  %v3194_v39 = vmax.f32 %v3192_v23, %v3193_v42  ;;  %v2524_v16 = vrot.slane %v2485_v59, 4 }
 0x356   :  { %v3051_v60 = vrot.slane %v3050_v41, 4  ;;  %v7858_v43 = vmax.f32 %v3019_v51, %v3020_v29  ;;  %v2207_v0 = vrot.slane %v2159_v18, 4  ;;  %v7860_v21 = vmax.f32 %v3026_v13, %v3027_v22  ;;  %v2189_v29 = vpop.permute.xlu0 %2188 }
 0x357   :  { %vm2637_vm1 = vcmp.gt.f32.partialorder %v2605_v25, 0.0  ;;  %v2669_v7 = vmul.f32 0.01, %v2605_v25  ;;  %vm2654_vm2 = vcmp.gt.f32.partialorder %v2622_v35, 0.0  ;;  %v2686_v50 = vmul.f32 0.01, %v2622_v35 }
 0x358   :  { %v3052_v10 = vmax.f32 %v3050_v41, %v3051_v60  ;;  %v7862_v5 = vmax.f32 %v3187_v56, %v3188_v9  ;;  %v2557_v23 = vsel %vm403_vm12, %v2524_v16, %v2525_v15  ;;  %v2206_v44 = vrot.slane %v2157_v38, 4 }
 0x359   :  { %v7864_v17 = vsel %vm2637_vm1, %v2605_v25, %v2669_v7  ;;  %v3195_v62 = vrot.slane %v3194_v39, 1  ;;  %v7871_v22 = vsel %vm2654_vm2, %v2622_v35, %v2686_v50  ;;  %v2558_v56 = vsel %vm2533_vm4, %v2485_v59, %v2557_v23 }
 0x35a   :  { %9463 = vst [vmem:[#allocation34_spill] sm:$0xff] %v7864_v17  ;;  %v3053_v63 = vrot.slane %v3052_v10, 2  ;;  %v2922_v51 = vcombine.high %v7864_v17, %v7864_v17  ;;  %v3036_v13 = vsel %vm2950_vm6, %v7864_v17, -inf  ;;  %9464 = vst [vmem:[#allocation102_spill] sm:$0xff] %v7871_v22  ;;  %v2239_v42 = vsel %vm403_vm12, %v2206_v44, %v2207_v0  ;;  %v2459_v0 = vpop.permute.xlu1 %2458 }
 0x35b   :  { %v3037_v49 = vrot.slane %v3036_v13, 4  ;;  %v3218_v41 = vsel %vm2965_vm5, %v7871_v22, -inf  ;;  %v2621_v25 = vadd.f32 %v2558_v56, %v7711_v55  ;;  %v2240_v7 = vsel %vm2225_vm3, %v2157_v38, %v2239_v42  ;;  %v2457_v38 = vpop.permute.xlu0 %2456 }
 0x35c   :  { %v3054_v58 = vmax.f32 %v3052_v10, %v3053_v63  ;;  %v3043_v9 = vsel %vm403_vm12, %v2922_v51, -inf  ;;  %v3219_v16 = vrot.slane %v3218_v41, 4  ;;  %v7880_v17 = vmax.f32 %v3194_v39, %v3195_v62 }
 0x35d   :  { %v3038_v15 = vmax.f32 %v3036_v13, %v3037_v49  ;;  %v3044_v60 = vrot.slane %v3043_v9, 4  ;;  %vm2653_vm8 = vcmp.gt.f32.partialorder %v2621_v25, 0.0  ;;  %v2685_v35 = vmul.f32 0.01, %v2621_v25 }
 0x35e   :  { %v7883_v59 = vadd.f32 %v2159_v18, %v7739_v40  ;;  %v3220_v23 = vmax.f32 %v3218_v41, %v3219_v16  ;;  %v2223_v44 = vrot.slane %v2191_v20, 4  ;;  %v3055_v63 = vrot.slane %v3054_v58, 1 }
 0x35f   :  { %v3039_v10 = vrot.slane %v3038_v15, 2  ;;  %v3045_v50 = vmax.f32 %v3043_v9, %v3044_v60  ;;  %v7885_v51 = vsel %vm2653_vm8, %v2621_v25, %v2685_v35  ;;  %v7888_v55 = vadd.f32 %v2240_v7, %v7742_v47  ;;  %v2491_v35 = vpop.permute.xlu1 %2490 }
 0x360   :  { %9465 = vst [vmem:[#allocation103_spill] sm:$0xff] %v7885_v51  ;;  %v2222_v13 = vrot.slane %v2189_v29, 4  ;;  %v3221_v49 = vrot.slane %v3220_v23, 2  ;;  %v2930_v40 = vcombine.high %v7885_v51, %v7885_v51  ;;  %v3204_v18 = vsel %vm2950_vm6, %v7885_v51, -inf }
 0x361   :  { %v3040_v39 = vmax.f32 %v3038_v15, %v3039_v10  ;;  %v3046_v62 = vrot.slane %v3045_v50, 2  ;;  %v2511_v42 = vrot.slane %v2459_v0, 4  ;;  %v2608_v9 = vadd.f32 %v2459_v0, %v7761_v54 }
 0x362   :  { %v2255_v56 = vsel %vm403_vm12, %v2222_v13, %v2223_v44  ;;  %v3222_v47 = vmax.f32 %v3220_v23, %v3221_v49  ;;  %v3205_v60 = vrot.slane %v3204_v18, 4  ;;  %v3211_v16 = vsel %vm403_vm12, %v2930_v40, -inf  ;;  %v2489_v13 = vpop.permute.xlu0 %2488 }
 0x363   :  { %v3041_v41 = vrot.slane %v3040_v39, 1  ;;  %v3047_v25 = vmax.f32 %v3045_v50, %v3046_v62  ;;  %v2256_v15 = vsel %vm2225_vm3, %v2189_v29, %v2255_v56  ;;  %vm2640_vm9 = vcmp.gt.f32.partialorder %v2608_v9, 0.0 }
 0x364   :  { %v2672_v7 = vmul.f32 0.01, %v2608_v9  ;;  %v7898_v10 = vmax.f32 %v3054_v58, %v3055_v63  ;;  %v3206_v51 = vmax.f32 %v3204_v18, %v3205_v60  ;;  %v7903_v44 = vadd.f32 %v2191_v20, %v7751_v33 }
 0x365   :  { %v7900_v22 = vmax.f32 %v3040_v39, %v3041_v41  ;;  %v3048_v54 = vrot.slane %v3047_v25, 1  ;;  %v3212_v0 = vrot.slane %v3211_v16, 4  ;;  %v2510_v23 = vrot.slane %v2457_v38, 4 }
 0x366   :  { %v7905_v50 = vsel %vm2640_vm9, %v2608_v9, %v2672_v7  ;;  %v3223_v62 = vrot.slane %v3222_v47, 1  ;;  %v3207_v49 = vrot.slane %v3206_v51, 2  ;;  %v7908_v29 = vadd.f32 %v2256_v15, %v7768_v28  ;;  %v2463_v15 = vpop.permute.xlu1 %2462 }
 0x367   :  { %9466 = vst [vmem:[#allocation104_spill] sm:$0xff] %v7905_v50  ;;  %v3071_v58 = vsel %vm2965_vm5, %v7905_v50, -inf  ;;  %v3213_v63 = vmax.f32 %v3211_v16, %v3212_v0  ;;  %v2543_v40 = vsel %vm403_vm12, %v2510_v23, %v2511_v42  ;;  %v2527_v33 = vrot.slane %v2491_v35, 4 }
 0x368   :  { %v3072_v39 = vrot.slane %v3071_v58, 4  ;;  %v3208_v20 = vmax.f32 %v3206_v51, %v3207_v49  ;;  %v2544_v18 = vsel %vm2533_vm4, %v2457_v38, %v2543_v40  ;;  %v2624_v56 = vadd.f32 %v2491_v35, %v7785_v12 }
 0x369   :  { %v2526_v9 = vrot.slane %v2489_v13, 4  ;;  %v7915_v41 = vmax.f32 %v3047_v25, %v3048_v54  ;;  %v3214_v60 = vrot.slane %v3213_v63, 2  ;;  %v2607_v28 = vadd.f32 %v2544_v18, %v7781_v11  ;;  %v2461_v18 = vpop.permute.xlu0 %2460 }
 0x36a   :  { %v3073_v7 = vmax.f32 %v3071_v58, %v3072_v39  ;;  %v3209_v48 = vrot.slane %v3208_v20, 1  ;;  %vm2656_vm3 = vcmp.gt.f32.partialorder %v2624_v56, 0.0  ;;  %v2688_v16 = vmul.f32 0.01, %v2624_v56 }
 0x36b   :  { %v2559_v0 = vsel %vm403_vm12, %v2526_v9, %v2527_v33  ;;  %v3215_v42 = vmax.f32 %v3213_v63, %v3214_v60  ;;  %vm2639_vm13 = vcmp.gt.f32.partialorder %v2607_v28, 0.0  ;;  %v2671_v51 = vmul.f32 0.01, %v2607_v28 }
 0x36c   :  { %v3074_v23 = vrot.slane %v3073_v7, 2  ;;  %v7919_v38 = vmax.f32 %v3222_v47, %v3223_v62  ;;  %v7921_v12 = vsel %vm2656_vm3, %v2624_v56, %v2688_v16  ;;  %v2560_v25 = vsel %vm2533_vm4, %v2489_v13, %v2559_v0 }
 0x36d   :  { %9467 = vst [vmem:[#allocation105_spill] sm:$0xff] %v7921_v12  ;;  %v2610_v35 = vadd.f32 %v2463_v15, %v7817_v24  ;;  %v3216_v54 = vrot.slane %v3215_v42, 1  ;;  %v7925_v49 = vsel %vm2639_vm13, %v2607_v28, %v2671_v51  ;;  %v3239_v58 = vsel %vm2965_vm5, %v7921_v12, -inf }
 0x36e   :  { %v3075_v11 = vmax.f32 %v3073_v7, %v3074_v23  ;;  %9468 = vst [vmem:[#allocation106_spill] sm:$0xff] %v7925_v49  ;;  %v2923_v63 = vcombine.high %v7925_v49, %v7925_v49  ;;  %v3057_v47 = vsel %vm2950_vm6, %v7925_v49, -inf  ;;  %v3240_v62 = vrot.slane %v3239_v58, 4 }
 0x36f   :  { %v2623_v39 = vadd.f32 %v2560_v25, %v7800_v19  ;;  %v7934_v40 = vmax.f32 %v3208_v20, %v3209_v48  ;;  %v7936_v13 = vmax.f32 %v3215_v42, %v3216_v54  ;;  %v3058_v24 = vrot.slane %v3057_v47, 4 }
 0x370   :  { %v2513_v33 = vrot.slane %v2463_v15, 4  ;;  %v3064_v56 = vsel %vm403_vm12, %v2923_v63, -inf  ;;  %v3241_v9 = vmax.f32 %v3239_v58, %v3240_v62  ;;  %vm2642_vm1 = vcmp.gt.f32.partialorder %v2610_v35, 0.0 }
 0x371   :  { %vm2655_vm14 = vcmp.gt.f32.partialorder %v2623_v39, 0.0  ;;  %v2687_v60 = vmul.f32 0.01, %v2623_v39  ;;  %v3059_v7 = vmax.f32 %v3057_v47, %v3058_v24  ;;  %v3065_v28 = vrot.slane %v3064_v56, 4  ;;  %v2495_v47 = vpop.permute.xlu1 %2494 }
 0x372   :  { %v2674_v16 = vmul.f32 0.01, %v2610_v35  ;;  %v3076_v0 = vrot.slane %v3075_v11, 1  ;;  %v3242_v23 = vrot.slane %v3241_v9, 2  ;;  %v2512_v19 = vrot.slane %v2461_v18, 4 }
 0x373   :  { %v7939_v51 = vsel %vm2655_vm14, %v2623_v39, %v2687_v60  ;;  %v3060_v48 = vrot.slane %v3059_v7, 2  ;;  %v3066_v20 = vmax.f32 %v3064_v56, %v3065_v28 }
 0x374   :  { %9469 = vst [vmem:[#allocation107_spill] sm:$0xff] %v7939_v51  ;;  %v2931_v15 = vcombine.high %v7939_v51, %v7939_v51  ;;  %v3225_v42 = vsel %vm2950_vm6, %v7939_v51, -inf  ;;  %v3243_v25 = vmax.f32 %v3241_v9, %v3242_v23  ;;  %v7945_v58 = vsel %vm2642_vm1, %v2610_v35, %v2674_v16  ;;  %v2493_v16 = vpop.permute.xlu0 %2492 }
 0x375   :  { %v3226_v54 = vrot.slane %v3225_v42, 4  ;;  %9470 = vst [vmem:[#allocation151_spill] sm:$0xff] %v7945_v58  ;;  %v2545_v63 = vsel %vm403_vm12, %v2512_v19, %v2513_v33  ;;  %v3061_v62 = vmax.f32 %v3059_v7, %v3060_v48  ;;  %v3067_v24 = vrot.slane %v3066_v20, 2 }
 0x376   :  { %v3232_v39 = vsel %vm403_vm12, %v2931_v15, -inf  ;;  %v3092_v56 = vsel %vm2965_vm5, %v7945_v58, -inf  ;;  %v3244_v60 = vrot.slane %v3243_v25, 1  ;;  %v2546_v9 = vsel %vm2533_vm4, %v2461_v18, %v2545_v63 }
 0x377   :  { %v3227_v28 = vmax.f32 %v3225_v42, %v3226_v54  ;;  %v3233_v12 = vrot.slane %v3232_v39, 4  ;;  %v3093_v49 = vrot.slane %v3092_v56, 4  ;;  %v3062_v50 = vrot.slane %v3061_v62, 1 }
 0x378   :  { %v3068_v51 = vmax.f32 %v3066_v20, %v3067_v24  ;;  %v2626_v35 = vadd.f32 %v2495_v47, %v7832_v45  ;;  %v7953_v33 = vmax.f32 %v3075_v11, %v3076_v0  ;;  %v2609_v15 = vadd.f32 %v2546_v9, %v7843_v2  ;;  %v2467_v11 = vpop.permute.xlu1 %2466 }
 0x379   :  { %v3228_v7 = vrot.slane %v3227_v28, 2  ;;  %v3234_v23 = vmax.f32 %v3232_v39, %v3233_v12  ;;  %v3094_v19 = vmax.f32 %v3092_v56, %v3093_v49  ;;  %v2529_v58 = vrot.slane %v2495_v47, 4 }
 0x37a   :  { %v3069_v48 = vrot.slane %v3068_v51, 1  ;;  %vm2658_vm2 = vcmp.gt.f32.partialorder %v2626_v35, 0.0  ;;  %v7956_v42 = vmax.f32 %v3243_v25, %v3244_v60  ;;  %v2690_v20 = vmul.f32 0.01, %v2626_v35 }
 0x37b   :  { %v3229_v54 = vmax.f32 %v3227_v28, %v3228_v7  ;;  %v3235_v52 = vrot.slane %v3234_v23, 2  ;;  %v7958_v24 = vmax.f32 %v3061_v62, %v3062_v50  ;;  %vm2641_vm8 = vcmp.gt.f32.partialorder %v2609_v15, 0.0  ;;  %v2465_v50 = vpop.permute.xlu0 %2464 }
 0x37c   :  { %v2673_v45 = vmul.f32 0.01, %v2609_v15  ;;  %v2528_v18 = vrot.slane %v2493_v16, 4  ;;  %v7960_v0 = vmax.f32 %v3068_v51, %v3069_v48  ;;  %v3095_v49 = vrot.slane %v3094_v19, 2  ;;  %v2499_v57 = vpop.permute.xlu1 %2498 }
 0x37d   :  { %v3236_v12 = vmax.f32 %v3234_v23, %v3235_v52  ;;  %v7962_v63 = vsel %vm2658_vm2, %v2626_v35, %v2690_v20  ;;  %v3230_v2 = vrot.slane %v3229_v54, 1  ;;  %v2515_v52 = vrot.slane %v2467_v11, 4 }
 0x37e   :  { %9471 = vst [vmem:[#allocation48_spill] sm:$0xff] %v7962_v63  ;;  %v7964_v47 = vsel %vm2641_vm8, %v2609_v15, %v2673_v45  ;;  %v3260_v25 = vsel %vm2965_vm5, %v7962_v63, -inf  ;;  %v2561_v39 = vsel %vm403_vm12, %v2528_v18, %v2529_v58  ;;  %v2612_v35 = vadd.f32 %v2467_v11, %v7883_v59 }
 0x37f   :  { %9472 = vst [vmem:[#allocation141_spill] sm:$0xff] %v7964_v47  ;;  %v3237_v62 = vrot.slane %v3236_v12, 1  ;;  %v2924_v56 = vcombine.high %v7964_v47, %v7964_v47  ;;  %v3078_v51 = vsel %vm2950_vm6, %v7964_v47, -inf  ;;  %v3261_v28 = vrot.slane %v3260_v25, 4 }
 0x380   :  { %v3079_v60 = vrot.slane %v3078_v51, 4  ;;  %v2562_v9 = vsel %vm2533_vm4, %v2493_v16, %v2561_v39  ;;  %v7975_v7 = vmax.f32 %v3094_v19, %v3095_v49  ;;  %v2514_v48 = vrot.slane %v2465_v50, 4 }
 0x381   :  { %v3085_v23 = vsel %vm403_vm12, %v2924_v56, -inf  ;;  %v2625_v58 = vadd.f32 %v2562_v9, %v7848_v32  ;;  %v3262_v45 = vmax.f32 %v3260_v25, %v3261_v28  ;;  %vm2644_vm9 = vcmp.gt.f32.partialorder %v2612_v35, 0.0 }
 0x382   :  { %v3080_v15 = vmax.f32 %v3078_v51, %v3079_v60  ;;  %v3086_v20 = vrot.slane %v3085_v23, 4  ;;  %v2676_v63 = vmul.f32 0.01, %v2612_v35  ;;  %v2547_v47 = vsel %vm403_vm12, %v2514_v48, %v2515_v52 }
 0x383   :  { %vm2657_vm3 = vcmp.gt.f32.partialorder %v2625_v58, 0.0  ;;  %v2689_v18 = vmul.f32 0.01, %v2625_v58  ;;  %v7980_v16 = vmax.f32 %v3229_v54, %v3230_v2  ;;  %v7982_v59 = vmax.f32 %v3236_v12, %v3237_v62  ;;  %v2497_v54 = vpop.permute.xlu0 %2496 }
 0x384   :  { %v3087_v19 = vmax.f32 %v3085_v23, %v3086_v20  ;;  %v2548_v11 = vsel %vm2533_vm4, %v2465_v50, %v2547_v47  ;;  %v3081_v49 = vrot.slane %v3080_v15, 2  ;;  %v7987_v39 = vsel %vm2644_vm9, %v2612_v35, %v2676_v63 }
 0x385   :  { %v7985_v32 = vsel %vm2657_vm3, %v2625_v58, %v2689_v18  ;;  %9474 = vst [vmem:[#allocation154_spill] sm:$0xff] %v7987_v39  ;;  %v2611_v25 = vadd.f32 %v2548_v11, %v7888_v55  ;;  %v3263_v51 = vrot.slane %v3262_v45, 2  ;;  %v2531_v60 = vrot.slane %v2499_v57, 4 }
 0x386   :  { %9473 = vst [vmem:[#allocation150_spill] sm:$0xff] %v7985_v32  ;;  %v3088_v56 = vrot.slane %v3087_v19, 2  ;;  %v2932_v52 = vcombine.high %v7985_v32, %v7985_v32  ;;  %v3246_v12 = vsel %vm2950_vm6, %v7985_v32, -inf  ;;  %v3113_v2 = vsel %vm2965_vm5, %v7987_v39, -inf }
 0x387   :  { %vm2643_vm13 = vcmp.gt.f32.partialorder %v2611_v25, 0.0  ;;  %v2675_v47 = vmul.f32 0.01, %v2611_v25  ;;  %v3247_v63 = vrot.slane %v3246_v12, 4  ;;  %v3114_v55 = vrot.slane %v3113_v2, 4 }
 0x388   :  { %v3089_v50 = vmax.f32 %v3087_v19, %v3088_v56  ;;  %v3253_v62 = vsel %vm403_vm12, %v2932_v52, -inf  ;;  %v2628_v35 = vadd.f32 %v2499_v57, %v7903_v44  ;;  %v2530_v23 = vrot.slane %v2497_v54, 4 }
 0x389   :  { %v3254_v28 = vrot.slane %v3253_v62, 4  ;;  %v7997_v9 = vsel %vm2643_vm13, %v2611_v25, %v2675_v47  ;;  %v3082_v58 = vmax.f32 %v3080_v15, %v3081_v49  ;;  %v3248_v20 = vmax.f32 %v3246_v12, %v3247_v63 }
 0x38a   :  { %9475 = vst [vmem:[#allocation108_spill] sm:$0xff] %v7997_v9  ;;  %v3090_v48 = vrot.slane %v3089_v50, 1  ;;  %v2925_v18 = vcombine.high %v7997_v9, %v7997_v9  ;;  %v3099_v19 = vsel %vm2950_vm6, %v7997_v9, -inf  ;;  %vm2660_vm14 = vcmp.gt.f32.partialorder %v2628_v35, 0.0 }
 0x38b   :  { %v3255_v11 = vmax.f32 %v3253_v62, %v3254_v28  ;;  %v2692_v56 = vmul.f32 0.01, %v2628_v35  ;;  %v8004_v52 = vmax.f32 %v3262_v45, %v3263_v51  ;;  %v3249_v32 = vrot.slane %v3248_v20, 2 }
 0x38c   :  { %v8006_v25 = vmax.f32 %v3113_v2, %v3114_v55  ;;  %v3100_v47 = vrot.slane %v3099_v19, 4  ;;  %v3106_v44 = vsel %vm403_vm12, %v2925_v18, -inf  ;;  %v2563_v49 = vsel %vm403_vm12, %v2530_v23, %v2531_v60 }
 0x38d   :  { %v3256_v57 = vrot.slane %v3255_v11, 2  ;;  %v8009_v15 = vsel %vm2660_vm14, %v2628_v35, %v2692_v56  ;;  %v8012_v12 = vmax.f32 %v3089_v50, %v3090_v48  ;;  %v3107_v62 = vrot.slane %v3106_v44, 4 }
 0x38e   :  { %v3101_v63 = vmax.f32 %v3099_v19, %v3100_v47  ;;  %v3281_v28 = vsel %vm2965_vm5, %v8009_v15, -inf  ;;  %v2564_v2 = vsel %vm2533_vm4, %v2497_v54, %v2563_v49  ;;  %v3083_v55 = vrot.slane %v3082_v58, 1 }
 0x38f   :  { %v3257_v45 = vmax.f32 %v3255_v11, %v3256_v57  ;;  %v3282_v51 = vrot.slane %v3281_v28, 4  ;;  %v3116_v9 = vrot.slane %v8006_v25, 2  ;;  %v3108_v18 = vmax.f32 %v3106_v44, %v3107_v62 }
 0x390   :  { %v3102_v39 = vrot.slane %v3101_v63, 2  ;;  %v2627_v35 = vadd.f32 %v2564_v2, %v7908_v29  ;;  %v3250_v56 = vmax.f32 %v3248_v20, %v3249_v32  ;;  %v3337_v23 = vsel %vm3336_vm0, %v7615_v26, %v7599_v27 }
 0x391   :  { %v3258_v60 = vrot.slane %v3257_v45, 1  ;;  %v8019_v50 = vmax.f32 %v3281_v28, %v3282_v51  ;;  %v3109_v48 = vrot.slane %v3108_v18, 2  ;;  %v3084_v54 = vmax.f32 %v3082_v58, %v3083_v55 }
 0x392   :  { %vm2659_vm5 = vcmp.gt.f32.partialorder %v2627_v35, 0.0  ;;  %v2691_v11 = vmul.f32 0.01, %v2627_v35  ;;  %v3103_v19 = vmax.f32 %v3101_v63, %v3102_v39  ;;  %v3339_v47 = vsel %vm3338_vm7, %v7763_v3, %v3337_v23 }
 0x393   :  { %vm3340_vm4 = vcmask 1043459   ;;  %vm3342_vm1 = vcmask 1044484   ;;  %v3110_v57 = vmax.f32 %v3108_v18, %v3109_v48  ;;  %vm3344_vm2 = vcmask 1045509  }
 0x394   :  { %v8026_v29 = vsel %vm2659_vm5, %v2627_v35, %v2691_v11  ;;  %v3104_v32 = vrot.slane %v3103_v19, 1  ;;  %v3341_v20 = vsel %vm3340_vm4, %v7858_v43, %v3339_v47  ;;  %vm3346_vm8 = vcmask 1046534  }
 0x395   :  { %v2933_v27 = vcombine.high %v8026_v29, %v8026_v29  ;;  %v3267_v26 = vsel %vm2950_vm6, %v8026_v29, -inf  ;;  %v3343_v39 = vsel %vm3342_vm1, %v7900_v22, %v3341_v20  ;;  %v3111_v3 = vrot.slane %v3110_v57, 1 }
 0x396   :  { %v3268_v58 = vrot.slane %v3267_v26, 4  ;;  %v3105_v44 = vmax.f32 %v3103_v19, %v3104_v32  ;;  %v3345_v49 = vsel %vm3344_vm2, %v7958_v24, %v3343_v39  ;;  %vm3348_vm9 = vcmask 1047559  }
 0x397   :  { %v3274_v63 = vsel %vm403_vm12, %v2933_v27, -inf  ;;  %v3251_v43 = vrot.slane %v3250_v56, 1  ;;  %v3347_v51 = vsel %vm3346_vm8, %v3084_v54, %v3345_v49  ;;  %v3364_v22 = vsel %vm3336_vm0, %v7696_v6, %v7661_v4 }
 0x398   :  { %v3269_v62 = vmax.f32 %v3267_v26, %v3268_v58  ;;  %v3275_v28 = vrot.slane %v3274_v63, 4  ;;  %v3284_v2 = vrot.slane %v8019_v50, 2  ;;  %v8045_v55 = vsel %vm3348_vm9, %v3105_v44, %v3347_v51 }
 0x399   :  { %v3252_v18 = vmax.f32 %v3250_v56, %v3251_v43  ;;  %v3365_v24 = vsel %vm3338_vm7, %v7791_v34, %v3364_v22  ;;  %3385 = vrot.lane.b32.xlu0 %v8045_v55, %s4470_s19  ;;  %v3352_v4 = vsel %vm3340_vm4, %v7860_v21, %v7778_v36  ;;  %v3112_v56 = vmax.f32 %v3110_v57, %v3111_v3 }
 0x39a   :  { %v3270_v35 = vrot.slane %v3269_v62, 2  ;;  %v3276_v23 = vmax.f32 %v3274_v63, %v3275_v28  ;;  %v3366_v48 = vsel %vm3340_vm4, %v7862_v5, %v3365_v24  ;;  %v3353_v34 = vsel %vm3342_vm1, %v7915_v41, %v3352_v4 }
 0x39b   :  { %v3367_v6 = vsel %vm3342_vm1, %v7934_v40, %v3366_v48  ;;  %v3097_v11 = vrot.slane %v7975_v7, 1  ;;  %v3354_v5 = vsel %vm3344_vm2, %v7960_v0, %v3353_v34  ;;  %v3259_v32 = vmax.f32 %v3257_v45, %v3258_v60 }
 0x39c   :  { %v3277_v19 = vrot.slane %v3276_v23, 2  ;;  %v3271_v54 = vmax.f32 %v3269_v62, %v3270_v35  ;;  %v3368_v47 = vsel %vm3344_vm2, %v7980_v16, %v3367_v6  ;;  %v3355_v21 = vsel %vm3346_vm8, %v8012_v12, %v3354_v5 }
 0x39d   :  { %v3369_v36 = vsel %vm3346_vm8, %v3252_v18, %v3368_v47  ;;  %v3373_v41 = vsel %vm3340_vm4, %v7880_v17, %v7812_v14  ;;  %3448 = vrot.lane.b32.xlu0 %v8045_v55, %s9476_s26  ;;  %v3098_v0 = vmax.f32 %v7975_v7, %v3097_v11  ;;  %v8077_v45 = vsel %vm3348_vm9, %v3112_v56, %v3355_v21 }
 0x39e   :  { %v3278_v40 = vmax.f32 %v3276_v23, %v3277_v19  ;;  %v3272_v57 = vrot.slane %v3271_v54, 1  ;;  %v3374_v16 = vsel %vm3342_vm1, %v7936_v13, %v3373_v41  ;;  %v3117_v12 = vmax.f32 %v8006_v25, %v3116_v9 }
 0x39f   :  { %v3357_v14 = vsel %vm3336_vm0, %v7589_v8, %v7579_v53  ;;  %v3265_v17 = vrot.slane %v8004_v52, 1  ;;  %v3285_v7 = vmax.f32 %v8019_v50, %v3284_v2  ;;  %v3375_v27 = vsel %vm3344_vm2, %v7982_v59, %v3374_v16 }
 0x3a0   :  { %v3279_v60 = vrot.slane %v3278_v40, 1  ;;  %v3273_v20 = vmax.f32 %v3271_v54, %v3272_v57  ;;  %v3358_v13 = vsel %vm3338_vm7, %v7745_v37, %v3357_v14  ;;  %v3118_v26 = vrot.slane %v3117_v12, 1 }
 0x3a1   :  { %v3359_v9 = vsel %vm3340_vm4, %v7840_v61, %v3358_v13  ;;  %v3266_v25 = vmax.f32 %v8004_v52, %v3265_v17  ;;  %v3286_v39 = vrot.slane %v3285_v7, 1  ;;  %v3378_v37 = vsel %vm3336_vm0, %v7656_v31, %v7621_v1 }
 0x3a2   :  { %v8095_v53 = vsel %vm3348_vm9, %v3273_v20, %v3369_v36  ;;  %v3280_v8 = vmax.f32 %v3278_v40, %v3279_v60  ;;  %v3119_v59 = vmax.f32 %v3117_v12, %v3118_v26  ;;  %v3360_v61 = vsel %vm3342_vm1, %v7898_v10, %v3359_v9 }
 0x3a3   :  { %3391 = vrot.lane.b32.xlu1 %v8095_v53, %s4470_s19  ;;  %3452 = vrot.lane.b32.xlu0 %v8095_v53, %s9476_s26  ;;  %v3379_v52 = vsel %vm3338_vm7, %v7757_v30, %v3378_v37  ;;  %v3376_v50 = vsel %vm3346_vm8, %v3259_v32, %v3375_v27  ;;  %v3361_v3 = vsel %vm3344_vm2, %v7953_v33, %v3360_v61  ;;  %vm3470_vm6 = vcmask 1048184  }
 0x3a4   :  { %v3287_v58 = vmax.f32 %v3285_v7, %v3286_v39  ;;  %v3380_v1 = vsel %vm3340_vm4, %v7845_v46, %v3379_v52  ;;  %v8114_v31 = vsel %vm3348_vm9, %v3280_v8, %v3376_v50  ;;  %v3362_v44 = vsel %vm3346_vm8, %v3098_v0, %v3361_v3 }
 0x3a5   :  { %v3381_v10 = vsel %vm3342_vm1, %v7919_v38, %v3380_v1  ;;  %v3363_v30 = vsel %vm3348_vm9, %v3119_v59, %v3362_v44  ;;  %v8129_v33 = vsel %vm3470_vm6, %v8045_v55, -inf  ;;  %v8133_v38 = vsel %vm99_vm10, %v8077_v45, -inf }
 0x3a6   :  { %v3382_v49 = vsel %vm3344_vm2, %v7956_v42, %v3381_v10  ;;  %v3473_v42 = vmax.f32 %v8129_v33, %v8133_v38  ;;  %v8140_v43 = vsel %vm3470_vm6, %v8095_v53, -inf  ;;  %v8144_v62 = vsel %vm99_vm10, %v8114_v31, -inf }
 0x3a7   :  { %3450 = vrot.lane.b32.xlu1 %v8077_v45, %s9476_s26  ;;  %3387 = vrot.lane.b32.xlu0 %v8077_v45, %s4470_s19  ;;  %v3383_v46 = vsel %vm3346_vm8, %v3266_v25, %v3382_v49  ;;  %v8147_v28 = vsel %vm99_vm10, %v3363_v30, -inf  ;;  %v3478_v51 = vmax.f32 %v8140_v43, %v8144_v62  ;;  %v8153_v22 = vsel %vm3470_vm6, %v8077_v45, -inf  ;;  %v9479_v49 = vld [vmem:[#allocation92_spill] sm:$0xff] }
 0x3a8   :  { %v3384_v63 = vsel %vm3348_vm9, %v3287_v58, %v3383_v46  ;;  %v3551_v18 = vmax.f32 %v8153_v22, %v8147_v28  ;;  %vm3583_vm7 = vcmask 1047672   ;;  %v8162_v24 = vsel %vm3470_vm6, %v8114_v31, -inf  ;;  %v9480_v46 = vld [vmem:[#allocation33_spill] sm:$0xff] }
 0x3a9   :  { %v8156_v2 = vsel %vm99_vm10, %v3384_v63, -inf  ;;  %v8168_v35 = vsel %vm3583_vm7, %v8045_v55, -inf  ;;  %v8173_v48 = vsel %vm3583_vm7, %v8077_v45, -inf  ;;  %v8176_v4 = vsel %vm3583_vm7, %v8095_v53, -inf }
 0x3aa   :  { %v3556_v23 = vmax.f32 %v8162_v24, %v8156_v2  ;;  %v3585_v6 = vmax.f32 %v8168_v35, %v8133_v38  ;;  %v3616_v56 = vmax.f32 %v8173_v48, %v8147_v28  ;;  %v3589_v34 = vmax.f32 %v8176_v4, %v8144_v62  ;;  %v3675_v38 = vld [vmem:[%s9481_s8] sm:$0xff]  ;;  %v9483_v62 = vld [vmem:[#allocation217_spill] sm:$0xff] }
 0x3ab   :  { %3454 = vrot.lane.b32.xlu1 %v8114_v31, %s9476_s26  ;;  %3531 = vrot.lane.b32.xlu0 %v3363_v30, %s9476_s26  ;;  %v3649_v11 = vmax.f32 %v8168_v35, %v8147_v28  ;;  %v8187_v19 = vsel %vm3583_vm7, %v8114_v31, -inf  ;;  %v3653_v54 = vmax.f32 %v8176_v4, %v8156_v2  ;;  %vm3411_vm10 = vcmask 523264   ;;  %v3677_v28 = vld [vmem:[%s9481_s8 + $0x10] sm:$0xff]  ;;  %v3679_v24 = vld [vmem:[%s9481_s8 + $0x20] sm:$0xff] }
 0x3ac   :  { %v3620_v47 = vmax.f32 %v8187_v19, %v8156_v2  ;;  %vm3423_vm3 = vcmask 646264   ;;  %vm2854_vm13 = vcmask 924672   ;;  %v4471_v33 = vmov 0.0|0.0   ;;  %v9484_v2 = vld [vmem:[#allocation219_spill] sm:$0xff]  ;;  %v3680_v35 = vld [vmem:[%s9481_s8 + $0x28] sm:$0xff] }
 0x3ad   :  { %v8197_v5 = vmax.f32 %v3649_v11, %v8077_v45  ;;  %v8200_v32 = vmax.f32 %v3653_v54, %v8114_v31  ;;  %v3424_v17 = vsel %vm3423_vm3, %v8045_v55, -inf  ;;  %v3427_v59 = vsel %vm3423_vm3, %v8095_v53, -inf  ;;  %4207 = vmatprep.subr.bf16.mxu1 %v4471_v33  ;;  %v9486_v48 = vld [vmem:[#allocation101_spill] sm:$0xff]  ;;  %v9487_v4 = vld [vmem:[#allocation220_spill] sm:$0xff]  ;;  %v9490_v11 = vld [vmem:[#allocation34_spill] sm:$0xff] }
 0x3ae   :  { %v3508_v53 = vsel %vm3423_vm3, %v8077_v45, -inf  ;;  %v3511_v45 = vsel %vm3423_vm3, %v8114_v31, -inf  ;;  %v9491_v19 = vld [vmem:[#allocation151_spill] sm:$0xff]  ;;  %v9492_v54 = vld [vmem:[#allocation106_spill] sm:$0xff]  ;;  %vm3446_vm14 = vcmask 58368   ;;  %vm3496_vm5 = vcmask 123968  }
 0x3af   :  { %3393 = vrot.lane.b32.xlu1 %v8114_v31, %s4470_s19  ;;  %3389 = vrot.lane.b32.xlu0 %v3363_v30, %s4470_s19  ;;  %v9478_v30 = vld [vmem:[#allocation32_spill] sm:$0xff]  ;;  %vm3529_vm4 = vcmask 189568   ;;  %vm3574_vm1 = vcmask 255168   ;;  %vm3607_vm2 = vcmask 320768   ;;  %vm3638_vm8 = vcmask 386368  }
 0x3b0   :  { %vm3672_vm9 = vcmask 451968   ;;  %vm3877_vm6 = vcmask 1046528   ;;  %vm3873_vm3 = vcmask 56320  }
 0x3b3   :  { %3533 = vrot.lane.b32.xlu1 %v3384_v63, %s9476_s26 }
 0x3b7   :  { %3395 = vrot.lane.b32.xlu1 %v3384_v63, %s4470_s19  ;;  %v3676_v63 = vld [vmem:[%s9481_s8 + $0x8] sm:$0xff] }
 0x3b8   :  { %v4208_v43 = vpack.c.bf16 %v3676_v63, %v3675_v38 }
 0x3ba   :  { %4209 = vmatpush3.bf16.msra.mxu1 %v4208_v43 }
 0x3bb   :  { %4210 = vmatprep.subr.bf16.mxu1 %v4471_v33 }
 0x40b   :  { %v3386_v36 = vpop.permute.xlu0 %3385 }
 0x40c   :  { %v3412_v21 = vsel %vm3411_vm10, %v3386_v36, 0.0 }
 0x40d   :  { %3413 = vadd.xlane.f32.xlu0 %v3412_v21  ;;  %v9497_v21 = vld [vmem:[#allocation94_spill] sm:$0xff] }
 0x40f   :  { %v3449_v41 = vpop.permute.xlu0 %3448 }
 0x415   :  { %v3392_v40 = vpop.permute.xlu1 %3391  ;;  %v3453_v57 = vpop.permute.xlu0 %3452 }
 0x416   :  { %v3415_v16 = vsel %vm3411_vm10, %v3392_v40, 0.0 }
 0x417   :  { %3416 = vadd.xlane.f32.xlu1 %v3415_v16  ;;  %v9501_v16 = vld [vmem:[#allocation35_spill] sm:$0xff] }
 0x419   :  { %v3451_v0 = vpop.permute.xlu1 %3450  ;;  %v3388_v12 = vpop.permute.xlu0 %3387 }
 0x41a   :  { %v3456_v14 = vsel %vm2324_vm11, %v3449_v41, %v3451_v0  ;;  %v3397_v60 = vsel %vm2854_vm13, %v3386_v36, %v3388_v12  ;;  %v3500_v13 = vsel %vm3411_vm10, %v3388_v12, 0.0  ;;  %v9496_v36 = vld [vmem:[#allocation108_spill] sm:$0xff]  ;;  %v9498_v41 = vld [vmem:[#allocation95_spill] sm:$0xff] }
 0x41b   :  { %3425 = vmax.xlane.f32.xlu1 %v3424_v17  ;;  %v3460_v20 = vsel %vm3411_vm10, %v3456_v14, 0.0  ;;  %3405 = vst [vmem:[%s9477_s28] sm:$0xff] %v3397_v60  ;;  %v9504_v14 = vld [vmem:[#allocation100_spill] sm:$0xff]  ;;  %v9505_v17 = vld [vmem:[#allocation105_spill] sm:$0xff] }
 0x41c   :  { %3461 = vadd.xlane.f32.xlu0 %v3460_v20  ;;  %v9507_v20 = vld [vmem:[#allocation48_spill] sm:$0xff] }
 0x41d   :  { %v3455_v7 = vpop.permute.xlu1 %3454  ;;  %v3532_v27 = vpop.permute.xlu0 %3531 }
 0x41e   :  { %v3457_v26 = vsel %vm2324_vm11, %v3453_v57, %v3455_v7  ;;  %v3535_v37 = vsel %vm2324_vm11, %v3451_v0, %v3532_v27  ;;  %v9500_v57 = vld [vmem:[#allocation96_spill] sm:$0xff]  ;;  %v9502_v0 = vld [vmem:[#allocation218_spill] sm:$0xff] }
 0x41f   :  { %3501 = vadd.xlane.f32.xlu1 %v3500_v13  ;;  %v3463_v9 = vsel %vm3411_vm10, %v3457_v26, 0.0  ;;  %v3539_v52 = vsel %vm3411_vm10, %v3535_v37, 0.0  ;;  %v9508_v13 = vld [vmem:[#allocation107_spill] sm:$0xff] }
 0x420   :  { %3464 = vadd.xlane.f32.xlu0 %v3463_v9 }
 0x421   :  { %v3394_v55 = vpop.permute.xlu1 %3393  ;;  %v3390_v25 = vpop.permute.xlu0 %3389 }
 0x422   :  { %v3398_v8 = vsel %vm2854_vm13, %v3388_v12, %v3390_v25  ;;  %v3399_v39 = vsel %vm2854_vm13, %v3392_v40, %v3394_v55  ;;  %v3503_v50 = vsel %vm3411_vm10, %v3394_v55, 0.0  ;;  %v9499_v40 = vld [vmem:[#allocation98_spill] sm:$0xff]  ;;  %v9510_v25 = vlaneseq }
 0x423   :  { %3474 = vmax.xlane.f32.xlu1 %v3473_v42  ;;  %3406 = vst [vmem:[%s9477_s28 + $0x8] sm:$0xff] %v3398_v8  ;;  %3407 = vst [vmem:[%s9477_s28 + $0x10] sm:$0xff] %v3399_v39  ;;  %v3640_v10 = vadd.f32 %v3398_v8, %v3397_v60  ;;  %v9482_v42 = vld [vmem:[#allocation97_spill] sm:$0xff]  ;;  %v9503_v12 = vld [vmem:[#allocation102_spill] sm:$0xff] }
 0x424   :  { %3428 = vmax.xlane.f32.xlu0 %v3427_v59 }
 0x425   :  { %v3534_v61 = vpop.permute.xlu1 %3533 }
 0x426   :  { %v3536_v1 = vsel %vm2324_vm11, %v3455_v7, %v3534_v61  ;;  %vm4472_vm11 = vmmov 0   ;;  %v9509_v7 = vld [vmem:[#allocation150_spill] sm:$0xff] }
 0x427   :  { %3540 = vadd.xlane.f32.xlu1 %v3539_v52  ;;  %v3542_v44 = vsel %vm3411_vm10, %v3536_v1, 0.0  ;;  %v9511_v52 = vld [vmem:[#allocation6_spill] sm:$0xff] }
 0x428   :  { %3504 = vadd.xlane.f32.xlu0 %v3503_v50 }
 0x429   :  { %v3396_v3 = vpop.permute.xlu1 %3395 }
 0x42a   :  { %v3400_v58 = vsel %vm2854_vm13, %v3394_v55, %v3396_v3 }
 0x42b   :  { %3509 = vmax.xlane.f32.xlu1 %v3508_v53  ;;  %3408 = vst [vmem:[%s9477_s28 + $0x18] sm:$0xff] %v3400_v58  ;;  %v3643_v31 = vadd.f32 %v3400_v58, %v3399_v39 }
 0x42c   :  { %3479 = vmax.xlane.f32.xlu0 %v3478_v51  ;;  %v3678_v51 = vld [vmem:[%s9481_s8 + $0x18] sm:$0xff] }
 0x42d   :  { %v4211_v22 = vpack.c.bf16 %v3678_v51, %v3677_v28 }
 0x42f   :  { %3576 = vadd.xlane.f32.xlu1 %v3397_v60  ;;  %4212 = vmatpush3.bf16.msra.mxu1 %v4211_v22  ;;  %v9506_v60 = vld [vmem:[#allocation103_spill] sm:$0xff] }
 0x430   :  { %3543 = vadd.xlane.f32.xlu0 %v3542_v44  ;;  %4213 = vmatprep.subr.bf16.mxu1 %v4471_v33 }
 0x433   :  { %3552 = vmax.xlane.f32.xlu1 %v3551_v18  ;;  %v9485_v18 = vld [vmem:[#allocation99_spill] sm:$0xff] }
 0x434   :  { %3512 = vmax.xlane.f32.xlu0 %v3511_v45 }
 0x437   :  { %3609 = vadd.xlane.f32.xlu1 %v3398_v8  ;;  %v8358_v8 = vand.u32 127, %v9510_v25 }
 0x438   :  { %3578 = vadd.xlane.f32.xlu0 %v3399_v39 }
 0x439   :  { %v3518_v28 = vadd.s32 4294967280, %v8358_v8 }
 0x43b   :  { %3586 = vmax.xlane.f32.xlu1 %v3585_v6  ;;  %v9488_v6 = vmov 0.0  }
 0x43c   :  { %3557 = vmax.xlane.f32.xlu0 %v3556_v23  ;;  %v4214_v23 = vpack.c.bf16 %v3680_v35, %v3679_v24  ;;  %4137 = vmatprep.mubr.msk.f32.mxu1 %vm4472_vm11, %v9488_v6 }
 0x43d   :  { %4173 = vmatprep.mubr.msk.f32.mxu0 %vm4472_vm11, %v9488_v6 }
 0x43e   :  { %4215 = vmatpush3.bf16.msra.mxu1 %v4214_v23  ;;  %v3521_v23 = vsub.s32 %v3518_v28, %v9511_v52 }
 0x43f   :  { %3641 = vadd.xlane.f32.xlu1 %v3640_v10  ;;  %4135 = vmatprep.subr.mxu1 %v9488_v6 }
 0x440   :  { %3611 = vadd.xlane.f32.xlu0 %v3400_v58 }
 0x443   :  { %3617 = vmax.xlane.f32.xlu1 %v3616_v56  ;;  %v3681_v56 = vld [vmem:[%s9481_s8 + $0x30] sm:$0xff] }
 0x444   :  { %3590 = vmax.xlane.f32.xlu0 %v3589_v34  ;;  %v9489_v34 = vld [vmem:[#allocation104_spill] sm:$0xff]  ;;  %4136 = vmatpush3.msra.mxu1 %v3681_v56 }
 0x445   :  { %4216 = vmatprep.subr.bf16.mxu1 %v4471_v33 }
 0x447   :  { %3651 = vmax.xlane.f32.xlu1 %v8197_v5  ;;  %v9494_v5 = vld [vmem:[#allocation141_spill] sm:$0xff] }
 0x448   :  { %3644 = vadd.xlane.f32.xlu0 %v3643_v31 }
 0x44c   :  { %3621 = vmax.xlane.f32.xlu0 %v3620_v47  ;;  %v9493_v47 = vld [vmem:[#allocation154_spill] sm:$0xff] }
 0x450   :  { %3655 = vmax.xlane.f32.xlu0 %v8200_v32  ;;  %v9495_v32 = vld [vmem:[#allocation93_spill] sm:$0xff] }
 0x458   :  { %2757 = vrot.lane.b32.xlu1 %v9478_v30, %s4470_s19 }
 0x45c   :  { %2761 = vrot.lane.b32.xlu1 %v9479_v49, %s4470_s19 }
 0x460   :  { %2763 = vrot.lane.b32.xlu1 %v9480_v46, %s4470_s19 }
 0x464   :  { %2767 = vrot.lane.b32.xlu1 %v9482_v42, %s4470_s19 }
 0x466   :  { %2759 = vrot.lane.b32.xlu0 %v9483_v62, %s4470_s19 }
 0x468   :  { %2771 = vrot.lane.b32.xlu1 %v9484_v2, %s4470_s19 }
 0x46a   :  { %2765 = vrot.lane.b32.xlu0 %v9485_v18, %s4470_s19 }
 0x46c   :  { %2775 = vrot.lane.b32.xlu1 %v9486_v48, %s4470_s19 }
 0x46e   :  { %2769 = vrot.lane.b32.xlu0 %v9487_v4, %s4470_s19 }
 0x470   :  { %2779 = vrot.lane.b32.xlu1 %v9489_v34, %s4470_s19 }
 0x472   :  { %2773 = vrot.lane.b32.xlu0 %v9490_v11, %s4470_s19 }
 0x474   :  { %2783 = vrot.lane.b32.xlu1 %v9491_v19, %s4470_s19  ;;  %v3563_v19 = vadd.s32 4294967272, %v8358_v8 }
 0x476   :  { %2777 = vrot.lane.b32.xlu0 %v9492_v54, %s4470_s19 }
 0x478   :  { %2787 = vrot.lane.b32.xlu1 %v9493_v47, %s4470_s19 }
 0x47a   :  { %2781 = vrot.lane.b32.xlu0 %v9494_v5, %s4470_s19 }
 0x47c   :  { %2791 = vrot.lane.b32.xlu1 %v9495_v32, %s4470_s19 }
 0x47e   :  { %2785 = vrot.lane.b32.xlu0 %v9496_v36, %s4470_s19 }
 0x480   :  { %2795 = vrot.lane.b32.xlu1 %v9497_v21, %s4470_s19 }
 0x482   :  { %2789 = vrot.lane.b32.xlu0 %v9498_v41, %s4470_s19  ;;  %v3566_v41 = vsub.s32 %v3563_v19, %v9511_v52 }
 0x484   :  { %2799 = vrot.lane.b32.xlu1 %v9499_v40, %s4470_s19 }
 0x486   :  { %2793 = vrot.lane.b32.xlu0 %v9500_v57, %s4470_s19 }
 0x488   :  { %2803 = vrot.lane.b32.xlu1 %v9501_v16, %s4470_s19 }
 0x48a   :  { %2797 = vrot.lane.b32.xlu0 %v9502_v0, %s4470_s19 }
 0x48c   :  { %2807 = vrot.lane.b32.xlu1 %v9503_v12, %s4470_s19 }
 0x48e   :  { %2801 = vrot.lane.b32.xlu0 %v9504_v14, %s4470_s19  ;;  %v3596_v14 = vadd.s32 4294967264, %v8358_v8 }
 0x490   :  { %2811 = vrot.lane.b32.xlu1 %v9505_v17, %s4470_s19 }
 0x492   :  { %2805 = vrot.lane.b32.xlu0 %v9506_v60, %s4470_s19 }
 0x494   :  { %2815 = vrot.lane.b32.xlu1 %v9507_v20, %s4470_s19 }
 0x496   :  { %2809 = vrot.lane.b32.xlu0 %v9508_v13, %s4470_s19 }
 0x498   :  { %2819 = vrot.lane.b32.xlu1 %v8009_v15, %s4470_s19  ;;  %v3438_v15 = vsub.s32 %v8358_v8, %v9511_v52 }
 0x49a   :  { %2813 = vrot.lane.b32.xlu0 %v9509_v7, %s4470_s19  ;;  %v3414_v26 = vpop.xlane.xlu0 %3413 }
 0x49b   :  { %v3419_v59 = vmul.f32 0.015625, %v3414_v26  ;;  %v3599_v26 = vsub.s32 %v3596_v14, %v9511_v52  ;;  %v3778_v14 = vld [vmem:[%s9514_s6 + $0x18] sm:$0xff] }
 0x49e   :  { %2817 = vrot.lane.b32.xlu0 %v8026_v29, %s4470_s19  ;;  %v3485_v29 = vadd.s32 4294967288, %v8358_v8 }
 0x4a0   :  { %v3488_v46 = vsub.s32 %v3485_v29, %v9511_v52 }
 0x4a4   :  { %v3417_v27 = vpop.xlane.xlu1 %3416 }
 0x4a5   :  { %v3420_v61 = vmul.f32 0.015625, %v3417_v27 }
 0x4a8   :  { %v3426_v9 = vpop.xlane.xlu1 %3425 }
 0x4a9   :  { %v3462_v55 = vpop.xlane.xlu0 %3461  ;;  %v3430_v50 = vadd.f32 %v3426_v9, %v3419_v59  ;;  %v3627_v59 = vadd.s32 4294967256, %v8358_v8 }
 0x4aa   :  { %v3466_v31 = vmul.f32 0.015625, %v3462_v55 }
 0x4ab   :  { %v3439_v1 = vrot.slane %v3430_v50, %v3438_v15  ;;  %v3630_v29 = vsub.s32 %v3627_v59, %v9511_v52 }
 0x4ac   :  { %v3502_v39 = vpop.xlane.xlu1 %3501 }
 0x4ad   :  { %v3465_v37 = vpop.xlane.xlu0 %3464  ;;  %v3506_v18 = vmul.f32 0.015625, %v3502_v39 }
 0x4ae   :  { %v3467_v49 = vmul.f32 0.015625, %v3465_v37 }
 0x4b0   :  { %v3475_v3 = vpop.xlane.xlu1 %3474 }
 0x4b1   :  { %v3429_v53 = vpop.xlane.xlu0 %3428  ;;  %v3481_v38 = vadd.f32 %v3475_v3, %v3466_v31 }
 0x4b2   :  { %v3431_v58 = vadd.f32 %v3429_v53, %v3420_v61 }
 0x4b3   :  { %v3489_v62 = vrot.slane %v3481_v38, %v3488_v46 }
 0x4b4   :  { %v3443_v44 = vrot.slane %v3431_v58, %v3438_v15  ;;  %v3541_v45 = vpop.xlane.xlu1 %3540  ;;  %v3661_v58 = vadd.s32 4294967248, %v8358_v8 }
 0x4b5   :  { %v3505_v10 = vpop.xlane.xlu0 %3504  ;;  %v3545_v32 = vmul.f32 0.015625, %v3541_v45 }
 0x4b6   :  { %v3444_v30 = vsel %vm3336_vm0, %v3443_v44, %v3439_v1  ;;  %v3507_v35 = vmul.f32 0.015625, %v3505_v10 }
 0x4b7   :  { %3447 = vst.msk [vmem:[%s9512_s23] sm:$0x3] %vm3446_vm14, %v3444_v30 }
 0x4b8   :  { %v3510_v63 = vpop.xlane.xlu1 %3509 }
 0x4b9   :  { %v3480_v42 = vpop.xlane.xlu0 %3479  ;;  %v3514_v48 = vadd.f32 %v3510_v63, %v3506_v18 }
 0x4ba   :  { %v3482_v43 = vadd.f32 %v3480_v42, %v3467_v49  ;;  %v3664_v49 = vsub.s32 %v3661_v58, %v9511_v52  ;;  %v3782_v58 = vld [vmem:[%s9514_s6 + $0x38] sm:$0xff] }
 0x4bb   :  { %v3522_v11 = vrot.slane %v3514_v48, %v3521_v23 }
 0x4bc   :  { %v3493_v51 = vrot.slane %v3482_v43, %v3488_v46  ;;  %v3577_v22 = vpop.xlane.xlu1 %3576 }
 0x4bd   :  { %v3544_v2 = vpop.xlane.xlu0 %3543  ;;  %v3581_v13 = vmul.f32 0.0078125, %v3577_v22 }
 0x4be   :  { %v3494_v24 = vsel %vm3336_vm0, %v3493_v51, %v3489_v62  ;;  %v3546_v21 = vmul.f32 0.015625, %v3544_v2 }
 0x4bf   :  { %3497 = vst.msk [vmem:[%s9512_s23] sm:$0x3] %vm3496_vm5, %v3494_v24 }
 0x4c0   :  { %v3553_v4 = vpop.xlane.xlu1 %3552 }
 0x4c1   :  { %v3513_v56 = vpop.xlane.xlu0 %3512  ;;  %v3559_v40 = vadd.f32 %v3553_v4, %v3545_v32  ;;  %v3776_v32 = vld [vmem:[%s9514_s6 + $0x8] sm:$0xff] }
 0x4c2   :  { %v3515_v34 = vadd.f32 %v3513_v56, %v3507_v35 }
 0x4c3   :  { %v3567_v12 = vrot.slane %v3559_v40, %v3566_v41 }
 0x4c4   :  { %v3526_v54 = vrot.slane %v3515_v34, %v3521_v23  ;;  %v3610_v47 = vpop.xlane.xlu1 %3609 }
 0x4c5   :  { %v3579_v5 = vpop.xlane.xlu0 %3578  ;;  %v3613_v3 = vmul.f32 0.0078125, %v3610_v47 }
 0x4c6   :  { %v3527_v36 = vsel %vm3336_vm0, %v3526_v54, %v3522_v11  ;;  %v3582_v27 = vmul.f32 0.0078125, %v3579_v5  ;;  %v3775_v5 = vld [vmem:[%s9514_s6] sm:$0xff] }
 0x4c7   :  { %3530 = vst.msk [vmem:[%s9512_s23] sm:$0x3] %vm3529_vm4, %v3527_v36  ;;  %v4217_v40 = vpack.c.bf16 %v3776_v32, %v3775_v5 }
 0x4c8   :  { %v3587_v57 = vpop.xlane.xlu1 %3586 }
 0x4c9   :  { %v3558_v16 = vpop.xlane.xlu0 %3557  ;;  %v3592_v9 = vadd.f32 %v3587_v57, %v3581_v13 }
 0x4ca   :  { %v3560_v0 = vadd.f32 %v3558_v16, %v3546_v21 }
 0x4cb   :  { %v3600_v37 = vrot.slane %v3592_v9, %v3599_v26 }
 0x4cc   :  { %v3571_v17 = vrot.slane %v3560_v0, %v3566_v41  ;;  %v3642_v60 = vpop.xlane.xlu1 %3641 }
 0x4cd   :  { %v3612_v20 = vpop.xlane.xlu0 %3611  ;;  %v3647_v31 = vmul.f32 0.00390625, %v3642_v60 }
 0x4ce   :  { %v3572_v7 = vsel %vm3336_vm0, %v3571_v17, %v3567_v12  ;;  %v3614_v1 = vmul.f32 0.0078125, %v3612_v20  ;;  %v3777_v12 = vld [vmem:[%s9514_s6 + $0x10] sm:$0xff] }
 0x4cf   :  { %3575 = vst.msk [vmem:[%s9512_s23] sm:$0x3] %vm3574_vm1, %v3572_v7  ;;  %v4220_v7 = vpack.c.bf16 %v3778_v14, %v3777_v12 }
 0x4d0   :  { %v3618_v55 = vpop.xlane.xlu1 %3617 }
 0x4d1   :  { %v3591_v25 = vpop.xlane.xlu0 %3590  ;;  %v3623_v44 = vadd.f32 %v3618_v55, %v3613_v3  ;;  %v3779_v55 = vld [vmem:[%s9514_s6 + $0x20] sm:$0xff] }
 0x4d2   :  { %v3593_v39 = vadd.f32 %v3591_v25, %v3582_v27  ;;  %v3780_v25 = vld [vmem:[%s9514_s6 + $0x28] sm:$0xff] }
 0x4d3   :  { %v3631_v46 = vrot.slane %v3623_v44, %v3630_v29 }
 0x4d4   :  { %v3604_v61 = vrot.slane %v3593_v39, %v3599_v26  ;;  %v3652_v15 = vpop.xlane.xlu1 %3651 }
 0x4d5   :  { %v3645_v50 = vpop.xlane.xlu0 %3644  ;;  %v3657_v38 = vadd.f32 %v3652_v15, %v3647_v31 }
 0x4d6   :  { %v3605_v53 = vsel %vm3336_vm0, %v3604_v61, %v3600_v37  ;;  %v3648_v63 = vmul.f32 0.00390625, %v3645_v50  ;;  %v4223_v61 = vpack.c.bf16 %v3780_v25, %v3779_v55 }
 0x4d7   :  { %3608 = vst.msk [vmem:[%s9512_s23] sm:$0x3] %vm3607_vm2, %v3605_v53  ;;  %v3665_v51 = vrot.slane %v3657_v38, %v3664_v49  ;;  %v3781_v53 = vld [vmem:[%s9514_s6 + $0x30] sm:$0xff] }
 0x4d8   :  { %v2758_v45 = vpop.permute.xlu1 %2757 }
 0x4d9   :  { %v3622_v10 = vpop.xlane.xlu0 %3621  ;;  %v2821_v35 = vrot.slane %v2758_v45, 4 }
 0x4da   :  { %v3624_v30 = vadd.f32 %v3622_v10, %v3614_v1 }
 0x4dc   :  { %v3635_v42 = vrot.slane %v3624_v30, %v3630_v29  ;;  %v2762_v43 = vpop.permute.xlu1 %2761 }
 0x4dd   :  { %v3656_v62 = vpop.xlane.xlu0 %3655  ;;  %v2823_v18 = vrot.slane %v2762_v43, 4 }
 0x4de   :  { %v3636_v28 = vsel %vm3336_vm0, %v3635_v42, %v3631_v46  ;;  %v3658_v8 = vadd.f32 %v3656_v62, %v3648_v63  ;;  %v3784_v46 = vld [vmem:[%s9514_s6 + $0x48] sm:$0xff] }
 0x4df   :  { %3639 = vst.msk [vmem:[%s9512_s23] sm:$0x3] %vm3638_vm8, %v3636_v28 }
 0x4e0   :  { %v3669_v22 = vrot.slane %v3658_v8, %v3664_v49  ;;  %v2764_v2 = vpop.permute.xlu1 %2763  ;;  %v3783_v49 = vld [vmem:[%s9514_s6 + $0x40] sm:$0xff] }
 0x4e1   :  { %v2824_v52 = vrot.slane %v2764_v2, 4  ;;  %v2760_v24 = vpop.permute.xlu0 %2759 }
 0x4e2   :  { %v3670_v23 = vsel %vm3336_vm0, %v3669_v22, %v3665_v51  ;;  %v2822_v48 = vrot.slane %v2760_v24, 4  ;;  %vm3682_vm0 = vcmask 457728  }
 0x4e3   :  { %3673 = vst.msk [vmem:[%s9512_s23] sm:$0x3] %vm3672_vm9, %v3670_v23  ;;  %v2856_v4 = vsel %vm403_vm12, %v2823_v18, %v2824_v52 }
 0x4e4   :  { %v2857_v56 = vsel %vm2854_vm13, %v2762_v43, %v2856_v4  ;;  %v2853_v34 = vsel %vm403_vm12, %v2821_v35, %v2822_v48  ;;  %v2768_v11 = vpop.permute.xlu1 %2767  ;;  %v4229_v43 = vpack.c.bf16 %v3784_v46, %v3783_v49  ;;  %v3787_v49 = vld [vmem:[%s9514_s6 + $0x60] sm:$0xff] }
 0x4e5   :  { %2903 = vst [vmem:[%s9513_s21 + $0x8] sm:$0xff] %v2857_v56  ;;  %v2855_v19 = vsel %vm2854_vm13, %v2758_v45, %v2853_v34  ;;  %v2826_v54 = vrot.slane %v2768_v11, 4  ;;  %v2766_v47 = vpop.permute.xlu0 %2765  ;;  %v4226_v45 = vpack.c.bf16 %v3782_v58, %v3781_v53 }
 0x4e6   :  { %2902 = vst [vmem:[%s9513_s21] sm:$0xff] %v2855_v19  ;;  %v2825_v36 = vrot.slane %v2766_v47, 4 }
 0x4e8   :  { %v2858_v21 = vsel %vm403_vm12, %v2825_v36, %v2826_v54  ;;  %v2772_v41 = vpop.permute.xlu1 %2771 }
 0x4e9   :  { %v2859_v57 = vsel %vm2854_vm13, %v2766_v47, %v2858_v21  ;;  %v2828_v16 = vrot.slane %v2772_v41, 4  ;;  %v2770_v0 = vpop.permute.xlu0 %2769 }
 0x4ea   :  { %2904 = vst [vmem:[%s9513_s21 + $0x10] sm:$0xff] %v2859_v57  ;;  %v2827_v17 = vrot.slane %v2770_v0, 4  ;;  %v3674_v60 = vld [vmem:[%s9512_s23] sm:$0x3] }
 0x4eb   :  { %4138 = vmatmul.mubr.msk.f32.vlgmr.msra.gmra.mrb[0].mxu1 %vm3682_vm0, %v3674_v60 }
 0x4ec   :  { %v2860_v20 = vsel %vm403_vm12, %v2827_v17, %v2828_v16  ;;  %v2776_v13 = vpop.permute.xlu1 %2775  ;;  %4218 = vmatpush3.bf16.msra.mxu1 %v4217_v40  ;;  %4168 = vmatprep.mubr.msk.f32.mxu1 %vm4472_vm11, %v9488_v6 }
 0x4ed   :  { %v2861_v27 = vsel %vm2854_vm13, %v2770_v0, %v2860_v20  ;;  %v2830_v26 = vrot.slane %v2776_v13, 4  ;;  %v2774_v9 = vpop.permute.xlu0 %2773  ;;  %4219 = vmatprep.subr.bf16.mxu1 %v4471_v33 }
 0x4ee   :  { %2905 = vst [vmem:[%s9513_s21 + $0x18] sm:$0xff] %v2861_v27  ;;  %v2829_v39 = vrot.slane %v2774_v9, 4 }
 0x4f0   :  { %v2862_v37 = vsel %vm403_vm12, %v2829_v39, %v2830_v26  ;;  %v2780_v59 = vpop.permute.xlu1 %2779  ;;  %4221 = vmatpush3.bf16.msra.mxu1 %v4220_v7 }
 0x4f1   :  { %v2863_v15 = vsel %vm2854_vm13, %v2774_v9, %v2862_v37  ;;  %v2832_v50 = vrot.slane %v2780_v59, 4  ;;  %v2778_v3 = vpop.permute.xlu0 %2777  ;;  %4222 = vmatprep.subr.bf16.mxu1 %v4471_v33 }
 0x4f2   :  { %2906 = vst [vmem:[%s9513_s21 + $0x20] sm:$0xff] %v2863_v15  ;;  %v2831_v1 = vrot.slane %v2778_v3, 4 }
 0x4f4   :  { %v2864_v29 = vsel %vm403_vm12, %v2831_v1, %v2832_v50  ;;  %v2784_v44 = vpop.permute.xlu1 %2783  ;;  %4224 = vmatpush3.bf16.msra.mxu1 %v4223_v61 }
 0x4f5   :  { %v2865_v10 = vsel %vm2854_vm13, %v2778_v3, %v2864_v29  ;;  %v2834_v31 = vrot.slane %v2784_v44, 4  ;;  %v2782_v30 = vpop.permute.xlu0 %2781  ;;  %4225 = vmatprep.subr.bf16.mxu1 %v4471_v33 }
 0x4f6   :  { %2907 = vst [vmem:[%s9513_s21 + $0x28] sm:$0xff] %v2865_v10  ;;  %v2833_v38 = vrot.slane %v2782_v30, 4 }
 0x4f8   :  { %v2866_v63 = vsel %vm403_vm12, %v2833_v38, %v2834_v31  ;;  %v2788_v42 = vpop.permute.xlu1 %2787  ;;  %4227 = vmatpush3.bf16.msra.mxu1 %v4226_v45  ;;  %v3785_v31 = vld [vmem:[%s9514_s6 + $0x50] sm:$0xff]  ;;  %v3788_v38 = vld [vmem:[%s9514_s6 + $0x68] sm:$0xff] }
 0x4f9   :  { %v2867_v62 = vsel %vm2854_vm13, %v2782_v30, %v2866_v63  ;;  %v2836_v28 = vrot.slane %v2788_v42, 4  ;;  %v2786_v8 = vpop.permute.xlu0 %2785  ;;  %4228 = vmatprep.subr.bf16.mxu1 %v4471_v33  ;;  %v3786_v30 = vld [vmem:[%s9514_s6 + $0x58] sm:$0xff]  ;;  %v4235_v63 = vpack.c.bf16 %v3788_v38, %v3787_v49  ;;  %v4077_v42 = vld [vmem:[%s9515_s9] ss:$0 sm:$0xff] }
 0x4fa   :  { %2908 = vst [vmem:[%s9513_s21 + $0x30] sm:$0xff] %v2867_v62  ;;  %v2835_v51 = vrot.slane %v2786_v8, 4  ;;  %v4232_v46 = vpack.c.bf16 %v3786_v30, %v3785_v31  ;;  %v4078_v62 = vld [vmem:[%s9516_s24] ss:$0 sm:$0xff] }
 0x4fc   :  { %v2868_v22 = vsel %vm403_vm12, %v2835_v51, %v2836_v28  ;;  %v2792_v2 = vpop.permute.xlu1 %2791  ;;  %4230 = vmatpush3.bf16.msra.mxu1 %v4229_v43 }
 0x4fd   :  { %v2869_v18 = vsel %vm2854_vm13, %v2786_v8, %v2868_v22  ;;  %v2838_v52 = vrot.slane %v2792_v2, 4  ;;  %v2790_v24 = vpop.permute.xlu0 %2789  ;;  %4231 = vmatprep.subr.bf16.mxu1 %v4471_v33  ;;  %v3872_v2 = vld [vmem:[%s9518_s20] sm:$0x7f]  ;;  %s4056_s20 = sshll.u32 %s4473_s22, 4  ;;  %s4057_s20 = int_to_ptr.vmem [resolvable:$true] %s4056_s20 }
 0x4fe   :  { %2909 = vst [vmem:[%s9513_s21 + $0x38] sm:$0xff] %v2869_v18  ;;  %v2837_v35 = vrot.slane %v2790_v24, 4  ;;  %4172 = vmatpush3.msk.msra.mxu0 %vm3877_vm6, %v3872_v2  ;;  %s4430_s18 = scalar_lea.vmem %s4057_s20, 32  ;;  %p4435_p1 = scmp.lt.s32.totalorder %s4057_s20, %s4057_s20 }
 0x4ff   :  { %4237 = vmatprep.subr.bf16.mxu0 %v4471_v33  ;;  %p4431_p0 = scmp.ne.s32.totalorder %s4057_s20, %s4430_s18  ;;  %p4436_p2 = scmp.lt.s32.totalorder %s4430_s18, %s4430_s18 }
 0x500   :  { %v2870_v23 = vsel %vm403_vm12, %v2837_v35, %v2838_v52  ;;  %v2796_v48 = vpop.permute.xlu1 %2795  ;;  %4233 = vmatpush3.bf16.msra.mxu1 %v4232_v46 }
 0x501   :  { %v2871_v4 = vsel %vm2854_vm13, %v2790_v24, %v2870_v23  ;;  %v2840_v56 = vrot.slane %v2796_v48, 4  ;;  %v2794_v34 = vpop.permute.xlu0 %2793  ;;  %4234 = vmatprep.subr.bf16.mxu1 %v4471_v33  ;;  %p4437_p3 = por %p4436_p2, %p4435_p1 }
 0x502   :  { %2910 = vst [vmem:[%s9513_s21 + $0x40] sm:$0xff] %v2871_v4  ;;  %v2839_v11 = vrot.slane %v2794_v34, 4 }
 0x503   :  { %p4438_p4 = pnand %p4437_p3, %p4431_p0 }
 0x504   :  { %v2872_v19 = vsel %vm403_vm12, %v2839_v11, %v2840_v56  ;;  %v2800_v54 = vpop.permute.xlu1 %2799  ;;  %4236 = vmatpush3.bf16.msra.mxu1 %v4235_v63  ;;  %v3954_v11 = vld [vmem:[%s9519_s1 + $0x8] sm:$0xff] }
 0x505   :  { %v2873_v47 = vsel %vm2854_vm13, %v2794_v34, %v2872_v19  ;;  %v2842_v5 = vrot.slane %v2800_v54, 4  ;;  %v2798_v32 = vpop.permute.xlu0 %2797  ;;  %v3953_v34 = vld [vmem:[%s9519_s1] sm:$0xff]  ;;  %v3955_v54 = vld [vmem:[%s9519_s1 + $0x10] sm:$0xff] }
 0x506   :  { %2911 = vst [vmem:[%s9513_s21 + $0x48] sm:$0xff] %v2873_v47  ;;  %v2841_v36 = vrot.slane %v2798_v32, 4  ;;  %v4238_v19 = vpack.c.bf16 %v3954_v11, %v3953_v34  ;;  %v3956_v47 = vld [vmem:[%s9519_s1 + $0x18] sm:$0xff] }
 0x508   :  { %v2874_v21 = vsel %vm403_vm12, %v2841_v36, %v2842_v5  ;;  %v2804_v41 = vpop.permute.xlu1 %2803  ;;  %v3957_v36 = vld [vmem:[%s9519_s1 + $0x20] sm:$0xff] }
 0x509   :  { %v2875_v40 = vsel %vm2854_vm13, %v2798_v32, %v2874_v21  ;;  %v2844_v57 = vrot.slane %v2804_v41, 4  ;;  %v2802_v16 = vpop.permute.xlu0 %2801  ;;  %v4241_v32 = vpack.c.bf16 %v3956_v47, %v3955_v54  ;;  %v3958_v21 = vld [vmem:[%s9519_s1 + $0x28] sm:$0xff] }
 0x50a   :  { %2912 = vst [vmem:[%s9513_s21 + $0x50] sm:$0xff] %v2875_v40  ;;  %v2843_v0 = vrot.slane %v2802_v16, 4  ;;  %v4244_v41 = vpack.c.bf16 %v3958_v21, %v3957_v36  ;;  %v3959_v40 = vld [vmem:[%s9519_s1 + $0x30] sm:$0xff] }
 0x50c   :  { %v2876_v12 = vsel %vm403_vm12, %v2843_v0, %v2844_v57  ;;  %v2808_v14 = vpop.permute.xlu1 %2807  ;;  %v3962_v0 = vld [vmem:[%s9519_s1 + $0x48] sm:$0xff] }
 0x50d   :  { %v2877_v17 = vsel %vm2854_vm13, %v2802_v16, %v2876_v12  ;;  %v2846_v60 = vrot.slane %v2808_v14, 4  ;;  %v2806_v20 = vpop.permute.xlu0 %2805  ;;  %v3961_v16 = vld [vmem:[%s9519_s1 + $0x40] sm:$0xff]  ;;  %v3963_v14 = vld [vmem:[%s9519_s1 + $0x50] sm:$0xff] }
 0x50e   :  { %2913 = vst [vmem:[%s9513_s21 + $0x58] sm:$0xff] %v2877_v17  ;;  %v2845_v13 = vrot.slane %v2806_v20, 4  ;;  %v4250_v12 = vpack.c.bf16 %v3962_v0, %v3961_v16  ;;  %v3964_v17 = vld [vmem:[%s9519_s1 + $0x58] sm:$0xff] }
 0x510   :  { %v2878_v7 = vsel %vm403_vm12, %v2845_v13, %v2846_v60  ;;  %v2812_v27 = vpop.permute.xlu1 %2811  ;;  %v4253_v60 = vpack.c.bf16 %v3964_v17, %v3963_v14  ;;  %v3966_v13 = vld [vmem:[%s9519_s1 + $0x68] sm:$0xff] }
 0x511   :  { %v2879_v26 = vsel %vm2854_vm13, %v2806_v20, %v2878_v7  ;;  %v2848_v9 = vrot.slane %v2812_v27, 4  ;;  %v2810_v55 = vpop.permute.xlu0 %2809  ;;  %v3965_v20 = vld [vmem:[%s9519_s1 + $0x60] sm:$0xff] }
 0x512   :  { %2914 = vst [vmem:[%s9513_s21 + $0x60] sm:$0xff] %v2879_v26  ;;  %v2847_v25 = vrot.slane %v2810_v55, 4  ;;  %v4256_v7 = vpack.c.bf16 %v3966_v13, %v3965_v20 }
 0x514   :  { %v2880_v39 = vsel %vm403_vm12, %v2847_v25, %v2848_v9  ;;  %v2816_v37 = vpop.permute.xlu1 %2815 }
 0x515   :  { %v2881_v59 = vsel %vm2854_vm13, %v2810_v55, %v2880_v39  ;;  %v2850_v61 = vrot.slane %v2816_v37, 4  ;;  %v2814_v15 = vpop.permute.xlu0 %2813 }
 0x516   :  { %2915 = vst [vmem:[%s9513_s21 + $0x68] sm:$0xff] %v2881_v59  ;;  %v2849_v50 = vrot.slane %v2814_v15, 4 }
 0x518   :  { %v2882_v3 = vsel %vm403_vm12, %v2849_v50, %v2850_v61  ;;  %v2820_v53 = vpop.permute.xlu1 %2819 }
 0x519   :  { %v2883_v58 = vsel %vm2854_vm13, %v2814_v15, %v2882_v3  ;;  %v2852_v1 = vrot.slane %v2820_v53, 4  ;;  %v2818_v29 = vpop.permute.xlu0 %2817 }
 0x51a   :  { %2916 = vst [vmem:[%s9513_s21 + $0x70] sm:$0xff] %v2883_v58  ;;  %v2851_v44 = vrot.slane %v2818_v29, 4 }
 0x51c   :  { %v2884_v45 = vsel %vm403_vm12, %v2851_v44, %v2852_v1  ;;  %vm3756_vm12 = vcmask 910336  }
 0x51d   :  { %v2885_v10 = vsel %vm2854_vm13, %v2818_v29, %v2884_v45 }
 0x51e   :  { %2917 = vst [vmem:[%s9513_s21 + $0x78] sm:$0xff] %v2885_v10 }
 0x5be   :  { %v3752_v43 = vpop.f32.mrb[0].mxu1 }
 0x5bf   :  { %3757 = vst.msk [vmem:[%s9517_s14] sm:$0x3] %vm3756_vm12, %v3752_v43  ;;  %v3765_v28 = vmul.f32 %v4077_v42, %v3752_v43  ;;  %v4139_v8 = vpop.f32.mrb[1].mxu1 }
 0x5c1   :  { %v3773_v51 = vadd.f32 %v4078_v62, %v3765_v28 }
 0x5c3   :  { %v3774_v22 = vmul.f32 %v3773_v51, %v3773_v51 }
 0x5c5   :  { %4169 = vmatmul.mubr.msk.f32.vlgmr.msra.gmra.mrb[2].mxu1 %vm1023_vm15, %v3774_v22 }
 0x698   :  { %v3858_v18 = vpop.f32.mrb[2].mxu1 }
 0x699   :  { %4422 = vrsqrt.f32 %v3858_v18  ;;  %v4170_v52 = vpop.f32.mrb[3].mxu1  ;;  %vm3864_vm7 = vcmp.eq.f32.partialorder %v3858_v18, inf  ;;  %v3867_v23 = vand.u32 2147483648, %v3858_v18  ;;  %vm3866_vm10 = vcmp.eq.f32.partialorder %v3858_v18, 0.0 }
 0x6a3   :  { %v4423_v24 = vpop.eup %4422 }
 0x6a4   :  { %v3863_v35 = vmul.f32 %v4423_v24, %v3858_v18 }
 0x6a6   :  { %v3865_v48 = vsel %vm3864_vm7, %v3858_v18, %v3863_v35 }
 0x6a7   :  { %v3868_v4 = vsel %vm3866_vm10, %v3867_v23, %v3865_v48 }
 0x6a8   :  { %v3869_v56 = vmax.f32 %v3868_v4, 1e-12 }
 0x6aa   :  { %4424 = vrcp.f32 %v3869_v56 }
 0x6b4   :  { %v4425_v5 = vpop.eup %4424 }
 0x6b5   :  { %4174 = vmatmul.mubr.msk.f32.vlgmr.msra.gmra.mrb[0].mxu0 %vm3873_vm3, %v4425_v5 }
 0x6b6   :  { %4239 = vmatpush3.bf16.msra.mxu0 %v4238_v19  ;;  %4204 = vmatprep.mubr.msk.f32.mxu0 %vm4472_vm11, %v9488_v6  ;;  %v3960_v6 = vld [vmem:[%s9519_s1 + $0x38] sm:$0xff] }
 0x6b7   :  { %4240 = vmatprep.subr.bf16.mxu0 %v4471_v33  ;;  %v4247_v57 = vpack.c.bf16 %v3960_v6, %v3959_v40 }
 0x6ba   :  { %4242 = vmatpush3.bf16.msra.mxu0 %v4241_v32 }
 0x6bb   :  { %4243 = vmatprep.subr.bf16.mxu0 %v4471_v33 }
 0x6be   :  { %4245 = vmatpush3.bf16.msra.mxu0 %v4244_v41 }
 0x6bf   :  { %4246 = vmatprep.subr.bf16.mxu0 %v4471_v33 }
 0x6c2   :  { %4248 = vmatpush3.bf16.msra.mxu0 %v4247_v57 }
 0x6c3   :  { %4249 = vmatprep.subr.bf16.mxu0 %v4471_v33 }
 0x6c6   :  { %4251 = vmatpush3.bf16.msra.mxu0 %v4250_v12 }
 0x6c7   :  { %4252 = vmatprep.subr.bf16.mxu0 %v4471_v33 }
 0x6ca   :  { %4254 = vmatpush3.bf16.msra.mxu0 %v4253_v60 }
 0x6cb   :  { %4255 = vmatprep.subr.bf16.mxu0 %v4471_v33 }
 0x6ce   :  { %4257 = vmatpush3.bf16.msra.mxu0 %v4256_v7 }
 0x788   :  { %v3947_v27 = vpop.f32.mrb[0].mxu0 }
 0x789   :  { %v3951_v26 = vmul.f32 %v3947_v27, %v3773_v51  ;;  %v4175_v9 = vpop.f32.mrb[1].mxu0 }
 0x78b   :  { %3952 = vst.msk [vmem:[#allocation3] sm:$0x3] %vm3756_vm12, %v3951_v26  ;;  %4205 = vmatmul.mubr.msk.f32.vlgmr.msra.gmra.mrb[2].mxu0 %vm1023_vm15, %v3951_v26 }
 0x78c   :  { %4441 = shalt.err (!%p4438_p4)
}
 0x78d   :  { %s9520_s15 = sld [smem:[#allocation233_spill]] }
 0x793   :  { %s4442_s23 = scalar_lea.hbm %s9520_s15, 32 }
 0x794   :  { %p4443_p5 = scmp.ne.s32.totalorder %s9520_s15, %s4442_s23  ;;  %p4446_p6 = scmp.lt.u32.totalorder %s4442_s23, %s9520_s15 }
 0x796   :  { %p4448_p7 = pnand %p4446_p6, %p4443_p5 }
 0x798   :  { %4451 = shalt.err (!%p4448_p7)
}
 0x799   :  { %4059 = dma.vmem_to_hbm [thread:$0]  %s4057_s20, 32, %s9520_s15, [#allocation4]   ;;  %vm4040_vm15 = vcmask 566272  }
 0x79a   :  { %s9521_s16 = sld [smem:[#allocation234_spill]] }
 0x85e   :  { %v4036_v33 = vpop.f32.mrb[2].mxu0 }
 0x85f   :  { %4041 = vst.msk [vmem:[%s9521_s16] sm:$0x3] %vm4040_vm15, %v4036_v33  ;;  %v4206_v55 = vpop.f32.mrb[3].mxu0 }
 0x860   :  { %4452 = dma.done.wait [#allocation4], 32  }
 0x861   :  { %4453 = vsyncadd [#allocation4], 4294967264 }
 0x862   :  { %4075 = vsyncpa [#allocation4], 1 }

</bundles_post_ra>
